<compile_context>
chip_gen: v6e
topology: v6e:2x2x1
jax: 0.10.0
libtpu: 0.0.40
codegen_flags: <defaults>
</compile_context>

<pallas_src>
import functools
from math import sqrt

import numpy as np
import jax
import jax.numpy as jnp
from jax import lax
from jax.experimental import pallas as pl
from jax.experimental.pallas import tpu as pltpu


def _round_up(x, m):
    return (x + m - 1) // m * m


# -----------------------------------------------------------------------------
# One fused conv3x3(+bias,+ReLU) + maxpool2x2 stage, channel-major, no scratch.
# -----------------------------------------------------------------------------
def _conv3x3_pool_stage(a, w_ref, b_ref, sel, *, H, W):
    """a:   [Cin, Mp] activation value; lanes ordered (b, h, w).  Mp may be
             lane-padded past nb*H*W (padding is finite and never selected).
       w_ref: [9, Cout, Cin] conv weights, tap-major (t = kh*3 + kw).
       b_ref: [Cout, 1] bias.
       sel: [Mp, Mo] 0/1 lane-compaction matrix picking the 2x2 pool anchors,
            or None to keep the un-compacted (anchor-valid) result.
       Returns relu(maxpool2x2(conv3x3(a)) + b)."""
    Cin, Mp = a.shape
    log2w = W.bit_length() - 1

    # Boundary predicates hoisted out of the 9-tap loop (computed once).
    lane = lax.broadcasted_iota(jnp.int32, (Cin, Mp), 1)
    wi = lane & (W - 1)                     # w coordinate of the output lane
    hi = (lane >> log2w) & (H - 1)          # h coordinate of the output lane
    w_pred = {-1: wi >= 1, 1: wi <= W - 2}
    h_pred = {-1: hi >= 1, 1: hi <= H - 2}

    # conv = 9 accumulated MXU matmuls on lane-rolled inputs (no patch slab).
    # roll is circular; any wrapped/cross-sample lane is zeroed by the masks,
    # so no memset / head-tail special cases are needed.
    acc = None
    for di in (-1, 0, 1):
        for dj in (-1, 0, 1):
            t = (di + 1) * 3 + (dj + 1)
            s = di * W + dj
            src = a if s == 0 else pltpu.roll(a, (-s) % Mp, axis=1)
            mask = None
            if dj != 0:
                mask = w_pred[dj]
            if di != 0:
                mask = h_pred[di] if mask is None else (mask & h_pred[di])
            if mask is not None:
                src = jnp.where(mask, src, 0.0)
            term = jnp.dot(w_ref[t], src, preferred_element_type=jnp.float32)
            acc = term if acc is None else acc + term

    # Fused 2x2/2 max-pool on the accumulator (bias/ReLU commute with max):
    # window max lands on the (even h, even w) anchor lanes.
    m1 = jnp.maximum(acc, pltpu.roll(acc, Mp - 1, axis=1))    # pair along w
    mw = jnp.maximum(m1, pltpu.roll(m1, Mp - W, axis=1))      # pair along h
    if sel is not None:
        # anchor compaction on the (idle) MXU: picks lanes b*H*W + 2ho*W + 2wo
        mw = jnp.dot(mw, sel, preferred_element_type=jnp.float32)
    return jnp.maximum(mw + b_ref[...], 0.0)


# -----------------------------------------------------------------------------
# Whole-network fused kernel (one batch tile of nb samples per grid step).
# -----------------------------------------------------------------------------
def _target_cnn_kernel(x_ref, w1_ref, b1_ref, w2_ref, b2_ref, w3_ref, b3_ref,
                       wfc_ref, bfc_ref, s1_ref, s2_ref, out_ref, *, nb):
    a1 = x_ref[...]                                               # [8, nb*256]
    a2 = _conv3x3_pool_stage(a1, w1_ref, b1_ref, s1_ref[...], H=16, W=16)
    a3 = _conv3x3_pool_stage(a2, w2_ref, b2_ref, s2_ref[...], H=8, W=8)
    # Stage 3: keep un-compacted; the FC gathers the 4 pool anchors directly.
    f3 = _conv3x3_pool_stage(a3, w3_ref, b3_ref, None, H=4, W=4)  # [32, M3p]

    # fc_1: logits_T[o, b] = sum_{c,p} wfc[p, o, c] * f3[c, b*16 + anchor(p)] + bias
    # (anchor(p) is the lane of pooled position p = ph*2 + pw inside a sample.)
    M3p = f3.shape[1]
    m_idx = lax.broadcasted_iota(jnp.int32, (M3p, nb), 0)
    b_idx = lax.broadcasted_iota(jnp.int32, (M3p, nb), 1)
    logits = None
    for p in range(4):
        anchor = (p // 2) * 8 + (p % 2) * 2
        rp = jnp.where(m_idx == b_idx * 16 + anchor, 1.0, 0.0)        # [M3p, nb]
        gp = jnp.dot(f3, rp, preferred_element_type=jnp.float32)      # [32, nb]
        term = jnp.dot(wfc_ref[p], gp, preferred_element_type=jnp.float32)
        logits = term if logits is None else logits + term
    out_ref[0] = logits + bfc_ref[...]                                # [10, nb]


# -----------------------------------------------------------------------------
# Host-side constants / wrapper
# -----------------------------------------------------------------------------
def _pool_select_matrix(nb, H, W, rows, cols):
    """0/1 matrix S with S[b*H*W + 2ho*W + 2wo, b*Ho*Wo + ho*Wo + wo] = 1."""
    Ho, Wo = H // 2, W // 2
    sel = np.zeros((rows, cols), np.float32)
    for b in range(nb):
        for ho in range(Ho):
            for wo in range(Wo):
                sel[b * H * W + 2 * ho * W + 2 * wo,
                    b * Ho * Wo + ho * Wo + wo] = 1.0
    return jnp.asarray(sel)


def _pick_batch_tile(n):
    if n <= 4:
        return n
    for d in (4, 2, 1):
        if n % d == 0:
            return d


def target_forward_fn(x_nchw, kp):
    n, c, h, w = x_nchw.shape
    assert (c, h, w) == (4, 16, 16), "Target expects NCHW input with C=4, H=W=16"
    nb = _pick_batch_tile(n)            # samples per grid step
    n_tiles = n // nb
    m2p = _round_up(nb * 8 * 8, 128)    # stage-2 lane width (padded to 128)
    m3p = _round_up(nb * 4 * 4, 128)    # stage-3 lane width (padded to 128)

    # NCHW -> channel-major [C, n*H*W]; pad channels 4 -> 8 so every rolled
    # operand has a full 8-sublane tile (matching zero weight columns in w1).
    x_t = jnp.transpose(x_nchw, (1, 0, 2, 3)).reshape(c, n * h * w)
    x_t = jnp.pad(x_t.astype(jnp.float32), ((0, 8 - c), (0, 0)))

    # Pool-anchor compaction matrices (trace-time constants, VMEM-resident
    # across all grid steps via index_map -> block 0).
    s1 = _pool_select_matrix(nb, 16, 16, nb * 256, m2p)
    s2 = _pool_select_matrix(nb, 8, 8, m2p, m3p)

    full = lambda shape: pl.BlockSpec(shape, lambda i: (0,) * len(shape))
    kernel = functools.partial(_target_cnn_kernel, nb=nb)
    out = pl.pallas_call(
        kernel,
        out_shape=jax.ShapeDtypeStruct((n_tiles, 10, nb), jnp.float32),
        grid=(n_tiles,),
        in_specs=[
            pl.BlockSpec((8, nb * 256), lambda i: (0, i)),   # batch-tiled input
            full(kp["w1"].shape), full(kp["b1"].shape),
            full(kp["w2"].shape), full(kp["b2"].shape),
            full(kp["w3"].shape), full(kp["b3"].shape),
            full(kp["wfc"].shape), full(kp["bfc"].shape),
            full(s1.shape), full(s2.shape),
        ],
        out_specs=pl.BlockSpec((1, 10, nb), lambda i: (i, 0, 0)),
        compiler_params=pltpu.CompilerParams(dimension_semantics=("parallel",)),
    )(x_t, kp["w1"], kp["b1"], kp["w2"], kp["b2"], kp["w3"], kp["b3"],
      kp["wfc"], kp["bfc"], s1, s2)

    # [n_tiles, 10, nb] -> [n, 10]  (layout plumbing only)
    return jnp.transpose(out, (0, 2, 1)).reshape(n, 10)


target_forward = jax.jit(target_forward_fn)


# -----------------------------------------------------------------------------
# Parameters: PyTorch-style U(-1/sqrt(fan_in), +1/sqrt(fan_in)) init (raw
# layouts), plus a hoisted re-layout pass for the kernel.
# -----------------------------------------------------------------------------
def init_params(key):
    def uinit(k, shape, fan_in):
        bound = 1.0 / sqrt(fan_in)
        return jax.random.uniform(k, shape, jnp.float32, -bound, bound)

    ks = jax.random.split(key, 8)
    return {
        "conv1_w": uinit(ks[0], (8, 4, 3, 3), 4 * 9),
        "conv1_b": uinit(ks[1], (8,), 4 * 9),
        "conv2_w": uinit(ks[2], (16, 8, 3, 3), 8 * 9),
        "conv2_b": uinit(ks[3], (16,), 8 * 9),
        "conv3_w": uinit(ks[4], (32, 16, 3, 3), 16 * 9),
        "conv3_b": uinit(ks[5], (32,), 16 * 9),
        "fc1_w": uinit(ks[6], (10, 32 * 2 * 2), 32 * 2 * 2),
        "fc1_b": uinit(ks[7], (10,), 32 * 2 * 2),
    }


def pack_params(raw):
    """Hoisted weight re-layouts: conv OIHW -> [9, Cout, Cin] (tap-major),
    fc [10, 128] (feature order (c, h, w)) -> [4, 10, 32] (p = h*2+w major)."""
    def conv_pack(w):
        cout, cin = w.shape[0], w.shape[1]
        return jnp.transpose(w, (2, 3, 0, 1)).reshape(9, cout, cin)

    w1 = jnp.pad(conv_pack(raw["conv1_w"]), ((0, 0), (0, 0), (0, 4)))  # Cin 4->8
    wfc = jnp.transpose(raw["fc1_w"].reshape(10, 32, 2, 2),
                        (2, 3, 0, 1)).reshape(4, 10, 32)
    return {
        "w1": w1, "b1": raw["conv1_b"].reshape(-1, 1),
        "w2": conv_pack(raw["conv2_w"]), "b2": raw["conv2_b"].reshape(-1, 1),
        "w3": conv_pack(raw["conv3_w"]), "b3": raw["conv3_b"].reshape(-1, 1),
        "wfc": wfc, "bfc": raw["fc1_b"].reshape(-1, 1),
    }


# -----------------------------------------------------------------------------
# Pure-JAX reference (for correctness checking only)
# -----------------------------------------------------------------------------
def reference_forward(x, raw):
    dn = ("NCHW", "OIHW", "NCHW")
    y = x.astype(jnp.float32)
    for wk, bk in (("conv1_w", "conv1_b"), ("conv2_w", "conv2_b"),
                   ("conv3_w", "conv3_b")):
        y = lax.conv_general_dilated(y, raw[wk], (1, 1), "SAME",
                                     dimension_numbers=dn,
                                     precision=lax.Precision.HIGHEST)
        y = jnp.maximum(y + raw[bk][None, :, None, None], 0.0)
        y = lax.reduce_window(y, -jnp.inf, lax.max,
                              (1, 1, 2, 2), (1, 1, 2, 2), "VALID")
    flat = y.reshape(y.shape[0], -1)
    return jnp.dot(flat, raw["fc1_w"].T,
                   precision=lax.Precision.HIGHEST) + raw["fc1_b"]


if __name__ == "__main__":
    key = jax.random.PRNGKey(0)
    pkey, xkey = jax.random.split(key)
    raw = init_params(pkey)
    params = pack_params(raw)

    x = jax.random.normal(xkey, (2, 4, 16, 16), dtype=jnp.float32)

    out = target_forward(x, params)
    jax.block_until_ready(out)
    assert out.shape == (2, 10), out.shape

    ref = reference_forward(x, raw)
    np.testing.assert_allclose(np.asarray(out), np.asarray(ref),
                               rtol=1e-3, atol=1e-3)
    print("KERNEL_OK")
</pallas_src>

<mosaic_0001>
module attributes {stable_mosaic.version = 11 : i64} {
  func.func @_target_cnn_kernel(%arg0: i32, %arg1: memref<8x512xf32, #tpu.memory_space<vmem>>, %arg2: memref<9x8x8xf32, #tpu.memory_space<vmem>>, %arg3: memref<8x1xf32, #tpu.memory_space<vmem>>, %arg4: memref<9x16x8xf32, #tpu.memory_space<vmem>>, %arg5: memref<16x1xf32, #tpu.memory_space<vmem>>, %arg6: memref<9x32x16xf32, #tpu.memory_space<vmem>>, %arg7: memref<32x1xf32, #tpu.memory_space<vmem>>, %arg8: memref<4x10x32xf32, #tpu.memory_space<vmem>>, %arg9: memref<10x1xf32, #tpu.memory_space<vmem>>, %arg10: memref<512x128xf32, #tpu.memory_space<vmem>>, %arg11: memref<128x128xf32, #tpu.memory_space<vmem>>, %arg12: memref<1x10x2xf32, #tpu.memory_space<vmem>>) attributes {dimension_semantics = [#tpu.dimension_semantics<parallel>], iteration_bounds = array<i64: 1>, scalar_prefetch = 0 : i64, scratch_operands = 0 : i64, tpu.core_type = #tpu.core_type<tc>, window_params = [{transform_indices = @transform_0, window_bounds = array<i64: 8, 512>}, {pipeline_mode = #tpu.pipeline_mode<synchronous>, transform_indices = @transform_1, window_bounds = array<i64: 9, 8, 8>}, {pipeline_mode = #tpu.pipeline_mode<synchronous>, transform_indices = @transform_2, window_bounds = array<i64: 8, 1>}, {pipeline_mode = #tpu.pipeline_mode<synchronous>, transform_indices = @transform_3, window_bounds = array<i64: 9, 16, 8>}, {pipeline_mode = #tpu.pipeline_mode<synchronous>, transform_indices = @transform_4, window_bounds = array<i64: 16, 1>}, {pipeline_mode = #tpu.pipeline_mode<synchronous>, transform_indices = @transform_5, window_bounds = array<i64: 9, 32, 16>}, {pipeline_mode = #tpu.pipeline_mode<synchronous>, transform_indices = @transform_6, window_bounds = array<i64: 32, 1>}, {pipeline_mode = #tpu.pipeline_mode<synchronous>, transform_indices = @transform_7, window_bounds = array<i64: 4, 10, 32>}, {pipeline_mode = #tpu.pipeline_mode<synchronous>, transform_indices = @transform_8, window_bounds = array<i64: 10, 1>}, {pipeline_mode = #tpu.pipeline_mode<synchronous>, transform_indices = @transform_9, window_bounds = array<i64: 512, 128>}, {pipeline_mode = #tpu.pipeline_mode<synchronous>, transform_indices = @transform_10, window_bounds = array<i64: 128, 128>}, {transform_indices = @transform_11, window_bounds = array<i64: 1, 10, 2>}]} {
    %c0 = arith.constant 0 : index
    %c0_0 = arith.constant 0 : index
    %0 = vector.load %arg1[%c0, %c0_0] : memref<8x512xf32, #tpu.memory_space<vmem>>, vector<8x512xf32>
    %c0_1 = arith.constant 0 : index
    %c0_2 = arith.constant 0 : index
    %1 = vector.load %arg10[%c0_1, %c0_2] : memref<512x128xf32, #tpu.memory_space<vmem>>, vector<512x128xf32>
    %2 = tpu.iota {dimensions = array<i32: 1>} : vector<8x512xi32>
    %c15_i32 = arith.constant 15 : i32
    %3 = vector.broadcast %c15_i32 : i32 to vector<8x512xi32>
    %4 = arith.andi %2, %3 : vector<8x512xi32>
    %c4_i32 = arith.constant 4 : i32
    %5 = vector.broadcast %c4_i32 : i32 to vector<8x512xi32>
    %6 = arith.shrsi %2, %5 : vector<8x512xi32>
    %c15_i32_3 = arith.constant 15 : i32
    %7 = vector.broadcast %c15_i32_3 : i32 to vector<8x512xi32>
    %8 = arith.andi %6, %7 : vector<8x512xi32>
    %c1_i32 = arith.constant 1 : i32
    %9 = vector.broadcast %c1_i32 : i32 to vector<8x512xi32>
    %10 = arith.cmpi sge, %4, %9 : vector<8x512xi32>
    %c14_i32 = arith.constant 14 : i32
    %11 = vector.broadcast %c14_i32 : i32 to vector<8x512xi32>
    %12 = arith.cmpi sle, %4, %11 : vector<8x512xi32>
    %c1_i32_4 = arith.constant 1 : i32
    %13 = vector.broadcast %c1_i32_4 : i32 to vector<8x512xi32>
    %14 = arith.cmpi sge, %8, %13 : vector<8x512xi32>
    %c14_i32_5 = arith.constant 14 : i32
    %15 = vector.broadcast %c14_i32_5 : i32 to vector<8x512xi32>
    %16 = arith.cmpi sle, %8, %15 : vector<8x512xi32>
    %c17_i32 = arith.constant 17 : i32
    %17 = tpu.dynamic_rotate %0 by %c17_i32 dim 1 : vector<8x512xf32>, i32 -> vector<8x512xf32>
    %18 = arith.andi %10, %14 : vector<8x512xi1>
    %cst = arith.constant 0.000000e+00 : f32
    %19 = vector.broadcast %cst : f32 to vector<8x512xf32>
    %20 = arith.select %18, %17, %19 : vector<8x512xi1>, vector<8x512xf32>
    %c0_6 = arith.constant 0 : index
    %c0_7 = arith.constant 0 : index
    %c0_8 = arith.constant 0 : index
    %21 = vector.load %arg2[%c0_6, %c0_7, %c0_8] : memref<9x8x8xf32, #tpu.memory_space<vmem>>, vector<1x8x8xf32>
    %22 = vector.shape_cast %21 : vector<1x8x8xf32> to vector<8x8xf32>
    %cst_9 = arith.constant dense<0.000000e+00> : vector<8x512xf32>
    %23 = tpu.matmul %22, %20, %cst_9 {dimension_numbers = #tpu.dot_dimension_numbers<[1], [0], [0], [1], [0, 0, 1, 1], [], []>} : vector<8x8xf32>, vector<8x512xf32>, vector<8x512xf32> -> vector<8x512xf32>
    %c16_i32 = arith.constant 16 : i32
    %24 = tpu.dynamic_rotate %0 by %c16_i32 dim 1 : vector<8x512xf32>, i32 -> vector<8x512xf32>
    %cst_10 = arith.constant 0.000000e+00 : f32
    %25 = vector.broadcast %cst_10 : f32 to vector<8x512xf32>
    %26 = arith.select %14, %24, %25 : vector<8x512xi1>, vector<8x512xf32>
    %c1 = arith.constant 1 : index
    %c0_11 = arith.constant 0 : index
    %c0_12 = arith.constant 0 : index
    %27 = vector.load %arg2[%c1, %c0_11, %c0_12] : memref<9x8x8xf32, #tpu.memory_space<vmem>>, vector<1x8x8xf32>
    %28 = vector.shape_cast %27 : vector<1x8x8xf32> to vector<8x8xf32>
    %cst_13 = arith.constant dense<0.000000e+00> : vector<8x512xf32>
    %29 = tpu.matmul %28, %26, %cst_13 {dimension_numbers = #tpu.dot_dimension_numbers<[1], [0], [0], [1], [0, 0, 1, 1], [], []>} : vector<8x8xf32>, vector<8x512xf32>, vector<8x512xf32> -> vector<8x512xf32>
    %30 = arith.addf %23, %29 : vector<8x512xf32>
    %c15_i32_14 = arith.constant 15 : i32
    %31 = tpu.dynamic_rotate %0 by %c15_i32_14 dim 1 : vector<8x512xf32>, i32 -> vector<8x512xf32>
    %32 = arith.andi %12, %14 : vector<8x512xi1>
    %cst_15 = arith.constant 0.000000e+00 : f32
    %33 = vector.broadcast %cst_15 : f32 to vector<8x512xf32>
    %34 = arith.select %32, %31, %33 : vector<8x512xi1>, vector<8x512xf32>
    %c2 = arith.constant 2 : index
    %c0_16 = arith.constant 0 : index
    %c0_17 = arith.constant 0 : index
    %35 = vector.load %arg2[%c2, %c0_16, %c0_17] : memref<9x8x8xf32, #tpu.memory_space<vmem>>, vector<1x8x8xf32>
    %36 = vector.shape_cast %35 : vector<1x8x8xf32> to vector<8x8xf32>
    %cst_18 = arith.constant dense<0.000000e+00> : vector<8x512xf32>
    %37 = tpu.matmul %36, %34, %cst_18 {dimension_numbers = #tpu.dot_dimension_numbers<[1], [0], [0], [1], [0, 0, 1, 1], [], []>} : vector<8x8xf32>, vector<8x512xf32>, vector<8x512xf32> -> vector<8x512xf32>
    %38 = arith.addf %30, %37 : vector<8x512xf32>
    %c1_i32_19 = arith.constant 1 : i32
    %39 = tpu.dynamic_rotate %0 by %c1_i32_19 dim 1 : vector<8x512xf32>, i32 -> vector<8x512xf32>
    %cst_20 = arith.constant 0.000000e+00 : f32
    %40 = vector.broadcast %cst_20 : f32 to vector<8x512xf32>
    %41 = arith.select %10, %39, %40 : vector<8x512xi1>, vector<8x512xf32>
    %c3 = arith.constant 3 : index
    %c0_21 = arith.constant 0 : index
    %c0_22 = arith.constant 0 : index
    %42 = vector.load %arg2[%c3, %c0_21, %c0_22] : memref<9x8x8xf32, #tpu.memory_space<vmem>>, vector<1x8x8xf32>
    %43 = vector.shape_cast %42 : vector<1x8x8xf32> to vector<8x8xf32>
    %cst_23 = arith.constant dense<0.000000e+00> : vector<8x512xf32>
    %44 = tpu.matmul %43, %41, %cst_23 {dimension_numbers = #tpu.dot_dimension_numbers<[1], [0], [0], [1], [0, 0, 1, 1], [], []>} : vector<8x8xf32>, vector<8x512xf32>, vector<8x512xf32> -> vector<8x512xf32>
    %45 = arith.addf %38, %44 : vector<8x512xf32>
    %c4 = arith.constant 4 : index
    %c0_24 = arith.constant 0 : index
    %c0_25 = arith.constant 0 : index
    %46 = vector.load %arg2[%c4, %c0_24, %c0_25] : memref<9x8x8xf32, #tpu.memory_space<vmem>>, vector<1x8x8xf32>
    %47 = vector.shape_cast %46 : vector<1x8x8xf32> to vector<8x8xf32>
    %cst_26 = arith.constant dense<0.000000e+00> : vector<8x512xf32>
    %48 = tpu.matmul %47, %0, %cst_26 {dimension_numbers = #tpu.dot_dimension_numbers<[1], [0], [0], [1], [0, 0, 1, 1], [], []>} : vector<8x8xf32>, vector<8x512xf32>, vector<8x512xf32> -> vector<8x512xf32>
    %49 = arith.addf %45, %48 : vector<8x512xf32>
    %c511_i32 = arith.constant 511 : i32
    %50 = tpu.dynamic_rotate %0 by %c511_i32 dim 1 : vector<8x512xf32>, i32 -> vector<8x512xf32>
    %cst_27 = arith.constant 0.000000e+00 : f32
    %51 = vector.broadcast %cst_27 : f32 to vector<8x512xf32>
    %52 = arith.select %12, %50, %51 : vector<8x512xi1>, vector<8x512xf32>
    %c5 = arith.constant 5 : index
    %c0_28 = arith.constant 0 : index
    %c0_29 = arith.constant 0 : index
    %53 = vector.load %arg2[%c5, %c0_28, %c0_29] : memref<9x8x8xf32, #tpu.memory_space<vmem>>, vector<1x8x8xf32>
    %54 = vector.shape_cast %53 : vector<1x8x8xf32> to vector<8x8xf32>
    %cst_30 = arith.constant dense<0.000000e+00> : vector<8x512xf32>
    %55 = tpu.matmul %54, %52, %cst_30 {dimension_numbers = #tpu.dot_dimension_numbers<[1], [0], [0], [1], [0, 0, 1, 1], [], []>} : vector<8x8xf32>, vector<8x512xf32>, vector<8x512xf32> -> vector<8x512xf32>
    %56 = arith.addf %49, %55 : vector<8x512xf32>
    %c497_i32 = arith.constant 497 : i32
    %57 = tpu.dynamic_rotate %0 by %c497_i32 dim 1 : vector<8x512xf32>, i32 -> vector<8x512xf32>
    %58 = arith.andi %10, %16 : vector<8x512xi1>
    %cst_31 = arith.constant 0.000000e+00 : f32
    %59 = vector.broadcast %cst_31 : f32 to vector<8x512xf32>
    %60 = arith.select %58, %57, %59 : vector<8x512xi1>, vector<8x512xf32>
    %c6 = arith.constant 6 : index
    %c0_32 = arith.constant 0 : index
    %c0_33 = arith.constant 0 : index
    %61 = vector.load %arg2[%c6, %c0_32, %c0_33] : memref<9x8x8xf32, #tpu.memory_space<vmem>>, vector<1x8x8xf32>
    %62 = vector.shape_cast %61 : vector<1x8x8xf32> to vector<8x8xf32>
    %cst_34 = arith.constant dense<0.000000e+00> : vector<8x512xf32>
    %63 = tpu.matmul %62, %60, %cst_34 {dimension_numbers = #tpu.dot_dimension_numbers<[1], [0], [0], [1], [0, 0, 1, 1], [], []>} : vector<8x8xf32>, vector<8x512xf32>, vector<8x512xf32> -> vector<8x512xf32>
    %64 = arith.addf %56, %63 : vector<8x512xf32>
    %c496_i32 = arith.constant 496 : i32
    %65 = tpu.dynamic_rotate %0 by %c496_i32 dim 1 : vector<8x512xf32>, i32 -> vector<8x512xf32>
    %cst_35 = arith.constant 0.000000e+00 : f32
    %66 = vector.broadcast %cst_35 : f32 to vector<8x512xf32>
    %67 = arith.select %16, %65, %66 : vector<8x512xi1>, vector<8x512xf32>
    %c7 = arith.constant 7 : index
    %c0_36 = arith.constant 0 : index
    %c0_37 = arith.constant 0 : index
    %68 = vector.load %arg2[%c7, %c0_36, %c0_37] : memref<9x8x8xf32, #tpu.memory_space<vmem>>, vector<1x8x8xf32>
    %69 = vector.shape_cast %68 : vector<1x8x8xf32> to vector<8x8xf32>
    %cst_38 = arith.constant dense<0.000000e+00> : vector<8x512xf32>
    %70 = tpu.matmul %69, %67, %cst_38 {dimension_numbers = #tpu.dot_dimension_numbers<[1], [0], [0], [1], [0, 0, 1, 1], [], []>} : vector<8x8xf32>, vector<8x512xf32>, vector<8x512xf32> -> vector<8x512xf32>
    %71 = arith.addf %64, %70 : vector<8x512xf32>
    %c495_i32 = arith.constant 495 : i32
    %72 = tpu.dynamic_rotate %0 by %c495_i32 dim 1 : vector<8x512xf32>, i32 -> vector<8x512xf32>
    %73 = arith.andi %12, %16 : vector<8x512xi1>
    %cst_39 = arith.constant 0.000000e+00 : f32
    %74 = vector.broadcast %cst_39 : f32 to vector<8x512xf32>
    %75 = arith.select %73, %72, %74 : vector<8x512xi1>, vector<8x512xf32>
    %c8 = arith.constant 8 : index
    %c0_40 = arith.constant 0 : index
    %c0_41 = arith.constant 0 : index
    %76 = vector.load %arg2[%c8, %c0_40, %c0_41] : memref<9x8x8xf32, #tpu.memory_space<vmem>>, vector<1x8x8xf32>
    %77 = vector.shape_cast %76 : vector<1x8x8xf32> to vector<8x8xf32>
    %cst_42 = arith.constant dense<0.000000e+00> : vector<8x512xf32>
    %78 = tpu.matmul %77, %75, %cst_42 {dimension_numbers = #tpu.dot_dimension_numbers<[1], [0], [0], [1], [0, 0, 1, 1], [], []>} : vector<8x8xf32>, vector<8x512xf32>, vector<8x512xf32> -> vector<8x512xf32>
    %79 = arith.addf %71, %78 : vector<8x512xf32>
    %c511_i32_43 = arith.constant 511 : i32
    %80 = tpu.dynamic_rotate %79 by %c511_i32_43 dim 1 : vector<8x512xf32>, i32 -> vector<8x512xf32>
    %81 = arith.maximumf %79, %80 : vector<8x512xf32>
    %c496_i32_44 = arith.constant 496 : i32
    %82 = tpu.dynamic_rotate %81 by %c496_i32_44 dim 1 : vector<8x512xf32>, i32 -> vector<8x512xf32>
    %83 = arith.maximumf %81, %82 : vector<8x512xf32>
    %cst_45 = arith.constant dense<0.000000e+00> : vector<8x128xf32>
    %84 = tpu.matmul %83, %1, %cst_45 {dimension_numbers = #tpu.dot_dimension_numbers<[1], [0], [0], [1], [0, 0, 1, 1], [], []>} : vector<8x512xf32>, vector<512x128xf32>, vector<8x128xf32> -> vector<8x128xf32>
    %c0_46 = arith.constant 0 : index
    %c0_47 = arith.constant 0 : index
    %85 = vector.load %arg3[%c0_46, %c0_47] : memref<8x1xf32, #tpu.memory_space<vmem>>, vector<8x1xf32>
    %86 = vector.broadcast %85 : vector<8x1xf32> to vector<8x128xf32>
    %87 = arith.addf %84, %86 : vector<8x128xf32>
    %cst_48 = arith.constant 0.000000e+00 : f32
    %88 = vector.broadcast %cst_48 : f32 to vector<8x128xf32>
    %89 = arith.maximumf %87, %88 : vector<8x128xf32>
    %c0_49 = arith.constant 0 : index
    %c0_50 = arith.constant 0 : index
    %90 = vector.load %arg11[%c0_49, %c0_50] : memref<128x128xf32, #tpu.memory_space<vmem>>, vector<128x128xf32>
    %91 = tpu.iota {dimensions = array<i32: 1>} : vector<8x128xi32>
    %c7_i32 = arith.constant 7 : i32
    %92 = vector.broadcast %c7_i32 : i32 to vector<8x128xi32>
    %93 = arith.andi %91, %92 : vector<8x128xi32>
    %c3_i32 = arith.constant 3 : i32
    %94 = vector.broadcast %c3_i32 : i32 to vector<8x128xi32>
    %95 = arith.shrsi %91, %94 : vector<8x128xi32>
    %c7_i32_51 = arith.constant 7 : i32
    %96 = vector.broadcast %c7_i32_51 : i32 to vector<8x128xi32>
    %97 = arith.andi %95, %96 : vector<8x128xi32>
    %c1_i32_52 = arith.constant 1 : i32
    %98 = vector.broadcast %c1_i32_52 : i32 to vector<8x128xi32>
    %99 = arith.cmpi sge, %93, %98 : vector<8x128xi32>
    %c6_i32 = arith.constant 6 : i32
    %100 = vector.broadcast %c6_i32 : i32 to vector<8x128xi32>
    %101 = arith.cmpi sle, %93, %100 : vector<8x128xi32>
    %c1_i32_53 = arith.constant 1 : i32
    %102 = vector.broadcast %c1_i32_53 : i32 to vector<8x128xi32>
    %103 = arith.cmpi sge, %97, %102 : vector<8x128xi32>
    %c6_i32_54 = arith.constant 6 : i32
    %104 = vector.broadcast %c6_i32_54 : i32 to vector<8x128xi32>
    %105 = arith.cmpi sle, %97, %104 : vector<8x128xi32>
    %c9_i32 = arith.constant 9 : i32
    %106 = tpu.dynamic_rotate %89 by %c9_i32 dim 1 : vector<8x128xf32>, i32 -> vector<8x128xf32>
    %107 = arith.andi %99, %103 : vector<8x128xi1>
    %cst_55 = arith.constant 0.000000e+00 : f32
    %108 = vector.broadcast %cst_55 : f32 to vector<8x128xf32>
    %109 = arith.select %107, %106, %108 : vector<8x128xi1>, vector<8x128xf32>
    %c0_56 = arith.constant 0 : index
    %c0_57 = arith.constant 0 : index
    %c0_58 = arith.constant 0 : index
    %110 = vector.load %arg4[%c0_56, %c0_57, %c0_58] : memref<9x16x8xf32, #tpu.memory_space<vmem>>, vector<1x16x8xf32>
    %111 = vector.shape_cast %110 : vector<1x16x8xf32> to vector<16x8xf32>
    %cst_59 = arith.constant dense<0.000000e+00> : vector<16x128xf32>
    %112 = tpu.matmul %111, %109, %cst_59 {dimension_numbers = #tpu.dot_dimension_numbers<[1], [0], [0], [1], [0, 0, 1, 1], [], []>} : vector<16x8xf32>, vector<8x128xf32>, vector<16x128xf32> -> vector<16x128xf32>
    %c8_i32 = arith.constant 8 : i32
    %113 = tpu.dynamic_rotate %89 by %c8_i32 dim 1 : vector<8x128xf32>, i32 -> vector<8x128xf32>
    %cst_60 = arith.constant 0.000000e+00 : f32
    %114 = vector.broadcast %cst_60 : f32 to vector<8x128xf32>
    %115 = arith.select %103, %113, %114 : vector<8x128xi1>, vector<8x128xf32>
    %c1_61 = arith.constant 1 : index
    %c0_62 = arith.constant 0 : index
    %c0_63 = arith.constant 0 : index
    %116 = vector.load %arg4[%c1_61, %c0_62, %c0_63] : memref<9x16x8xf32, #tpu.memory_space<vmem>>, vector<1x16x8xf32>
    %117 = vector.shape_cast %116 : vector<1x16x8xf32> to vector<16x8xf32>
    %cst_64 = arith.constant dense<0.000000e+00> : vector<16x128xf32>
    %118 = tpu.matmul %117, %115, %cst_64 {dimension_numbers = #tpu.dot_dimension_numbers<[1], [0], [0], [1], [0, 0, 1, 1], [], []>} : vector<16x8xf32>, vector<8x128xf32>, vector<16x128xf32> -> vector<16x128xf32>
    %119 = arith.addf %112, %118 : vector<16x128xf32>
    %c7_i32_65 = arith.constant 7 : i32
    %120 = tpu.dynamic_rotate %89 by %c7_i32_65 dim 1 : vector<8x128xf32>, i32 -> vector<8x128xf32>
    %121 = arith.andi %101, %103 : vector<8x128xi1>
    %cst_66 = arith.constant 0.000000e+00 : f32
    %122 = vector.broadcast %cst_66 : f32 to vector<8x128xf32>
    %123 = arith.select %121, %120, %122 : vector<8x128xi1>, vector<8x128xf32>
    %c2_67 = arith.constant 2 : index
    %c0_68 = arith.constant 0 : index
    %c0_69 = arith.constant 0 : index
    %124 = vector.load %arg4[%c2_67, %c0_68, %c0_69] : memref<9x16x8xf32, #tpu.memory_space<vmem>>, vector<1x16x8xf32>
    %125 = vector.shape_cast %124 : vector<1x16x8xf32> to vector<16x8xf32>
    %cst_70 = arith.constant dense<0.000000e+00> : vector<16x128xf32>
    %126 = tpu.matmul %125, %123, %cst_70 {dimension_numbers = #tpu.dot_dimension_numbers<[1], [0], [0], [1], [0, 0, 1, 1], [], []>} : vector<16x8xf32>, vector<8x128xf32>, vector<16x128xf32> -> vector<16x128xf32>
    %127 = arith.addf %119, %126 : vector<16x128xf32>
    %c1_i32_71 = arith.constant 1 : i32
    %128 = tpu.dynamic_rotate %89 by %c1_i32_71 dim 1 : vector<8x128xf32>, i32 -> vector<8x128xf32>
    %cst_72 = arith.constant 0.000000e+00 : f32
    %129 = vector.broadcast %cst_72 : f32 to vector<8x128xf32>
    %130 = arith.select %99, %128, %129 : vector<8x128xi1>, vector<8x128xf32>
    %c3_73 = arith.constant 3 : index
    %c0_74 = arith.constant 0 : index
    %c0_75 = arith.constant 0 : index
    %131 = vector.load %arg4[%c3_73, %c0_74, %c0_75] : memref<9x16x8xf32, #tpu.memory_space<vmem>>, vector<1x16x8xf32>
    %132 = vector.shape_cast %131 : vector<1x16x8xf32> to vector<16x8xf32>
    %cst_76 = arith.constant dense<0.000000e+00> : vector<16x128xf32>
    %133 = tpu.matmul %132, %130, %cst_76 {dimension_numbers = #tpu.dot_dimension_numbers<[1], [0], [0], [1], [0, 0, 1, 1], [], []>} : vector<16x8xf32>, vector<8x128xf32>, vector<16x128xf32> -> vector<16x128xf32>
    %134 = arith.addf %127, %133 : vector<16x128xf32>
    %c4_77 = arith.constant 4 : index
    %c0_78 = arith.constant 0 : index
    %c0_79 = arith.constant 0 : index
    %135 = vector.load %arg4[%c4_77, %c0_78, %c0_79] : memref<9x16x8xf32, #tpu.memory_space<vmem>>, vector<1x16x8xf32>
    %136 = vector.shape_cast %135 : vector<1x16x8xf32> to vector<16x8xf32>
    %cst_80 = arith.constant dense<0.000000e+00> : vector<16x128xf32>
    %137 = tpu.matmul %136, %89, %cst_80 {dimension_numbers = #tpu.dot_dimension_numbers<[1], [0], [0], [1], [0, 0, 1, 1], [], []>} : vector<16x8xf32>, vector<8x128xf32>, vector<16x128xf32> -> vector<16x128xf32>
    %138 = arith.addf %134, %137 : vector<16x128xf32>
    %c127_i32 = arith.constant 127 : i32
    %139 = tpu.dynamic_rotate %89 by %c127_i32 dim 1 : vector<8x128xf32>, i32 -> vector<8x128xf32>
    %cst_81 = arith.constant 0.000000e+00 : f32
    %140 = vector.broadcast %cst_81 : f32 to vector<8x128xf32>
    %141 = arith.select %101, %139, %140 : vector<8x128xi1>, vector<8x128xf32>
    %c5_82 = arith.constant 5 : index
    %c0_83 = arith.constant 0 : index
    %c0_84 = arith.constant 0 : index
    %142 = vector.load %arg4[%c5_82, %c0_83, %c0_84] : memref<9x16x8xf32, #tpu.memory_space<vmem>>, vector<1x16x8xf32>
    %143 = vector.shape_cast %142 : vector<1x16x8xf32> to vector<16x8xf32>
    %cst_85 = arith.constant dense<0.000000e+00> : vector<16x128xf32>
    %144 = tpu.matmul %143, %141, %cst_85 {dimension_numbers = #tpu.dot_dimension_numbers<[1], [0], [0], [1], [0, 0, 1, 1], [], []>} : vector<16x8xf32>, vector<8x128xf32>, vector<16x128xf32> -> vector<16x128xf32>
    %145 = arith.addf %138, %144 : vector<16x128xf32>
    %c121_i32 = arith.constant 121 : i32
    %146 = tpu.dynamic_rotate %89 by %c121_i32 dim 1 : vector<8x128xf32>, i32 -> vector<8x128xf32>
    %147 = arith.andi %99, %105 : vector<8x128xi1>
    %cst_86 = arith.constant 0.000000e+00 : f32
    %148 = vector.broadcast %cst_86 : f32 to vector<8x128xf32>
    %149 = arith.select %147, %146, %148 : vector<8x128xi1>, vector<8x128xf32>
    %c6_87 = arith.constant 6 : index
    %c0_88 = arith.constant 0 : index
    %c0_89 = arith.constant 0 : index
    %150 = vector.load %arg4[%c6_87, %c0_88, %c0_89] : memref<9x16x8xf32, #tpu.memory_space<vmem>>, vector<1x16x8xf32>
    %151 = vector.shape_cast %150 : vector<1x16x8xf32> to vector<16x8xf32>
    %cst_90 = arith.constant dense<0.000000e+00> : vector<16x128xf32>
    %152 = tpu.matmul %151, %149, %cst_90 {dimension_numbers = #tpu.dot_dimension_numbers<[1], [0], [0], [1], [0, 0, 1, 1], [], []>} : vector<16x8xf32>, vector<8x128xf32>, vector<16x128xf32> -> vector<16x128xf32>
    %153 = arith.addf %145, %152 : vector<16x128xf32>
    %c120_i32 = arith.constant 120 : i32
    %154 = tpu.dynamic_rotate %89 by %c120_i32 dim 1 : vector<8x128xf32>, i32 -> vector<8x128xf32>
    %cst_91 = arith.constant 0.000000e+00 : f32
    %155 = vector.broadcast %cst_91 : f32 to vector<8x128xf32>
    %156 = arith.select %105, %154, %155 : vector<8x128xi1>, vector<8x128xf32>
    %c7_92 = arith.constant 7 : index
    %c0_93 = arith.constant 0 : index
    %c0_94 = arith.constant 0 : index
    %157 = vector.load %arg4[%c7_92, %c0_93, %c0_94] : memref<9x16x8xf32, #tpu.memory_space<vmem>>, vector<1x16x8xf32>
    %158 = vector.shape_cast %157 : vector<1x16x8xf32> to vector<16x8xf32>
    %cst_95 = arith.constant dense<0.000000e+00> : vector<16x128xf32>
    %159 = tpu.matmul %158, %156, %cst_95 {dimension_numbers = #tpu.dot_dimension_numbers<[1], [0], [0], [1], [0, 0, 1, 1], [], []>} : vector<16x8xf32>, vector<8x128xf32>, vector<16x128xf32> -> vector<16x128xf32>
    %160 = arith.addf %153, %159 : vector<16x128xf32>
    %c119_i32 = arith.constant 119 : i32
    %161 = tpu.dynamic_rotate %89 by %c119_i32 dim 1 : vector<8x128xf32>, i32 -> vector<8x128xf32>
    %162 = arith.andi %101, %105 : vector<8x128xi1>
    %cst_96 = arith.constant 0.000000e+00 : f32
    %163 = vector.broadcast %cst_96 : f32 to vector<8x128xf32>
    %164 = arith.select %162, %161, %163 : vector<8x128xi1>, vector<8x128xf32>
    %c8_97 = arith.constant 8 : index
    %c0_98 = arith.constant 0 : index
    %c0_99 = arith.constant 0 : index
    %165 = vector.load %arg4[%c8_97, %c0_98, %c0_99] : memref<9x16x8xf32, #tpu.memory_space<vmem>>, vector<1x16x8xf32>
    %166 = vector.shape_cast %165 : vector<1x16x8xf32> to vector<16x8xf32>
    %cst_100 = arith.constant dense<0.000000e+00> : vector<16x128xf32>
    %167 = tpu.matmul %166, %164, %cst_100 {dimension_numbers = #tpu.dot_dimension_numbers<[1], [0], [0], [1], [0, 0, 1, 1], [], []>} : vector<16x8xf32>, vector<8x128xf32>, vector<16x128xf32> -> vector<16x128xf32>
    %168 = arith.addf %160, %167 : vector<16x128xf32>
    %c127_i32_101 = arith.constant 127 : i32
    %169 = tpu.dynamic_rotate %168 by %c127_i32_101 dim 1 : vector<16x128xf32>, i32 -> vector<16x128xf32>
    %170 = arith.maximumf %168, %169 : vector<16x128xf32>
    %c120_i32_102 = arith.constant 120 : i32
    %171 = tpu.dynamic_rotate %170 by %c120_i32_102 dim 1 : vector<16x128xf32>, i32 -> vector<16x128xf32>
    %172 = arith.maximumf %170, %171 : vector<16x128xf32>
    %cst_103 = arith.constant dense<0.000000e+00> : vector<16x128xf32>
    %173 = tpu.matmul %172, %90, %cst_103 {dimension_numbers = #tpu.dot_dimension_numbers<[1], [0], [0], [1], [0, 0, 1, 1], [], []>} : vector<16x128xf32>, vector<128x128xf32>, vector<16x128xf32> -> vector<16x128xf32>
    %c0_104 = arith.constant 0 : index
    %c0_105 = arith.constant 0 : index
    %174 = vector.load %arg5[%c0_104, %c0_105] : memref<16x1xf32, #tpu.memory_space<vmem>>, vector<16x1xf32>
    %175 = vector.broadcast %174 : vector<16x1xf32> to vector<16x128xf32>
    %176 = arith.addf %173, %175 : vector<16x128xf32>
    %cst_106 = arith.constant 0.000000e+00 : f32
    %177 = vector.broadcast %cst_106 : f32 to vector<16x128xf32>
    %178 = arith.maximumf %176, %177 : vector<16x128xf32>
    %179 = tpu.iota {dimensions = array<i32: 1>} : vector<16x128xi32>
    %c3_i32_107 = arith.constant 3 : i32
    %180 = vector.broadcast %c3_i32_107 : i32 to vector<16x128xi32>
    %181 = arith.andi %179, %180 : vector<16x128xi32>
    %c2_i32 = arith.constant 2 : i32
    %182 = vector.broadcast %c2_i32 : i32 to vector<16x128xi32>
    %183 = arith.shrsi %179, %182 : vector<16x128xi32>
    %c3_i32_108 = arith.constant 3 : i32
    %184 = vector.broadcast %c3_i32_108 : i32 to vector<16x128xi32>
    %185 = arith.andi %183, %184 : vector<16x128xi32>
    %c1_i32_109 = arith.constant 1 : i32
    %186 = vector.broadcast %c1_i32_109 : i32 to vector<16x128xi32>
    %187 = arith.cmpi sge, %181, %186 : vector<16x128xi32>
    %c2_i32_110 = arith.constant 2 : i32
    %188 = vector.broadcast %c2_i32_110 : i32 to vector<16x128xi32>
    %189 = arith.cmpi sle, %181, %188 : vector<16x128xi32>
    %c1_i32_111 = arith.constant 1 : i32
    %190 = vector.broadcast %c1_i32_111 : i32 to vector<16x128xi32>
    %191 = arith.cmpi sge, %185, %190 : vector<16x128xi32>
    %c2_i32_112 = arith.constant 2 : i32
    %192 = vector.broadcast %c2_i32_112 : i32 to vector<16x128xi32>
    %193 = arith.cmpi sle, %185, %192 : vector<16x128xi32>
    %c5_i32 = arith.constant 5 : i32
    %194 = tpu.dynamic_rotate %178 by %c5_i32 dim 1 : vector<16x128xf32>, i32 -> vector<16x128xf32>
    %195 = arith.andi %187, %191 : vector<16x128xi1>
    %cst_113 = arith.constant 0.000000e+00 : f32
    %196 = vector.broadcast %cst_113 : f32 to vector<16x128xf32>
    %197 = arith.select %195, %194, %196 : vector<16x128xi1>, vector<16x128xf32>
    %c0_114 = arith.constant 0 : index
    %c0_115 = arith.constant 0 : index
    %c0_116 = arith.constant 0 : index
    %198 = vector.load %arg6[%c0_114, %c0_115, %c0_116] : memref<9x32x16xf32, #tpu.memory_space<vmem>>, vector<1x32x16xf32>
    %199 = vector.shape_cast %198 : vector<1x32x16xf32> to vector<32x16xf32>
    %cst_117 = arith.constant dense<0.000000e+00> : vector<32x128xf32>
    %200 = tpu.matmul %199, %197, %cst_117 {dimension_numbers = #tpu.dot_dimension_numbers<[1], [0], [0], [1], [0, 0, 1, 1], [], []>} : vector<32x16xf32>, vector<16x128xf32>, vector<32x128xf32> -> vector<32x128xf32>
    %c4_i32_118 = arith.constant 4 : i32
    %201 = tpu.dynamic_rotate %178 by %c4_i32_118 dim 1 : vector<16x128xf32>, i32 -> vector<16x128xf32>
    %cst_119 = arith.constant 0.000000e+00 : f32
    %202 = vector.broadcast %cst_119 : f32 to vector<16x128xf32>
    %203 = arith.select %191, %201, %202 : vector<16x128xi1>, vector<16x128xf32>
    %c1_120 = arith.constant 1 : index
    %c0_121 = arith.constant 0 : index
    %c0_122 = arith.constant 0 : index
    %204 = vector.load %arg6[%c1_120, %c0_121, %c0_122] : memref<9x32x16xf32, #tpu.memory_space<vmem>>, vector<1x32x16xf32>
    %205 = vector.shape_cast %204 : vector<1x32x16xf32> to vector<32x16xf32>
    %cst_123 = arith.constant dense<0.000000e+00> : vector<32x128xf32>
    %206 = tpu.matmul %205, %203, %cst_123 {dimension_numbers = #tpu.dot_dimension_numbers<[1], [0], [0], [1], [0, 0, 1, 1], [], []>} : vector<32x16xf32>, vector<16x128xf32>, vector<32x128xf32> -> vector<32x128xf32>
    %207 = arith.addf %200, %206 : vector<32x128xf32>
    %c3_i32_124 = arith.constant 3 : i32
    %208 = tpu.dynamic_rotate %178 by %c3_i32_124 dim 1 : vector<16x128xf32>, i32 -> vector<16x128xf32>
    %209 = arith.andi %189, %191 : vector<16x128xi1>
    %cst_125 = arith.constant 0.000000e+00 : f32
    %210 = vector.broadcast %cst_125 : f32 to vector<16x128xf32>
    %211 = arith.select %209, %208, %210 : vector<16x128xi1>, vector<16x128xf32>
    %c2_126 = arith.constant 2 : index
    %c0_127 = arith.constant 0 : index
    %c0_128 = arith.constant 0 : index
    %212 = vector.load %arg6[%c2_126, %c0_127, %c0_128] : memref<9x32x16xf32, #tpu.memory_space<vmem>>, vector<1x32x16xf32>
    %213 = vector.shape_cast %212 : vector<1x32x16xf32> to vector<32x16xf32>
    %cst_129 = arith.constant dense<0.000000e+00> : vector<32x128xf32>
    %214 = tpu.matmul %213, %211, %cst_129 {dimension_numbers = #tpu.dot_dimension_numbers<[1], [0], [0], [1], [0, 0, 1, 1], [], []>} : vector<32x16xf32>, vector<16x128xf32>, vector<32x128xf32> -> vector<32x128xf32>
    %215 = arith.addf %207, %214 : vector<32x128xf32>
    %c1_i32_130 = arith.constant 1 : i32
    %216 = tpu.dynamic_rotate %178 by %c1_i32_130 dim 1 : vector<16x128xf32>, i32 -> vector<16x128xf32>
    %cst_131 = arith.constant 0.000000e+00 : f32
    %217 = vector.broadcast %cst_131 : f32 to vector<16x128xf32>
    %218 = arith.select %187, %216, %217 : vector<16x128xi1>, vector<16x128xf32>
    %c3_132 = arith.constant 3 : index
    %c0_133 = arith.constant 0 : index
    %c0_134 = arith.constant 0 : index
    %219 = vector.load %arg6[%c3_132, %c0_133, %c0_134] : memref<9x32x16xf32, #tpu.memory_space<vmem>>, vector<1x32x16xf32>
    %220 = vector.shape_cast %219 : vector<1x32x16xf32> to vector<32x16xf32>
    %cst_135 = arith.constant dense<0.000000e+00> : vector<32x128xf32>
    %221 = tpu.matmul %220, %218, %cst_135 {dimension_numbers = #tpu.dot_dimension_numbers<[1], [0], [0], [1], [0, 0, 1, 1], [], []>} : vector<32x16xf32>, vector<16x128xf32>, vector<32x128xf32> -> vector<32x128xf32>
    %222 = arith.addf %215, %221 : vector<32x128xf32>
    %c4_136 = arith.constant 4 : index
    %c0_137 = arith.constant 0 : index
    %c0_138 = arith.constant 0 : index
    %223 = vector.load %arg6[%c4_136, %c0_137, %c0_138] : memref<9x32x16xf32, #tpu.memory_space<vmem>>, vector<1x32x16xf32>
    %224 = vector.shape_cast %223 : vector<1x32x16xf32> to vector<32x16xf32>
    %cst_139 = arith.constant dense<0.000000e+00> : vector<32x128xf32>
    %225 = tpu.matmul %224, %178, %cst_139 {dimension_numbers = #tpu.dot_dimension_numbers<[1], [0], [0], [1], [0, 0, 1, 1], [], []>} : vector<32x16xf32>, vector<16x128xf32>, vector<32x128xf32> -> vector<32x128xf32>
    %226 = arith.addf %222, %225 : vector<32x128xf32>
    %c127_i32_140 = arith.constant 127 : i32
    %227 = tpu.dynamic_rotate %178 by %c127_i32_140 dim 1 : vector<16x128xf32>, i32 -> vector<16x128xf32>
    %cst_141 = arith.constant 0.000000e+00 : f32
    %228 = vector.broadcast %cst_141 : f32 to vector<16x128xf32>
    %229 = arith.select %189, %227, %228 : vector<16x128xi1>, vector<16x128xf32>
    %c5_142 = arith.constant 5 : index
    %c0_143 = arith.constant 0 : index
    %c0_144 = arith.constant 0 : index
    %230 = vector.load %arg6[%c5_142, %c0_143, %c0_144] : memref<9x32x16xf32, #tpu.memory_space<vmem>>, vector<1x32x16xf32>
    %231 = vector.shape_cast %230 : vector<1x32x16xf32> to vector<32x16xf32>
    %cst_145 = arith.constant dense<0.000000e+00> : vector<32x128xf32>
    %232 = tpu.matmul %231, %229, %cst_145 {dimension_numbers = #tpu.dot_dimension_numbers<[1], [0], [0], [1], [0, 0, 1, 1], [], []>} : vector<32x16xf32>, vector<16x128xf32>, vector<32x128xf32> -> vector<32x128xf32>
    %233 = arith.addf %226, %232 : vector<32x128xf32>
    %c125_i32 = arith.constant 125 : i32
    %234 = tpu.dynamic_rotate %178 by %c125_i32 dim 1 : vector<16x128xf32>, i32 -> vector<16x128xf32>
    %235 = arith.andi %187, %193 : vector<16x128xi1>
    %cst_146 = arith.constant 0.000000e+00 : f32
    %236 = vector.broadcast %cst_146 : f32 to vector<16x128xf32>
    %237 = arith.select %235, %234, %236 : vector<16x128xi1>, vector<16x128xf32>
    %c6_147 = arith.constant 6 : index
    %c0_148 = arith.constant 0 : index
    %c0_149 = arith.constant 0 : index
    %238 = vector.load %arg6[%c6_147, %c0_148, %c0_149] : memref<9x32x16xf32, #tpu.memory_space<vmem>>, vector<1x32x16xf32>
    %239 = vector.shape_cast %238 : vector<1x32x16xf32> to vector<32x16xf32>
    %cst_150 = arith.constant dense<0.000000e+00> : vector<32x128xf32>
    %240 = tpu.matmul %239, %237, %cst_150 {dimension_numbers = #tpu.dot_dimension_numbers<[1], [0], [0], [1], [0, 0, 1, 1], [], []>} : vector<32x16xf32>, vector<16x128xf32>, vector<32x128xf32> -> vector<32x128xf32>
    %241 = arith.addf %233, %240 : vector<32x128xf32>
    %c124_i32 = arith.constant 124 : i32
    %242 = tpu.dynamic_rotate %178 by %c124_i32 dim 1 : vector<16x128xf32>, i32 -> vector<16x128xf32>
    %cst_151 = arith.constant 0.000000e+00 : f32
    %243 = vector.broadcast %cst_151 : f32 to vector<16x128xf32>
    %244 = arith.select %193, %242, %243 : vector<16x128xi1>, vector<16x128xf32>
    %c7_152 = arith.constant 7 : index
    %c0_153 = arith.constant 0 : index
    %c0_154 = arith.constant 0 : index
    %245 = vector.load %arg6[%c7_152, %c0_153, %c0_154] : memref<9x32x16xf32, #tpu.memory_space<vmem>>, vector<1x32x16xf32>
    %246 = vector.shape_cast %245 : vector<1x32x16xf32> to vector<32x16xf32>
    %cst_155 = arith.constant dense<0.000000e+00> : vector<32x128xf32>
    %247 = tpu.matmul %246, %244, %cst_155 {dimension_numbers = #tpu.dot_dimension_numbers<[1], [0], [0], [1], [0, 0, 1, 1], [], []>} : vector<32x16xf32>, vector<16x128xf32>, vector<32x128xf32> -> vector<32x128xf32>
    %248 = arith.addf %241, %247 : vector<32x128xf32>
    %c123_i32 = arith.constant 123 : i32
    %249 = tpu.dynamic_rotate %178 by %c123_i32 dim 1 : vector<16x128xf32>, i32 -> vector<16x128xf32>
    %250 = arith.andi %189, %193 : vector<16x128xi1>
    %cst_156 = arith.constant 0.000000e+00 : f32
    %251 = vector.broadcast %cst_156 : f32 to vector<16x128xf32>
    %252 = arith.select %250, %249, %251 : vector<16x128xi1>, vector<16x128xf32>
    %c8_157 = arith.constant 8 : index
    %c0_158 = arith.constant 0 : index
    %c0_159 = arith.constant 0 : index
    %253 = vector.load %arg6[%c8_157, %c0_158, %c0_159] : memref<9x32x16xf32, #tpu.memory_space<vmem>>, vector<1x32x16xf32>
    %254 = vector.shape_cast %253 : vector<1x32x16xf32> to vector<32x16xf32>
    %cst_160 = arith.constant dense<0.000000e+00> : vector<32x128xf32>
    %255 = tpu.matmul %254, %252, %cst_160 {dimension_numbers = #tpu.dot_dimension_numbers<[1], [0], [0], [1], [0, 0, 1, 1], [], []>} : vector<32x16xf32>, vector<16x128xf32>, vector<32x128xf32> -> vector<32x128xf32>
    %256 = arith.addf %248, %255 : vector<32x128xf32>
    %c127_i32_161 = arith.constant 127 : i32
    %257 = tpu.dynamic_rotate %256 by %c127_i32_161 dim 1 : vector<32x128xf32>, i32 -> vector<32x128xf32>
    %258 = arith.maximumf %256, %257 : vector<32x128xf32>
    %c124_i32_162 = arith.constant 124 : i32
    %259 = tpu.dynamic_rotate %258 by %c124_i32_162 dim 1 : vector<32x128xf32>, i32 -> vector<32x128xf32>
    %260 = arith.maximumf %258, %259 : vector<32x128xf32>
    %c0_163 = arith.constant 0 : index
    %c0_164 = arith.constant 0 : index
    %261 = vector.load %arg7[%c0_163, %c0_164] : memref<32x1xf32, #tpu.memory_space<vmem>>, vector<32x1xf32>
    %262 = vector.broadcast %261 : vector<32x1xf32> to vector<32x128xf32>
    %263 = arith.addf %260, %262 : vector<32x128xf32>
    %cst_165 = arith.constant 0.000000e+00 : f32
    %264 = vector.broadcast %cst_165 : f32 to vector<32x128xf32>
    %265 = arith.maximumf %263, %264 : vector<32x128xf32>
    %266 = tpu.iota {dimensions = array<i32: 0>} : vector<128x2xi32>
    %267 = tpu.iota {dimensions = array<i32: 1>} : vector<128x2xi32>
    %c16_i32_166 = arith.constant 16 : i32
    %268 = vector.broadcast %c16_i32_166 : i32 to vector<128x2xi32>
    %269 = arith.muli %267, %268 : vector<128x2xi32>
    %c0_i32 = arith.constant 0 : i32
    %270 = vector.broadcast %c0_i32 : i32 to vector<128x2xi32>
    %271 = arith.addi %269, %270 : vector<128x2xi32>
    %272 = arith.cmpi eq, %266, %271 : vector<128x2xi32>
    %cst_167 = arith.constant 1.000000e+00 : f32
    %cst_168 = arith.constant 0.000000e+00 : f32
    %273 = vector.broadcast %cst_167 : f32 to vector<128x2xf32>
    %274 = vector.broadcast %cst_168 : f32 to vector<128x2xf32>
    %275 = arith.select %272, %273, %274 : vector<128x2xi1>, vector<128x2xf32>
    %cst_169 = arith.constant dense<0.000000e+00> : vector<32x2xf32>
    %276 = tpu.matmul %265, %275, %cst_169 {dimension_numbers = #tpu.dot_dimension_numbers<[1], [0], [0], [1], [0, 0, 1, 1], [], []>} : vector<32x128xf32>, vector<128x2xf32>, vector<32x2xf32> -> vector<32x2xf32>
    %c0_170 = arith.constant 0 : index
    %c0_171 = arith.constant 0 : index
    %c0_172 = arith.constant 0 : index
    %277 = vector.load %arg8[%c0_170, %c0_171, %c0_172] : memref<4x10x32xf32, #tpu.memory_space<vmem>>, vector<1x10x32xf32>
    %278 = vector.shape_cast %277 : vector<1x10x32xf32> to vector<10x32xf32>
    %cst_173 = arith.constant dense<0.000000e+00> : vector<10x2xf32>
    %279 = tpu.matmul %278, %276, %cst_173 {dimension_numbers = #tpu.dot_dimension_numbers<[1], [0], [0], [1], [0, 0, 1, 1], [], []>} : vector<10x32xf32>, vector<32x2xf32>, vector<10x2xf32> -> vector<10x2xf32>
    %c16_i32_174 = arith.constant 16 : i32
    %280 = vector.broadcast %c16_i32_174 : i32 to vector<128x2xi32>
    %281 = arith.muli %267, %280 : vector<128x2xi32>
    %c2_i32_175 = arith.constant 2 : i32
    %282 = vector.broadcast %c2_i32_175 : i32 to vector<128x2xi32>
    %283 = arith.addi %281, %282 : vector<128x2xi32>
    %284 = arith.cmpi eq, %266, %283 : vector<128x2xi32>
    %cst_176 = arith.constant 1.000000e+00 : f32
    %cst_177 = arith.constant 0.000000e+00 : f32
    %285 = vector.broadcast %cst_176 : f32 to vector<128x2xf32>
    %286 = vector.broadcast %cst_177 : f32 to vector<128x2xf32>
    %287 = arith.select %284, %285, %286 : vector<128x2xi1>, vector<128x2xf32>
    %cst_178 = arith.constant dense<0.000000e+00> : vector<32x2xf32>
    %288 = tpu.matmul %265, %287, %cst_178 {dimension_numbers = #tpu.dot_dimension_numbers<[1], [0], [0], [1], [0, 0, 1, 1], [], []>} : vector<32x128xf32>, vector<128x2xf32>, vector<32x2xf32> -> vector<32x2xf32>
    %c1_179 = arith.constant 1 : index
    %c0_180 = arith.constant 0 : index
    %c0_181 = arith.constant 0 : index
    %289 = vector.load %arg8[%c1_179, %c0_180, %c0_181] : memref<4x10x32xf32, #tpu.memory_space<vmem>>, vector<1x10x32xf32>
    %290 = vector.shape_cast %289 : vector<1x10x32xf32> to vector<10x32xf32>
    %cst_182 = arith.constant dense<0.000000e+00> : vector<10x2xf32>
    %291 = tpu.matmul %290, %288, %cst_182 {dimension_numbers = #tpu.dot_dimension_numbers<[1], [0], [0], [1], [0, 0, 1, 1], [], []>} : vector<10x32xf32>, vector<32x2xf32>, vector<10x2xf32> -> vector<10x2xf32>
    %292 = arith.addf %279, %291 : vector<10x2xf32>
    %c16_i32_183 = arith.constant 16 : i32
    %293 = vector.broadcast %c16_i32_183 : i32 to vector<128x2xi32>
    %294 = arith.muli %267, %293 : vector<128x2xi32>
    %c8_i32_184 = arith.constant 8 : i32
    %295 = vector.broadcast %c8_i32_184 : i32 to vector<128x2xi32>
    %296 = arith.addi %294, %295 : vector<128x2xi32>
    %297 = arith.cmpi eq, %266, %296 : vector<128x2xi32>
    %cst_185 = arith.constant 1.000000e+00 : f32
    %cst_186 = arith.constant 0.000000e+00 : f32
    %298 = vector.broadcast %cst_185 : f32 to vector<128x2xf32>
    %299 = vector.broadcast %cst_186 : f32 to vector<128x2xf32>
    %300 = arith.select %297, %298, %299 : vector<128x2xi1>, vector<128x2xf32>
    %cst_187 = arith.constant dense<0.000000e+00> : vector<32x2xf32>
    %301 = tpu.matmul %265, %300, %cst_187 {dimension_numbers = #tpu.dot_dimension_numbers<[1], [0], [0], [1], [0, 0, 1, 1], [], []>} : vector<32x128xf32>, vector<128x2xf32>, vector<32x2xf32> -> vector<32x2xf32>
    %c2_188 = arith.constant 2 : index
    %c0_189 = arith.constant 0 : index
    %c0_190 = arith.constant 0 : index
    %302 = vector.load %arg8[%c2_188, %c0_189, %c0_190] : memref<4x10x32xf32, #tpu.memory_space<vmem>>, vector<1x10x32xf32>
    %303 = vector.shape_cast %302 : vector<1x10x32xf32> to vector<10x32xf32>
    %cst_191 = arith.constant dense<0.000000e+00> : vector<10x2xf32>
    %304 = tpu.matmul %303, %301, %cst_191 {dimension_numbers = #tpu.dot_dimension_numbers<[1], [0], [0], [1], [0, 0, 1, 1], [], []>} : vector<10x32xf32>, vector<32x2xf32>, vector<10x2xf32> -> vector<10x2xf32>
    %305 = arith.addf %292, %304 : vector<10x2xf32>
    %c16_i32_192 = arith.constant 16 : i32
    %306 = vector.broadcast %c16_i32_192 : i32 to vector<128x2xi32>
    %307 = arith.muli %267, %306 : vector<128x2xi32>
    %c10_i32 = arith.constant 10 : i32
    %308 = vector.broadcast %c10_i32 : i32 to vector<128x2xi32>
    %309 = arith.addi %307, %308 : vector<128x2xi32>
    %310 = arith.cmpi eq, %266, %309 : vector<128x2xi32>
    %cst_193 = arith.constant 1.000000e+00 : f32
    %cst_194 = arith.constant 0.000000e+00 : f32
    %311 = vector.broadcast %cst_193 : f32 to vector<128x2xf32>
    %312 = vector.broadcast %cst_194 : f32 to vector<128x2xf32>
    %313 = arith.select %310, %311, %312 : vector<128x2xi1>, vector<128x2xf32>
    %cst_195 = arith.constant dense<0.000000e+00> : vector<32x2xf32>
    %314 = tpu.matmul %265, %313, %cst_195 {dimension_numbers = #tpu.dot_dimension_numbers<[1], [0], [0], [1], [0, 0, 1, 1], [], []>} : vector<32x128xf32>, vector<128x2xf32>, vector<32x2xf32> -> vector<32x2xf32>
    %c3_196 = arith.constant 3 : index
    %c0_197 = arith.constant 0 : index
    %c0_198 = arith.constant 0 : index
    %315 = vector.load %arg8[%c3_196, %c0_197, %c0_198] : memref<4x10x32xf32, #tpu.memory_space<vmem>>, vector<1x10x32xf32>
    %316 = vector.shape_cast %315 : vector<1x10x32xf32> to vector<10x32xf32>
    %cst_199 = arith.constant dense<0.000000e+00> : vector<10x2xf32>
    %317 = tpu.matmul %316, %314, %cst_199 {dimension_numbers = #tpu.dot_dimension_numbers<[1], [0], [0], [1], [0, 0, 1, 1], [], []>} : vector<10x32xf32>, vector<32x2xf32>, vector<10x2xf32> -> vector<10x2xf32>
    %318 = arith.addf %305, %317 : vector<10x2xf32>
    %c0_200 = arith.constant 0 : index
    %c0_201 = arith.constant 0 : index
    %319 = vector.load %arg9[%c0_200, %c0_201] : memref<10x1xf32, #tpu.memory_space<vmem>>, vector<10x1xf32>
    %320 = vector.broadcast %319 : vector<10x1xf32> to vector<10x2xf32>
    %321 = arith.addf %318, %320 : vector<10x2xf32>
    %c0_202 = arith.constant 0 : index
    %c0_203 = arith.constant 0 : index
    %c0_204 = arith.constant 0 : index
    %322 = vector.load %arg12[%c0_202, %c0_203, %c0_204] : memref<1x10x2xf32, #tpu.memory_space<vmem>>, vector<1x10x2xf32>
    %323 = vector.shape_cast %322 : vector<1x10x2xf32> to vector<10x2xf32>
    %324 = vector.shape_cast %321 : vector<10x2xf32> to vector<1x10x2xf32>
    tpu.vector_store %arg12[%c0_202, %c0_203, %c0_204], %324 {strides = array<i32>} : memref<1x10x2xf32, #tpu.memory_space<vmem>>, vector<1x10x2xf32>,
    return
  }
  func.func @transform_0(%arg0: i32) -> (i32, i32) {
    %c0_i32 = arith.constant 0 : i32
    %c0_i32_0 = arith.constant 0 : i32
    return %c0_i32, %arg0 : i32, i32
  }
  func.func @transform_1(%arg0: i32) -> (i32, i32, i32) {
    %c0_i32 = arith.constant 0 : i32
    %c0_i32_0 = arith.constant 0 : i32
    %c0_i32_1 = arith.constant 0 : i32
    %c0_i32_2 = arith.constant 0 : i32
    return %c0_i32, %c0_i32_0, %c0_i32_1 : i32, i32, i32
  }
  func.func @transform_2(%arg0: i32) -> (i32, i32) {
    %c0_i32 = arith.constant 0 : i32
    %c0_i32_0 = arith.constant 0 : i32
    %c0_i32_1 = arith.constant 0 : i32
    return %c0_i32, %c0_i32_0 : i32, i32
  }
  func.func @transform_3(%arg0: i32) -> (i32, i32, i32) {
    %c0_i32 = arith.constant 0 : i32
    %c0_i32_0 = arith.constant 0 : i32
    %c0_i32_1 = arith.constant 0 : i32
    %c0_i32_2 = arith.constant 0 : i32
    return %c0_i32, %c0_i32_0, %c0_i32_1 : i32, i32, i32
  }
  func.func @transform_4(%arg0: i32) -> (i32, i32) {
    %c0_i32 = arith.constant 0 : i32
    %c0_i32_0 = arith.constant 0 : i32
    %c0_i32_1 = arith.constant 0 : i32
    return %c0_i32, %c0_i32_0 : i32, i32
  }
  func.func @transform_5(%arg0: i32) -> (i32, i32, i32) {
    %c0_i32 = arith.constant 0 : i32
    %c0_i32_0 = arith.constant 0 : i32
    %c0_i32_1 = arith.constant 0 : i32
    %c0_i32_2 = arith.constant 0 : i32
    return %c0_i32, %c0_i32_0, %c0_i32_1 : i32, i32, i32
  }
  func.func @transform_6(%arg0: i32) -> (i32, i32) {
    %c0_i32 = arith.constant 0 : i32
    %c0_i32_0 = arith.constant 0 : i32
    %c0_i32_1 = arith.constant 0 : i32
    return %c0_i32, %c0_i32_0 : i32, i32
  }
  func.func @transform_7(%arg0: i32) -> (i32, i32, i32) {
    %c0_i32 = arith.constant 0 : i32
    %c0_i32_0 = arith.constant 0 : i32
    %c0_i32_1 = arith.constant 0 : i32
    %c0_i32_2 = arith.constant 0 : i32
    return %c0_i32, %c0_i32_0, %c0_i32_1 : i32, i32, i32
  }
  func.func @transform_8(%arg0: i32) -> (i32, i32) {
    %c0_i32 = arith.constant 0 : i32
    %c0_i32_0 = arith.constant 0 : i32
    %c0_i32_1 = arith.constant 0 : i32
    return %c0_i32, %c0_i32_0 : i32, i32
  }
  func.func @transform_9(%arg0: i32) -> (i32, i32) {
    %c0_i32 = arith.constant 0 : i32
    %c0_i32_0 = arith.constant 0 : i32
    %c0_i32_1 = arith.constant 0 : i32
    return %c0_i32, %c0_i32_0 : i32, i32
  }
  func.func @transform_10(%arg0: i32) -> (i32, i32) {
    %c0_i32 = arith.constant 0 : i32
    %c0_i32_0 = arith.constant 0 : i32
    %c0_i32_1 = arith.constant 0 : i32
    return %c0_i32, %c0_i32_0 : i32, i32
  }
  func.func @transform_11(%arg0: i32) -> (i32, i32, i32) {
    %c0_i32 = arith.constant 0 : i32
    %c0_i32_0 = arith.constant 0 : i32
    %c0_i32_1 = arith.constant 0 : i32
    return %arg0, %c0_i32, %c0_i32_0 : i32, i32, i32
  }
}

</mosaic_0001>

<bundles_post_ra>
// kernel: target_forward_fn.1
= control target key start
LH: loop header
LB: loop body
LE: loop exit
PB: predicated region body
PF: predicated region fallthrough
CT: control target
= control target key end

     0   :  { %v5610_v2 = vmov 0.0   ;;  %s5611_s21 = smov 16   ;;  %s5612_s26 = smov 17   ;;  %v106_v5 = vlaneseq  ;;  %vm7105_vm5 = vcmask 64512   ;;  %s7092_s0 = inlined_call_operand.vmem [shape: f32[8,512], index: 0, kind: input, shape index: {}]   ;;  %s7093_s1 = inlined_call_operand.vmem [shape: f32[9,8,8], index: 1, kind: input, shape index: {}]   ;;  %s7094_s9 = inlined_call_operand.vmem [shape: f32[512,128], index: 9, kind: input, shape index: {}]   ;;  %s7095_s2 = inlined_call_operand.vmem [shape: f32[8,1], index: 2, kind: input, shape index: {}]   ;;  %s7096_s3 = inlined_call_operand.vmem [shape: f32[9,16,8], index: 3, kind: input, shape index: {}]   ;;  %s7097_s4 = inlined_call_operand.vmem [shape: f32[16,1], index: 4, kind: input, shape index: {}]   ;;  %s7098_s10 = inlined_call_operand.vmem [shape: f32[128,128], index: 10, kind: input, shape index: {}]   ;;  %s7099_s5 = inlined_call_operand.vmem [shape: f32[9,32,16], index: 5, kind: input, shape index: {}]   ;;  %s7100_s6 = inlined_call_operand.vmem [shape: f32[32,1], index: 6, kind: input, shape index: {}]   ;;  %s7101_s8 = inlined_call_operand.vmem [shape: f32[10,1], index: 8, kind: input, shape index: {}]   ;;  %s7102_s7 = inlined_call_operand.vmem [shape: f32[4,10,32], index: 7, kind: input, shape index: {}]   ;;  %s7103_s11 = inlined_call_operand.vmem [shape: f32[1,10,2], index: 11, kind: output, shape index: {}]  }
   0x1   :  { %v5696_v0 = vld [vmem:[%s7092_s0 + $0x18] sm:$0xff]  ;;  %v5701_v1 = vld [vmem:[%s7092_s0] sm:$0xff]  ;;  %248 = vmatprep.mubr.f32.mxu0 %v5610_v2  ;;  %464 = vmatprep.mubr.f32.mxu1 %v5610_v2  ;;  %v5710_v3 = vld [vmem:[%s7092_s0 + $0x10] sm:$0xff]  ;;  %s5613_s27 = smov 15   ;;  %s5615_s28 = smov 127  }
   0x2   :  { %167 = vrot.lane.b32.xlu1 %v5696_v0, %s5611_s21  ;;  %161 = vrot.lane.b32.xlu0 %v5701_v1, %s5611_s21  ;;  %v5715_v4 = vld [vmem:[%s7092_s0 + $0x8] sm:$0xff]  ;;  %s5614_s0 = smov 1   ;;  %s5616_s29 = smov 113   ;;  %v5760_v6 = vand.u32 127, %v106_v5  ;;  %v160_v44 = vld [vmem:[%s7093_s1] sm:$0xff] }
   0x3   :  { %s5617_s30 = smov 112   ;;  %s5618_s12 = smov 111   ;;  %v4654_v27 = vld [vmem:[%s7093_s1 + $0x8] sm:$0xff]  ;;  %v4667_v53 = vld [vmem:[%s7093_s1 + $0x10] sm:$0xff]  ;;  %v4674_v62 = vld [vmem:[%s7093_s1 + $0x18] sm:$0xff] }
   0x4   :  { %v108_v7 = vadd.s32 128, %v5760_v6  ;;  %v5764_v8 = vadd.s32 384, %v5760_v6  ;;  %v5767_v9 = vadd.s32 256, %v5760_v6  ;;  %v115_v11 = vshra.s32 %v5760_v6, 4  ;;  %v4698_v35 = vld [vmem:[%s7093_s1 + $0x38] sm:$0xff]  ;;  %s5620_s18 = smov 7  }
   0x5   :  { %vm169_vm0 = vcmp.lt.s32.totalorder %v5760_v6, 16  ;;  %v111_v21 = vand.u32 15, %v5760_v6  ;;  %vm147_vm6 = vcmp.lt.s32.totalorder %v5760_v6, 17  ;;  %s5621_s19 = smov 8   ;;  %s5622_s20 = smov 9  }
   0x6   :  { %165 = vrot.lane.b32.xlu1 %v5710_v3, %s5611_s21  ;;  %163 = vrot.lane.b32.xlu0 %v5715_v4, %s5611_s21  ;;  %v116_v10 = vshra.s32 %v108_v7, 4  ;;  %v118_v12 = vshra.s32 %v5764_v8, 4  ;;  %v117_v13 = vshra.s32 %v5767_v9, 4  ;;  %v5774_v17 = vand.u32 15, %v115_v11  ;;  %v4681_v11 = vld [vmem:[%s7093_s1 + $0x20] sm:$0xff]  ;;  %s5623_s21 = smov 120  }
   0x7   :  { %v112_v18 = vand.u32 15, %v108_v7  ;;  %v114_v25 = vand.u32 15, %v5764_v8  ;;  %v113_v28 = vand.u32 15, %v5767_v9  ;;  %vm5804_vm8 = vcmp.ge.s32.totalorder %v111_v21, 1  ;;  %s5624_s22 = smov 121   ;;  %s5625_s23 = smov 119  }
   0x8   :  { %v5772_v14 = vand.u32 15, %v116_v10  ;;  %v5776_v19 = vand.u32 15, %v118_v12  ;;  %v5778_v20 = vand.u32 15, %v117_v13  ;;  %vm131_vm2 = vcmp.ge.s32.totalorder %v5774_v17, 1 }
   0x9   :  { %vm5784_vm3 = vcmp.ge.s32.totalorder %v112_v18, 1  ;;  %vm5819_vm10 = vcmp.ge.s32.totalorder %v114_v25, 1  ;;  %vm5828_vm11 = vcmp.ge.s32.totalorder %v113_v28, 1  ;;  %vm152_vm12 = vmand %vm5804_vm8, %vm131_vm2  ;;  %vm5845_vm15 = vcmp.le.s32.totalorder %v112_v18, 14 }
   0xa   :  { %141 = vrot.lane.b32.xlu1 %v5715_v4, %s5612_s26  ;;  %139 = vrot.lane.b32.xlu0 %v5701_v1, %s5612_s26  ;;  %vm132_vm1 = vcmp.ge.s32.totalorder %v5772_v14, 1  ;;  %vm134_vm4 = vcmp.ge.s32.totalorder %v5776_v19, 1  ;;  %vm7104_vm7 = vcmp.ge.s32.totalorder %v5778_v20, 1 }
   0xb   :  { %vm153_vm9 = vmand %vm5784_vm3, %vm132_vm1 }
   0xc   :  { %vm155_vm13 = vmand %vm5819_vm10, %vm134_vm4 }
   0xd   :  { %vm154_vm14 = vmand %vm5828_vm11, %vm7104_vm7 }
   0xe   :  { %145 = vrot.lane.b32.xlu1 %v5696_v0, %s5612_s26  ;;  %143 = vrot.lane.b32.xlu0 %v5710_v3, %s5612_s26 }
  0x12   :  { %473 = vrot.lane.b32.xlu1 %v5715_v4, %s5613_s27  ;;  %471 = vrot.lane.b32.xlu0 %v5701_v1, %s5613_s27 }
  0x16   :  { %477 = vrot.lane.b32.xlu1 %v5696_v0, %s5613_s27  ;;  %475 = vrot.lane.b32.xlu0 %v5710_v3, %s5613_s27 }
  0x1a   :  { %645 = vrot.lane.b32.xlu1 %v5715_v4, %s5614_s0  ;;  %643 = vrot.lane.b32.xlu0 %v5701_v1, %s5614_s0 }
  0x1e   :  { %649 = vrot.lane.b32.xlu1 %v5696_v0, %s5614_s0  ;;  %647 = vrot.lane.b32.xlu0 %v5710_v3, %s5614_s0 }
  0x22   :  { %964 = vrot.lane.b32.xlu1 %v5715_v4, %s5615_s28  ;;  %962 = vrot.lane.b32.xlu0 %v5701_v1, %s5615_s28 }
  0x26   :  { %968 = vrot.lane.b32.xlu1 %v5696_v0, %s5615_s28  ;;  %966 = vrot.lane.b32.xlu0 %v5710_v3, %s5615_s28 }
  0x2a   :  { %1132 = vrot.lane.b32.xlu1 %v5715_v4, %s5616_s29  ;;  %1130 = vrot.lane.b32.xlu0 %v5701_v1, %s5616_s29 }
  0x2e   :  { %1136 = vrot.lane.b32.xlu1 %v5696_v0, %s5616_s29  ;;  %1134 = vrot.lane.b32.xlu0 %v5710_v3, %s5616_s29 }
  0x32   :  { %1304 = vrot.lane.b32.xlu1 %v5715_v4, %s5617_s30  ;;  %1302 = vrot.lane.b32.xlu0 %v5701_v1, %s5617_s30 }
  0x36   :  { %1308 = vrot.lane.b32.xlu1 %v5696_v0, %s5617_s30  ;;  %1306 = vrot.lane.b32.xlu0 %v5710_v3, %s5617_s30 }
  0x3a   :  { %1472 = vrot.lane.b32.xlu1 %v5715_v4, %s5618_s12  ;;  %1470 = vrot.lane.b32.xlu0 %v5701_v1, %s5618_s12 }
  0x3e   :  { %1476 = vrot.lane.b32.xlu1 %v5696_v0, %s5618_s12  ;;  %1474 = vrot.lane.b32.xlu0 %v5710_v3, %s5618_s12 }
  0x74   :  { %v168_v15 = vpop.permute.xlu1 %167  ;;  %v162_v16 = vpop.permute.xlu0 %161 }
  0x75   :  { %v173_v29 = vsel %vm169_vm0, %v168_v15, %v162_v16 }
  0x78   :  { %v166_v22 = vpop.permute.xlu1 %165  ;;  %v164_v23 = vpop.permute.xlu0 %163 }
  0x79   :  { %v172_v26 = vsel %vm169_vm0, %v162_v16, %v164_v23  ;;  %v170_v30 = vsel %vm169_vm0, %v166_v22, %v168_v15  ;;  %v171_v32 = vsel %vm169_vm0, %v164_v23, %v166_v22  ;;  %vm479_vm0 = vcmp.lt.s32.totalorder %v5760_v6, 15 }
  0x7a   :  { %4655 = vmatprep.subr.msk.mxu0 %vm132_vm1, %v172_v26  ;;  %v4691_v26 = vld [vmem:[%s7093_s1 + $0x30] sm:$0xff] }
  0x7b   :  { %4656 = vmatpush1.msk.msra.mxu0 %vm131_vm2, %v173_v29 }
  0x7c   :  { %v142_v33 = vpop.permute.xlu1 %141  ;;  %4658 = vmatprep.subr.msk.mxu0 %vm134_vm4, %v170_v30  ;;  %v140_v34 = vpop.permute.xlu0 %139  ;;  %4657 = vmatmul.mubr.msk.f32.vlgmr.msra.gmra.mxu0 %vm7105_vm5, %v4654_v27 }
  0x7d   :  { %v150_v36 = vsel %vm147_vm6, %v140_v34, %v142_v33  ;;  %4659 = vmatpush1.msk.msra.mxu0 %vm7104_vm7, %v171_v32  ;;  %319 = vmatprep.mubr.f32.mxu0 %v5610_v2  ;;  %vm5869_vm7 = vcmp.le.s32.totalorder %v114_v25, 14 }
  0x7e   :  { %4661 = vmatprep.subr.msk.mxu0 %vm153_vm9, %v150_v36  ;;  %vm5860_vm9 = vcmp.le.s32.totalorder %v111_v21, 14 }
  0x80   :  { %v146_v38 = vpop.permute.xlu1 %145  ;;  %v144_v39 = vpop.permute.xlu0 %143  ;;  %4660 = vmatmul.mubr.msk.f32.vlgmr.msra.gmra.mxu0 %vm7105_vm5, %v4654_v27 }
  0x81   :  { %v151_v41 = vsel %vm147_vm6, %v146_v38, %v140_v34  ;;  %v148_v42 = vsel %vm147_vm6, %v144_v39, %v146_v38  ;;  %v149_v43 = vsel %vm147_vm6, %v142_v33, %v144_v39  ;;  %393 = vmatprep.mubr.f32.mxu0 %v5610_v2  ;;  %vm485_vm6 = vmand %vm5845_vm15, %vm132_vm1 }
  0x82   :  { %4662 = vmatpush1.msk.msra.mxu0 %vm152_vm12, %v151_v41  ;;  %4664 = vmatprep.subr.msk.mxu1 %vm155_vm13, %v148_v42  ;;  %vm5876_vm12 = vcmp.le.s32.totalorder %v113_v28, 14  ;;  %vm484_vm1 = vmand %vm5860_vm9, %vm131_vm2  ;;  %vm651_vm2 = vcmp.lt.s32.totalorder %v5760_v6, 1  ;;  %v4705_v41 = vld [vmem:[%s7093_s1 + $0x40] sm:$0xff] }
  0x83   :  { %4665 = vmatpush1.msk.msra.mxu1 %vm154_vm14, %v149_v43  ;;  %vm487_vm13 = vmand %vm5869_vm7, %vm134_vm4  ;;  %vm7123_vm14 = vcmp.ge.s32.totalorder %v5778_v20, 1  ;;  %vm7124_vm4 = vcmask 64512  }
  0x84   :  { %v474_v46 = vpop.permute.xlu1 %473  ;;  %v472_v47 = vpop.permute.xlu0 %471  ;;  %4663 = vmatmul.mubr.msk.f32.vlgmr.msra.gmra.mxu0 %vm7105_vm5, %v160_v44  ;;  %4666 = vmatmul.mubr.msk.f32.vlgmr.msra.gmra.mxu1 %vm7105_vm5, %v160_v44  ;;  %vm486_vm5 = vmand %vm5876_vm12, %vm7123_vm14 }
  0x85   :  { %v482_v49 = vsel %vm479_vm0, %v472_v47, %v474_v46  ;;  %561 = vmatprep.mubr.f32.mxu0 %v5610_v2  ;;  %632 = vmatprep.mubr.f32.mxu1 %v5610_v2 }
  0x86   :  { %4668 = vmatprep.subr.msk.mxu0 %vm485_vm6, %v482_v49  ;;  %vm7125_vm6 = vmmov %vm7124_vm4 }
  0x88   :  { %v478_v51 = vpop.permute.xlu1 %477  ;;  %v476_v52 = vpop.permute.xlu0 %475 }
  0x89   :  { %v483_v54 = vsel %vm479_vm0, %v478_v51, %v472_v47  ;;  %v480_v55 = vsel %vm479_vm0, %v476_v52, %v478_v51  ;;  %v481_v56 = vsel %vm479_vm0, %v474_v46, %v476_v52  ;;  %vm7127_vm0 = vmmov %vm7124_vm4 }
  0x8a   :  { %4669 = vmatpush1.msk.msra.mxu0 %vm484_vm1, %v483_v54  ;;  %4671 = vmatprep.subr.msk.mxu1 %vm487_vm13, %v480_v55  ;;  %vm7106_vm1 = vcmp.lt.s32.totalorder %v5760_v6, 127  ;;  %vm7128_vm13 = vmmov %vm7127_vm0 }
  0x8b   :  { %4672 = vmatpush1.msk.msra.mxu1 %vm486_vm5, %v481_v56  ;;  %4670 = vmatmul.mubr.msk.f32.vlgmr.msra.gmra.mxu0 %vm7124_vm4, %v4667_v53  ;;  %vm7126_vm5 = vmmov %vm7124_vm4  ;;  %vm138_vm4 = vcmp.le.s32.totalorder %v5776_v19, 14 }
  0x8c   :  { %v646_v57 = vpop.permute.xlu1 %645  ;;  %v644_v58 = vpop.permute.xlu0 %643  ;;  %4673 = vmatmul.mubr.msk.f32.vlgmr.msra.gmra.mxu1 %vm7125_vm6, %v4667_v53  ;;  %729 = vmatprep.mubr.f32.mxu0 %v5610_v2  ;;  %vm7129_vm14 = vmmov %vm7127_vm0  ;;  %vm135_vm6 = vcmp.le.s32.totalorder %v5774_v17, 14 }
  0x8d   :  { %v654_v59 = vsel %vm651_vm2, %v644_v58, %v646_v57  ;;  %800 = vmatprep.mubr.f32.mxu1 %v5610_v2 }
  0x8e   :  { %4675 = vmatprep.subr.msk.mxu0 %vm5784_vm3, %v654_v59 }
  0x90   :  { %v650_v60 = vpop.permute.xlu1 %649  ;;  %v648_v61 = vpop.permute.xlu0 %647 }
  0x91   :  { %v655_v63 = vsel %vm651_vm2, %v650_v60, %v644_v58  ;;  %v652_v7 = vsel %vm651_vm2, %v648_v61, %v650_v60  ;;  %v653_v8 = vsel %vm651_vm2, %v646_v57, %v648_v61  ;;  %vm136_vm2 = vcmp.le.s32.totalorder %v5772_v14, 14 }
  0x92   :  { %4676 = vmatpush1.msk.msra.mxu0 %vm5804_vm8, %v655_v63  ;;  %4678 = vmatprep.subr.msk.mxu1 %vm5819_vm10, %v652_v7 }
  0x93   :  { %4677 = vmatmul.mubr.msk.f32.vlgmr.msra.gmra.mxu0 %vm7126_vm5, %v4674_v62  ;;  %4679 = vmatpush1.msk.msra.mxu1 %vm5828_vm11, %v653_v8  ;;  %vm7130_vm5 = vmmov %vm7127_vm0 }
  0x94   :  { %v965_v9 = vpop.permute.xlu1 %964  ;;  %4680 = vmatmul.mubr.msk.f32.vlgmr.msra.gmra.mxu1 %vm7127_vm0, %v4674_v62  ;;  %v963_v10 = vpop.permute.xlu0 %962  ;;  %846 = vmatprep.subr.mxu0 %v5715_v4 }
  0x95   :  { %847 = vmatpush1.msra.mxu0 %v5701_v1  ;;  %880 = vmatprep.mubr.f32.mxu0 %v5610_v2  ;;  %v973_v15 = vsel %vm7106_vm1, %v963_v10, %v965_v9 }
  0x96   :  { %917 = vmatprep.subr.mxu1 %v5696_v0  ;;  %951 = vmatprep.mubr.f32.mxu1 %v5610_v2 }
  0x97   :  { %4682 = vmatmul.mubr.msk.f32.vlgmr.msra.gmra.mxu0 %vm7128_vm13, %v4681_v11  ;;  %918 = vmatpush1.msra.mxu1 %v5710_v3  ;;  %v4684_v3 = vld [vmem:[%s7093_s1 + $0x28] sm:$0xff]  ;;  %vm1144_vm13 = vmand %vm5784_vm3, %vm136_vm2 }
  0x98   :  { %v969_v12 = vpop.permute.xlu1 %968  ;;  %4683 = vmatmul.mubr.msk.f32.vlgmr.msra.gmra.mxu1 %vm7129_vm14, %v4681_v11  ;;  %v967_v4 = vpop.permute.xlu0 %966  ;;  %1048 = vmatprep.mubr.f32.mxu0 %v5610_v2  ;;  %vm137_vm14 = vcmp.le.s32.totalorder %v5778_v20, 14 }
  0x99   :  { %v974_v1 = vsel %vm7106_vm1, %v969_v12, %v963_v10  ;;  %v971_v0 = vsel %vm7106_vm1, %v967_v4, %v969_v12  ;;  %v972_v13 = vsel %vm7106_vm1, %v965_v9, %v967_v4  ;;  %1119 = vmatprep.mubr.f32.mxu1 %v5610_v2  ;;  %vm1146_vm1 = vmand %vm5819_vm10, %vm138_vm4 }
  0x9a   :  { %4685 = vmatprep.subr.msk.mxu0 %vm5845_vm15, %v972_v13  ;;  %4688 = vmatprep.subr.msk.mxu1 %vm5869_vm7, %v974_v1  ;;  %vm1145_vm3 = vmand %vm5828_vm11, %vm137_vm14  ;;  %vm1310_vm11 = vcmp.lt.s32.totalorder %v5760_v6, 112 }
  0x9b   :  { %4686 = vmatpush1.msk.msra.mxu0 %vm5860_vm9, %v973_v15  ;;  %4689 = vmatpush1.msk.msra.mxu1 %vm5876_vm12, %v971_v0 }
  0x9c   :  { %v1133_v16 = vpop.permute.xlu1 %1132  ;;  %4687 = vmatmul.mubr.msk.f32.vlgmr.msra.gmra.mxu0 %vm7130_vm5, %v4684_v3  ;;  %4690 = vmatmul.mubr.msk.f32.vlgmr.msra.gmra.mxu1 %vm7127_vm0, %v4684_v3  ;;  %v1131_v18 = vpop.permute.xlu0 %1130  ;;  %vm1138_vm5 = vcmp.lt.s32.totalorder %v5760_v6, 113  ;;  %vm1143_vm0 = vmand %vm5804_vm8, %vm135_vm6  ;;  %vm7131_vm8 = vcmask 64512  }
  0x9d   :  { %1220 = vmatprep.mubr.f32.mxu0 %v5610_v2  ;;  %1291 = vmatprep.mubr.f32.mxu1 %v5610_v2  ;;  %v1141_v27 = vsel %vm1138_vm5, %v1131_v18, %v1133_v16  ;;  %vm7132_vm10 = vmmov %vm7131_vm8 }
  0xa0   :  { %v1137_v21 = vpop.permute.xlu1 %1136  ;;  %v1135_v22 = vpop.permute.xlu0 %1134 }
  0xa1   :  { %v1142_v23 = vsel %vm1138_vm5, %v1137_v21, %v1131_v18  ;;  %v1139_v24 = vsel %vm1138_vm5, %v1135_v22, %v1137_v21  ;;  %v1140_v25 = vsel %vm1138_vm5, %v1133_v16, %v1135_v22  ;;  %vm1484_vm5 = vmand %vm5845_vm15, %vm136_vm2 }
  0xa2   :  { %4692 = vmatprep.subr.msk.mxu0 %vm1144_vm13, %v1140_v25  ;;  %4695 = vmatprep.subr.msk.mxu1 %vm1146_vm1, %v1142_v23  ;;  %vm7133_vm1 = vmmov %vm7131_vm8 }
  0xa3   :  { %4693 = vmatpush1.msk.msra.mxu0 %vm1143_vm0, %v1141_v27  ;;  %4696 = vmatpush1.msk.msra.mxu1 %vm1145_vm3, %v1139_v24  ;;  %vm7134_vm13 = vmmov %vm7133_vm1  ;;  %vm1478_vm3 = vcmp.lt.s32.totalorder %v5760_v6, 111 }
  0xa4   :  { %v1305_v28 = vpop.permute.xlu1 %1304  ;;  %4694 = vmatmul.mubr.msk.f32.vlgmr.msra.gmra.mxu0 %vm7131_vm8, %v4691_v26  ;;  %4697 = vmatmul.mubr.msk.f32.vlgmr.msra.gmra.mxu1 %vm7132_vm10, %v4691_v26  ;;  %v1303_v29 = vpop.permute.xlu0 %1302  ;;  %vm1486_vm0 = vmand %vm5869_vm7, %vm138_vm4 }
  0xa5   :  { %1388 = vmatprep.mubr.f32.mxu0 %v5610_v2  ;;  %1459 = vmatprep.mubr.f32.mxu1 %v5610_v2  ;;  %v1313_v36 = vsel %vm1310_vm11, %v1303_v29, %v1305_v28  ;;  %vm1483_vm8 = vmand %vm5860_vm9, %vm135_vm6 }
  0xa6   :  { %vm1485_vm15 = vmand %vm5876_vm12, %vm137_vm14  ;;  %vm7137_vm12 = vcmp.lt.s32.totalorder %v5760_v6, 127 }
  0xa7   :  { %vm7135_vm7 = vmmov %vm7133_vm1 }
  0xa8   :  { %v1309_v30 = vpop.permute.xlu1 %1308  ;;  %v1307_v31 = vpop.permute.xlu0 %1306  ;;  %vm7136_vm9 = vmmov %vm7133_vm1 }
  0xa9   :  { %v1314_v32 = vsel %vm1310_vm11, %v1309_v30, %v1303_v29  ;;  %v1311_v33 = vsel %vm1310_vm11, %v1307_v31, %v1309_v30  ;;  %v1312_v34 = vsel %vm1310_vm11, %v1305_v28, %v1307_v31  ;;  %vm7142_vm10 = vmmov %vm7133_vm1 }
  0xaa   :  { %4699 = vmatprep.subr.msk.mxu0 %vm136_vm2, %v1312_v34  ;;  %4702 = vmatprep.subr.msk.mxu1 %vm138_vm4, %v1314_v32  ;;  %vm7138_vm2 = vmmov %vm7137_vm12 }
  0xab   :  { %4700 = vmatpush1.msk.msra.mxu0 %vm135_vm6, %v1313_v36  ;;  %4703 = vmatpush1.msk.msra.mxu1 %vm137_vm14, %v1311_v33  ;;  %vm7139_vm4 = vmmov %vm7138_vm2 }
  0xac   :  { %v1473_v37 = vpop.permute.xlu1 %1472  ;;  %4701 = vmatmul.mubr.msk.f32.vlgmr.msra.gmra.mxu0 %vm7133_vm1, %v4698_v35  ;;  %4704 = vmatmul.mubr.msk.f32.vlgmr.msra.gmra.mxu1 %vm7134_vm13, %v4698_v35  ;;  %v1471_v38 = vpop.permute.xlu0 %1470  ;;  %vm7140_vm6 = vmmov %vm7138_vm2 }
  0xad   :  { %1560 = vmatprep.mubr.f32.mxu0 %v5610_v2  ;;  %1631 = vmatprep.mubr.f32.mxu1 %v5610_v2  ;;  %v1481_v42 = vsel %vm1478_vm3, %v1471_v38, %v1473_v37  ;;  %vm7141_vm14 = vmmov %vm7133_vm1 }
  0xb0   :  { %v1477_v14 = vpop.permute.xlu1 %1476  ;;  %v1475_v39 = vpop.permute.xlu0 %1474 }
  0xb1   :  { %v1482_v2 = vsel %vm1478_vm3, %v1477_v14, %v1471_v38  ;;  %v1479_v40 = vsel %vm1478_vm3, %v1475_v39, %v1477_v14  ;;  %v1480_v19 = vsel %vm1478_vm3, %v1473_v37, %v1475_v39  ;;  %vm7147_vm3 = vmmov %vm7135_vm7 }
  0xb2   :  { %4706 = vmatprep.subr.msk.mxu0 %vm1484_vm5, %v1480_v19  ;;  %4709 = vmatprep.subr.msk.mxu1 %vm1486_vm0, %v1482_v2 }
  0xb3   :  { %4707 = vmatpush1.msk.msra.mxu0 %vm1483_vm8, %v1481_v42  ;;  %4710 = vmatpush1.msk.msra.mxu1 %vm1485_vm15, %v1479_v40  ;;  %vm7148_vm8 = vmmov %vm7147_vm3 }
  0xb4   :  { %4708 = vmatmul.mubr.msk.f32.vlgmr.msra.gmra.mxu0 %vm7135_vm7, %v4705_v41  ;;  %4711 = vmatmul.mubr.msk.f32.vlgmr.msra.gmra.mxu1 %vm7136_vm9, %v4705_v41  ;;  %vm7149_vm15 = vmmov %vm7147_vm3 }
  0xb5   :  { %vm7150_vm7 = vmmov %vm7147_vm3 }
 0x13c   :  { %v250_v17 = vpop.f32.mrf.mxu0 }
 0x13e   :  { %v252_v20 = vpop.f32.mrf.mxu0 }
 0x140   :  { %v321_v43 = vpop.f32.mrf.mxu0 }
 0x142   :  { %v323_v44 = vpop.f32.mrf.mxu0 }
 0x144   :  { %v395_v45 = vpop.f32.mrf.mxu0  ;;  %v466_v46 = vpop.f32.mrf.mxu1 }
 0x145   :  { %v467_v61 = vadd.f32 %v466_v46, %v321_v43  ;;  %v396_v62 = vadd.f32 %v395_v45, %v250_v17  ;;  %v105_v45 = vld [vmem:[%s7094_s9 + $0x1f8] sm:$0xff] }
 0x146   :  { %v397_v47 = vpop.f32.mrf.mxu0  ;;  %v468_v48 = vpop.f32.mrf.mxu1  ;;  %v57_v46 = vld [vmem:[%s7094_s9 + $0x78] sm:$0xff]  ;;  %4951 = vmatprep.subr.mxu1 %v105_v45  ;;  %v91_v45 = vld [vmem:[%s7094_s9 + $0x188] sm:$0xff] }
 0x147   :  { %v469_v8 = vadd.f32 %v468_v48, %v323_v44  ;;  %v398_v9 = vadd.f32 %v397_v47, %v252_v20  ;;  %v73_v44 = vld [vmem:[%s7094_s9 + $0xf8] sm:$0xff] }
 0x148   :  { %4916 = vmatprep.subr.mxu0 %v73_v44  ;;  %v59_v44 = vld [vmem:[%s7094_s9 + $0x88] sm:$0xff] }
 0x149   :  { %4917 = vmatpush3.msra.mxu0 %v57_v46  ;;  %v43_v46 = vld [vmem:[%s7094_s9 + $0x8] sm:$0xff] }
 0x14b   :  { %v563_v49 = vpop.f32.mrf.mxu0 }
 0x14c   :  { %v634_v50 = vpop.f32.mrf.mxu1  ;;  %v639_v11 = vadd.f32 %v563_v49, %v396_v62  ;;  %v102_v62 = vld [vmem:[%s7094_s9 + $0x1e0] sm:$0xff] }
 0x14d   :  { %v565_v51 = vpop.f32.mrf.mxu0  ;;  %v641_v10 = vadd.f32 %v634_v50, %v467_v61  ;;  %v89_v50 = vld [vmem:[%s7094_s9 + $0x178] sm:$0xff]  ;;  %v70_v61 = vld [vmem:[%s7094_s9 + $0xe0] sm:$0xff] }
 0x14e   :  { %v636_v52 = vpop.f32.mrf.mxu1  ;;  %v640_v3 = vadd.f32 %v565_v51, %v398_v9  ;;  %v72_v51 = vld [vmem:[%s7094_s9 + $0xf0] sm:$0xff]  ;;  %4952 = vmatpush3.msra.mxu1 %v89_v50  ;;  %v101_v9 = vld [vmem:[%s7094_s9 + $0x1d8] sm:$0xff]  ;;  %v75_v50 = vld [vmem:[%s7094_s9 + $0x108] sm:$0xff] }
 0x14f   :  { %v642_v1 = vadd.f32 %v636_v52, %v469_v8  ;;  %v104_v52 = vld [vmem:[%s7094_s9 + $0x1f0] sm:$0xff]  ;;  %4918 = vmatprep.subr.mxu0 %v72_v51  ;;  %v69_v8 = vld [vmem:[%s7094_s9 + $0xd8] sm:$0xff]  ;;  %v58_v51 = vld [vmem:[%s7094_s9 + $0x80] sm:$0xff] }
 0x150   :  { %4953 = vmatprep.subr.mxu1 %v104_v52  ;;  %v90_v52 = vld [vmem:[%s7094_s9 + $0x180] sm:$0xff] }
 0x153   :  { %v731_v53 = vpop.f32.mrf.mxu0 }
 0x154   :  { %v802_v54 = vpop.f32.mrf.mxu1  ;;  %v807_v16 = vadd.f32 %v731_v53, %v639_v11  ;;  %v56_v53 = vld [vmem:[%s7094_s9 + $0x70] sm:$0xff]  ;;  %v85_v11 = vld [vmem:[%s7094_s9 + $0x158] sm:$0xff] }
 0x155   :  { %v733_v55 = vpop.f32.mrf.mxu0  ;;  %v809_v15 = vadd.f32 %v802_v54, %v641_v10  ;;  %v88_v54 = vld [vmem:[%s7094_s9 + $0x170] sm:$0xff]  ;;  %4919 = vmatpush3.msra.mxu0 %v56_v53  ;;  %v53_v10 = vld [vmem:[%s7094_s9 + $0x58] sm:$0xff]  ;;  %v42_v53 = vld [vmem:[%s7094_s9] sm:$0xff] }
 0x156   :  { %v804_v56 = vpop.f32.mrf.mxu1  ;;  %v808_v23 = vadd.f32 %v733_v55, %v640_v3  ;;  %4954 = vmatpush3.msra.mxu1 %v88_v54  ;;  %v99_v3 = vld [vmem:[%s7094_s9 + $0x1c8] sm:$0xff]  ;;  %v74_v54 = vld [vmem:[%s7094_s9 + $0x100] sm:$0xff] }
 0x157   :  { %v882_v57 = vpop.f32.mrf.mxu0  ;;  %v810_v18 = vadd.f32 %v804_v56, %v642_v1  ;;  %v52_v1 = vld [vmem:[%s7094_s9 + $0x50] sm:$0xff] }
 0x158   :  { %v953_v58 = vpop.f32.mrf.mxu1  ;;  %v958_v25 = vadd.f32 %v882_v57, %v807_v16  ;;  %v71_v57 = vld [vmem:[%s7094_s9 + $0xe8] sm:$0xff] }
 0x159   :  { %v884_v59 = vpop.f32.mrf.mxu0  ;;  %v960_v24 = vadd.f32 %v953_v58, %v809_v15  ;;  %v103_v58 = vld [vmem:[%s7094_s9 + $0x1e8] sm:$0xff]  ;;  %4920 = vmatprep.subr.mxu0 %v71_v57 }
 0x15a   :  { %v955_v60 = vpop.f32.mrf.mxu1  ;;  %v959_v28 = vadd.f32 %v884_v59, %v808_v23  ;;  %v55_v59 = vld [vmem:[%s7094_s9 + $0x68] sm:$0xff]  ;;  %4955 = vmatprep.subr.mxu1 %v103_v58  ;;  %v82_v23 = vld [vmem:[%s7094_s9 + $0x140] sm:$0xff] }
 0x15b   :  { %v961_v29 = vadd.f32 %v955_v60, %v810_v18  ;;  %v87_v60 = vld [vmem:[%s7094_s9 + $0x168] sm:$0xff]  ;;  %4921 = vmatpush3.msra.mxu0 %v55_v59  ;;  %v66_v18 = vld [vmem:[%s7094_s9 + $0xc0] sm:$0xff] }
 0x15c   :  { %v1050_v63 = vpop.f32.mrf.mxu0  ;;  %v1121_v7 = vpop.f32.mrf.mxu1  ;;  %4956 = vmatpush3.msra.mxu1 %v87_v60  ;;  %4922 = vmatprep.subr.mxu0 %v70_v61  ;;  %v51_v15 = vld [vmem:[%s7094_s9 + $0x48] sm:$0xff] }
 0x15d   :  { %v1126_v30 = vadd.f32 %v1050_v63, %v958_v25  ;;  %v1128_v31 = vadd.f32 %v1121_v7, %v960_v24  ;;  %v54_v63 = vld [vmem:[%s7094_s9 + $0x60] sm:$0xff]  ;;  %4957 = vmatprep.subr.mxu1 %v102_v62  ;;  %v83_v16 = vld [vmem:[%s7094_s9 + $0x148] sm:$0xff]  ;;  %v65_v24 = vld [vmem:[%s7094_s9 + $0xb8] sm:$0xff] }
 0x15e   :  { %v1052_v12 = vpop.f32.mrf.mxu0  ;;  %v1123_v4 = vpop.f32.mrf.mxu1  ;;  %v86_v7 = vld [vmem:[%s7094_s9 + $0x160] sm:$0xff]  ;;  %4923 = vmatpush3.msra.mxu0 %v54_v63  ;;  %v97_v25 = vld [vmem:[%s7094_s9 + $0x1b8] sm:$0xff] }
 0x15f   :  { %v1127_v32 = vadd.f32 %v1052_v12, %v959_v28  ;;  %v1129_v33 = vadd.f32 %v1123_v4, %v961_v29  ;;  %4958 = vmatpush3.msra.mxu1 %v86_v7  ;;  %v68_v12 = vld [vmem:[%s7094_s9 + $0xd0] sm:$0xff]  ;;  %4924 = vmatprep.subr.mxu0 %v69_v8  ;;  %v5619_v8 = vmov 0  }
 0x160   :  { %v100_v4 = vld [vmem:[%s7094_s9 + $0x1d0] sm:$0xff]  ;;  %4959 = vmatprep.subr.mxu1 %v101_v9  ;;  %4925 = vmatpush3.msra.mxu0 %v53_v10 }
 0x161   :  { %4960 = vmatpush3.msra.mxu1 %v85_v11  ;;  %4926 = vmatprep.subr.mxu0 %v68_v12  ;;  %v64_v28 = vld [vmem:[%s7094_s9 + $0xb0] sm:$0xff] }
 0x162   :  { %4961 = vmatprep.subr.mxu1 %v100_v4  ;;  %4927 = vmatpush3.msra.mxu0 %v52_v1  ;;  %v96_v29 = vld [vmem:[%s7094_s9 + $0x1b0] sm:$0xff] }
 0x163   :  { %5598 = vset.pattern.permute.xlu0 %v5619_v8  ;;  %5609 = vset.pattern.permute.xlu1 %v5619_v8  ;;  %v4750_v8 = vld [vmem:[%s7096_s3 + $0x88] sm:$0xff] }
 0x164   :  { %v1222_v0 = vpop.f32.mrf.mxu0  ;;  %v1293_v13 = vpop.f32.mrf.mxu1 }
 0x165   :  { %v1298_v34 = vadd.f32 %v1222_v0, %v1126_v30  ;;  %v1300_v37 = vadd.f32 %v1293_v13, %v1128_v31  ;;  %v84_v0 = vld [vmem:[%s7094_s9 + $0x150] sm:$0xff]  ;;  %v67_v13 = vld [vmem:[%s7094_s9 + $0xc8] sm:$0xff] }
 0x166   :  { %v1224_v21 = vpop.f32.mrf.mxu0  ;;  %v1295_v22 = vpop.f32.mrf.mxu1  ;;  %4962 = vmatpush3.msra.mxu1 %v84_v0  ;;  %4928 = vmatprep.subr.mxu0 %v67_v13  ;;  %v48_v30 = vld [vmem:[%s7094_s9 + $0x30] sm:$0xff]  ;;  %v1674_v0 = vld [vmem:[%s7095_s2] sm:$0xff] }
 0x167   :  { %v1299_v38 = vadd.f32 %v1224_v21, %v1127_v32  ;;  %v1301_v14 = vadd.f32 %v1295_v22, %v1129_v33  ;;  %v98_v21 = vld [vmem:[%s7094_s9 + $0x1c0] sm:$0xff]  ;;  %4963 = vmatprep.subr.mxu1 %v99_v3  ;;  %4929 = vmatpush3.msra.mxu0 %v51_v15  ;;  %v80_v31 = vld [vmem:[%s7094_s9 + $0x130] sm:$0xff]  ;;  %v63_v32 = vld [vmem:[%s7094_s9 + $0xa8] sm:$0xff] }
 0x168   :  { %v50_v22 = vld [vmem:[%s7094_s9 + $0x40] sm:$0xff]  ;;  %4964 = vmatpush3.msra.mxu1 %v83_v16  ;;  %4930 = vmatprep.subr.mxu0 %v66_v18  ;;  %v95_v33 = vld [vmem:[%s7094_s9 + $0x1a8] sm:$0xff] }
 0x169   :  { %4965 = vmatprep.subr.mxu1 %v98_v21  ;;  %4931 = vmatpush3.msra.mxu0 %v50_v22 }
 0x16a   :  { %4966 = vmatpush3.msra.mxu1 %v82_v23  ;;  %4932 = vmatprep.subr.mxu0 %v65_v24 }
 0x16b   :  { %4967 = vmatprep.subr.mxu1 %v97_v25 }
 0x16c   :  { %v1390_v26 = vpop.f32.mrf.mxu0  ;;  %v1461_v27 = vpop.f32.mrf.mxu1 }
 0x16d   :  { %v1466_v39 = vadd.f32 %v1390_v26, %v1298_v34  ;;  %v1468_v19 = vadd.f32 %v1461_v27, %v1300_v37  ;;  %v49_v26 = vld [vmem:[%s7094_s9 + $0x38] sm:$0xff]  ;;  %v47_v34 = vld [vmem:[%s7094_s9 + $0x28] sm:$0xff]  ;;  %v94_v37 = vld [vmem:[%s7094_s9 + $0x1a0] sm:$0xff] }
 0x16e   :  { %v1392_v35 = vpop.f32.mrf.mxu0  ;;  %v1463_v36 = vpop.f32.mrf.mxu1  ;;  %v81_v27 = vld [vmem:[%s7094_s9 + $0x138] sm:$0xff]  ;;  %4933 = vmatpush3.msra.mxu0 %v49_v26  ;;  %v4712_v26 = vld [vmem:[%s7096_s3 + $0x10] sm:$0xff] }
 0x16f   :  { %v1467_v41 = vadd.f32 %v1392_v35, %v1299_v38  ;;  %v1469_v42 = vadd.f32 %v1463_v36, %v1301_v14  ;;  %4968 = vmatpush3.msra.mxu1 %v81_v27  ;;  %4934 = vmatprep.subr.mxu0 %v64_v28  ;;  %v79_v35 = vld [vmem:[%s7094_s9 + $0x128] sm:$0xff]  ;;  %v62_v36 = vld [vmem:[%s7094_s9 + $0xa0] sm:$0xff] }
 0x170   :  { %4969 = vmatprep.subr.mxu1 %v96_v29  ;;  %4935 = vmatpush3.msra.mxu0 %v48_v30  ;;  %v46_v38 = vld [vmem:[%s7094_s9 + $0x20] sm:$0xff] }
 0x171   :  { %4970 = vmatpush3.msra.mxu1 %v80_v31  ;;  %4936 = vmatprep.subr.mxu0 %v63_v32  ;;  %v78_v14 = vld [vmem:[%s7094_s9 + $0x120] sm:$0xff] }
 0x172   :  { %4971 = vmatprep.subr.mxu1 %v95_v33  ;;  %4937 = vmatpush3.msra.mxu0 %v47_v34  ;;  %v1848_v32 = vld [vmem:[%s7096_s3] sm:$0xff] }
 0x173   :  { %4972 = vmatpush3.msra.mxu1 %v79_v35  ;;  %4938 = vmatprep.subr.mxu0 %v62_v36 }
 0x174   :  { %v1562_v2 = vpop.f32.mrf.mxu0  ;;  %v1633_v40 = vpop.f32.mrf.mxu1  ;;  %4973 = vmatprep.subr.mxu1 %v94_v37  ;;  %4939 = vmatpush3.msra.mxu0 %v46_v38  ;;  %v1838_v38 = vshra.s32 %v5760_v6, 3 }
 0x175   :  { %v6032_v17 = vadd.f32 %v1562_v2, %v1466_v39  ;;  %v6043_v47 = vadd.f32 %v1633_v40, %v1468_v19  ;;  %v61_v39 = vld [vmem:[%s7094_s9 + $0x98] sm:$0xff]  ;;  %4974 = vmatpush3.msra.mxu1 %v78_v14 }
 0x176   :  { %v1564_v20 = vpop.f32.mrf.mxu0  ;;  %v1635_v43 = vpop.f32.mrf.mxu1  ;;  %v93_v2 = vld [vmem:[%s7094_s9 + $0x198] sm:$0xff]  ;;  %4940 = vmatprep.subr.mxu0 %v61_v39  ;;  %v1839_v14 = vand.u32 7, %v1838_v38  ;;  %v1837_v39 = vand.u32 7, %v5760_v6 }
 0x177   :  { %v6045_v48 = vadd.f32 %v1564_v20, %v1467_v41  ;;  %v6047_v49 = vadd.f32 %v1635_v43, %v1469_v42  ;;  %v45_v40 = vld [vmem:[%s7094_s9 + $0x18] sm:$0xff]  ;;  %4975 = vmatprep.subr.mxu1 %v93_v2  ;;  %v60_v41 = vld [vmem:[%s7094_s9 + $0x90] sm:$0xff] }
 0x178   :  { %v77_v19 = vld [vmem:[%s7094_s9 + $0x118] sm:$0xff]  ;;  %4941 = vmatpush3.msra.mxu0 %v45_v40  ;;  %v92_v42 = vld [vmem:[%s7094_s9 + $0x190] sm:$0xff]  ;;  %vm6276_vm1 = vcmp.le.s32.totalorder %v1837_v39, 6  ;;  %vm6280_vm13 = vcmp.ge.s32.totalorder %v1837_v39, 1  ;;  %vm1843_vm9 = vcmp.le.s32.totalorder %v1839_v14, 6  ;;  %v2654_v40 = vld [vmem:[%s7097_s4 + $0x8] sm:$0xff] }
 0x179   :  { %v5578_v55 = vpack.i.bf16 %v6043_v47, %v6045_v48  ;;  %v5583_v56 = vpack.i.bf16 %v6032_v17, %v6047_v49  ;;  %4976 = vmatpush3.msra.mxu1 %v77_v19  ;;  %4942 = vmatprep.subr.mxu0 %v60_v41  ;;  %v44_v20 = vld [vmem:[%s7094_s9 + $0x10] sm:$0xff]  ;;  %v1836_v39 = vld [vmem:[%s7098_s10 + $0x78] sm:$0xff] }
 0x17a   :  { %4977 = vmatprep.subr.mxu1 %v92_v42  ;;  %v76_v43 = vld [vmem:[%s7094_s9 + $0x110] sm:$0xff]  ;;  %4943 = vmatpush3.msra.mxu0 %v44_v20  ;;  %v4713_v42 = vld [vmem:[%s7096_s3 + $0x18] sm:$0xff]  ;;  %v4720_v20 = vld [vmem:[%s7096_s3 + $0x20] sm:$0xff]  ;;  %s5628_s9 = smov 3  }
 0x17b   :  { %5579 = vrot.lane.b32.xlu0 %v5578_v55, %s5615_s28  ;;  %5584 = vrot.lane.b32.xlu1 %v5583_v56, %s5615_s28  ;;  %v1835_v2 = vld [vmem:[%s7098_s10 + $0x70] sm:$0xff] }
 0x17c   :  { %4978 = vmatpush3.msra.mxu1 %v76_v43  ;;  %4944 = vmatprep.subr.mxu0 %v59_v44  ;;  %v1849_v44 = vld [vmem:[%s7096_s3 + $0x8] sm:$0xff] }
 0x17d   :  { %4979 = vmatprep.subr.mxu1 %v91_v45  ;;  %4945 = vmatpush3.msra.mxu0 %v43_v46  ;;  %v4721_v45 = vld [vmem:[%s7096_s3 + $0x28] sm:$0xff]  ;;  %v4725_v46 = vld [vmem:[%s7096_s3 + $0x30] sm:$0xff] }
 0x17e   :  { %4980 = vmatpush3.msra.mxu1 %v75_v50  ;;  %4946 = vmatprep.subr.mxu0 %v58_v51  ;;  %v4730_v51 = vld [vmem:[%s7096_s3 + $0x40] sm:$0xff] }
 0x17f   :  { %4981 = vmatprep.subr.mxu1 %v90_v52  ;;  %4947 = vmatpush3.msra.mxu0 %v42_v53  ;;  %v4726_v53 = vld [vmem:[%s7096_s3 + $0x38] sm:$0xff] }
 0x180   :  { %4982 = vmatpush3.msra.mxu1 %v74_v54  ;;  %v4731_v54 = vld [vmem:[%s7096_s3 + $0x48] sm:$0xff] }
 0x1ed   :  { %v5580_v55 = vpop.permute.xlu0 %5579  ;;  %v5585_v56 = vpop.permute.xlu1 %5584 }
 0x1ee   :  { %v5582_v57 = vunpack.i.h.bf16 %v5580_v55  ;;  %v5581_v58 = vunpack.i.l.bf16 %v5580_v55  ;;  %v5587_v59 = vunpack.i.h.bf16 %v5585_v56  ;;  %v5586_v60 = vunpack.i.l.bf16 %v5585_v56  ;;  %v4734_v55 = vld [vmem:[%s7096_s3 + $0x50] sm:$0xff] }
 0x1f0   :  { %v1651_v61 = vsel %vm7137_vm12, %v5581_v58, %v5582_v57  ;;  %v1652_v62 = vsel %vm7138_vm2, %v5587_v59, %v5581_v58  ;;  %v1650_v63 = vsel %vm7139_vm4, %v5582_v57, %v5586_v60  ;;  %v1653_v7 = vsel %vm7140_vm6, %v5586_v60, %v5587_v59  ;;  %vm7151_vm12 = vmmov %vm7147_vm3  ;;  %v4735_v58 = vld [vmem:[%s7096_s3 + $0x58] sm:$0xff]  ;;  %v4739_v59 = vld [vmem:[%s7096_s3 + $0x60] sm:$0xff] }
 0x1f1   :  { %v1654_v9 = vmax.f32 %v6032_v17, %v1652_v62  ;;  %v1657_v10 = vmax.f32 %v6047_v49, %v1653_v7  ;;  %v1655_v11 = vmax.f32 %v6045_v48, %v1651_v61  ;;  %v1656_v12 = vmax.f32 %v6043_v47, %v1650_v63  ;;  %vm7152_vm2 = vmmov %vm7147_vm3  ;;  %v4740_v60 = vld [vmem:[%s7096_s3 + $0x68] sm:$0xff]  ;;  %v4744_v61 = vld [vmem:[%s7096_s3 + $0x70] sm:$0xff] }
 0x1f2   :  { %vm2374_vm4 = vmand %vm6280_vm13, %vm1843_vm9  ;;  %v4749_v62 = vld [vmem:[%s7096_s3 + $0x80] sm:$0xff]  ;;  %v4745_v7 = vld [vmem:[%s7096_s3 + $0x78] sm:$0xff] }
 0x1f3   :  { %v5593_v4 = vpack.i.bf16 %v1657_v10, %v1654_v9  ;;  %v5588_v1 = vpack.i.bf16 %v1656_v12, %v1655_v11  ;;  %vm7153_vm6 = vmmov %vm7152_vm2 }
 0x1f5   :  { %5594 = vrot.lane.b32.xlu1 %v5593_v4, %s5617_s30  ;;  %5589 = vrot.lane.b32.xlu0 %v5588_v1, %s5617_s30 }
 0x1f9   :  { %1677 = vperm.xlu0 %5598, %v1674_v0  }
 0x267   :  { %v5595_v13 = vpop.permute.xlu1 %5594  ;;  %v5590_v17 = vpop.permute.xlu0 %5589 }
 0x268   :  { %v5597_v3 = vunpack.i.h.bf16 %v5595_v13  ;;  %v5596_v49 = vunpack.i.l.bf16 %v5595_v13  ;;  %v5592_v15 = vunpack.i.h.bf16 %v5590_v17  ;;  %v5591_v48 = vunpack.i.l.bf16 %v5590_v17 }
 0x26a   :  { %v1666_v47 = vsel %vm1310_vm11, %v5592_v15, %v5597_v3  ;;  %v1668_v16 = vsel %vm1310_vm11, %v5596_v49, %v5591_v48  ;;  %v1667_v18 = vsel %vm1310_vm11, %v5591_v48, %v5592_v15  ;;  %v1669_v21 = vsel %vm1310_vm11, %v5597_v3, %v5596_v49 }
 0x26b   :  { %v1672_v22 = vmax.f32 %v1656_v12, %v1666_v47  ;;  %v1670_v23 = vmax.f32 %v1654_v9, %v1668_v16  ;;  %v1671_v24 = vmax.f32 %v1655_v11, %v1667_v18  ;;  %v1673_v25 = vmax.f32 %v1657_v10, %v1669_v21 }
 0x26c   :  { %vm1842_vm11 = vcmp.ge.s32.totalorder %v1839_v14, 1 }
 0x26d   :  { %1744 = vmatprep.mubr.f32.mxu0 %v1671_v24  ;;  %1814 = vmatprep.mubr.f32.mxu1 %v1673_v25  ;;  %vm2020_vm5 = vmand %vm6276_vm1, %vm1842_vm11 }
 0x26e   :  { %1745 = vmatmul.mubr.f32.vlgmr.msra.gmra.mxu0 %v1670_v23  ;;  %1815 = vmatmul.mubr.f32.vlgmr.msra.gmra.mxu1 %v1672_v22  ;;  %vm1846_vm0 = vmand %vm6280_vm13, %vm1842_vm11 }
 0x26f   :  { %5191 = vmatprep.mubr.msk.f32.mxu0 %vm7141_vm14, %v4712_v26  ;;  %5196 = vmatprep.mubr.msk.f32.mxu1 %vm7142_vm10, %v1848_v32  ;;  %vm7154_vm14 = vmmov %vm7152_vm2 }
 0x270   :  { %vm7155_vm10 = vmmov %vm7152_vm2 }
 0x274   :  { %v1678_v29 = vpop.permute.xlu0 %1677 }
 0x32e   :  { %v4948_v27 = vpop.f32.mrf.mxu0  ;;  %v4983_v28 = vpop.f32.mrf.mxu1 }
 0x330   :  { %v4949_v30 = vpop.f32.mrf.mxu0  ;;  %v4984_v31 = vpop.f32.mrf.mxu1 }
 0x331   :  { %v4950_v33 = vadd.f32 %v4949_v30, %v4948_v27  ;;  %v4985_v34 = vadd.f32 %v4984_v31, %v4983_v28 }
 0x333   :  { %v1747_v35 = vadd.f32 %v4950_v33, %v1678_v29 }
 0x335   :  { %v1817_v36 = vadd.f32 %v4985_v34, %v1747_v35 }
 0x337   :  { %v1820_v37 = vmax.f32 %v1817_v36, 0.0 }
 0x339   :  { %2018 = vrot.lane.b32.xlu0 %v1820_v37, %s5620_s18  ;;  %1850 = vrot.lane.b32.xlu1 %v1820_v37, %s5621_s19 }
 0x33d   :  { %2283 = vrot.lane.b32.xlu0 %v1820_v37, %s5615_s28  ;;  %1844 = vrot.lane.b32.xlu1 %v1820_v37, %s5622_s20  ;;  %s5629_s20 = smov 125  }
 0x341   :  { %2462 = vrot.lane.b32.xlu0 %v1820_v37, %s5623_s21  ;;  %2108 = vrot.lane.b32.xlu1 %v1820_v37, %s5614_s0 }
 0x345   :  { %2372 = vrot.lane.b32.xlu1 %v1820_v37, %s5624_s22  ;;  %s5630_s22 = smov 124  }
 0x349   :  { %2551 = vrot.lane.b32.xlu1 %v1820_v37, %s5625_s23  ;;  %s5631_s23 = smov 123  }
 0x3ab   :  { %v2019_v19 = vpop.permute.xlu0 %2018  ;;  %v1851_v41 = vpop.permute.xlu1 %1850 }
 0x3ac   :  { %5189 = vmatprep.subr.msk.mxu0 %vm1842_vm11, %v1851_v41 }
 0x3ad   :  { %5190 = vmatpush3.msk.msra.mxu0 %vm1842_vm11, %v1851_v41  ;;  %vm2553_vm11 = vmand %vm6276_vm1, %vm1843_vm9  ;;  %v1833_v41 = vld [vmem:[%s7098_s10 + $0x60] sm:$0xff] }
 0x3ae   :  { %5192 = vmatmul.mubr.msk.f32.vlgmr.msra.gmra.mxu0 %vm7147_vm3, %v4713_v42  ;;  %5199 = vmatprep.subr.msk.mxu0 %vm2020_vm5, %v2019_v19  ;;  %v1832_v42 = vld [vmem:[%s7098_s10 + $0x58] sm:$0xff] }
 0x3af   :  { %5200 = vmatpush3.msk.msra.mxu0 %vm2020_vm5, %v2019_v19  ;;  %v1845_v43 = vpop.permute.xlu1 %1844  ;;  %5201 = vmatprep.mubr.msk.f32.mxu0 %vm7148_vm8, %v4720_v20  ;;  %v2284_v50 = vpop.permute.xlu0 %2283  ;;  %vm7157_vm5 = vmmov %vm7152_vm2  ;;  %v1834_v19 = vld [vmem:[%s7098_s10 + $0x68] sm:$0xff]  ;;  %v1831_v20 = vld [vmem:[%s7098_s10 + $0x50] sm:$0xff] }
 0x3b0   :  { %5194 = vmatprep.subr.msk.mxu1 %vm1846_vm0, %v1845_v43  ;;  %5209 = vmatprep.subr.mxu0 %v1820_v37 }
 0x3b1   :  { %5195 = vmatpush3.msk.msra.mxu1 %vm1846_vm0, %v1845_v43  ;;  %vm7158_vm0 = vmmov %vm7152_vm2  ;;  %v1830_v43 = vld [vmem:[%s7098_s10 + $0x48] sm:$0xff] }
 0x3b2   :  { %5197 = vmatmul.mubr.msk.f32.vlgmr.msra.gmra.mxu1 %vm7149_vm15, %v1849_v44  ;;  %5202 = vmatmul.mubr.msk.f32.vlgmr.msra.gmra.mxu0 %vm7150_vm7, %v4721_v45  ;;  %vm7160_vm3 = vmmov %vm7158_vm0  ;;  %v1829_v44 = vld [vmem:[%s7098_s10 + $0x40] sm:$0xff]  ;;  %v1828_v45 = vld [vmem:[%s7098_s10 + $0x38] sm:$0xff]  ;;  %vm2771_vm7 = vcmask 130048  }
 0x3b3   :  { %5210 = vmatpush3.msra.mxu0 %v1820_v37  ;;  %v2109_v52 = vpop.permute.xlu1 %2108  ;;  %5206 = vmatprep.mubr.msk.f32.mxu1 %vm7151_vm12, %v4725_v46  ;;  %v2463_v56 = vpop.permute.xlu0 %2462  ;;  %vm7161_vm8 = vmmov %vm7158_vm0  ;;  %v1827_v46 = vld [vmem:[%s7098_s10 + $0x30] sm:$0xff] }
 0x3b4   :  { %5204 = vmatprep.subr.msk.mxu1 %vm6280_vm13, %v2109_v52  ;;  %5211 = vmatprep.mubr.msk.f32.mxu0 %vm7152_vm2, %v4730_v51  ;;  %vm7162_vm15 = vmmov %vm7158_vm0  ;;  %v1825_v51 = vld [vmem:[%s7098_s10 + $0x20] sm:$0xff] }
 0x3b5   :  { %5205 = vmatpush3.msk.msra.mxu1 %vm6280_vm13, %v2109_v52  ;;  %vm7156_vm13 = vmmov %vm7152_vm2  ;;  %v1824_v52 = vld [vmem:[%s7098_s10 + $0x18] sm:$0xff] }
 0x3b6   :  { %5207 = vmatmul.mubr.msk.f32.vlgmr.msra.gmra.mxu1 %vm7153_vm6, %v4726_v53  ;;  %5214 = vmatprep.subr.msk.mxu1 %vm6276_vm1, %v2284_v50  ;;  %v1823_v53 = vld [vmem:[%s7098_s10 + $0x10] sm:$0xff] }
 0x3b7   :  { %5215 = vmatpush3.msk.msra.mxu1 %vm6276_vm1, %v2284_v50  ;;  %v2373_v57 = vpop.permute.xlu1 %2372  ;;  %5212 = vmatmul.mubr.msk.f32.vlgmr.msra.gmra.mxu0 %vm7154_vm14, %v4731_v54  ;;  %vm7159_vm1 = vmmov %vm7158_vm0  ;;  %v1826_v50 = vld [vmem:[%s7098_s10 + $0x28] sm:$0xff] }
 0x3b8   :  { %5219 = vmatprep.subr.msk.mxu0 %vm2374_vm4, %v2373_v57  ;;  %5224 = vmatprep.subr.msk.mxu1 %vm1843_vm9, %v2463_v56  ;;  %v1822_v54 = vld [vmem:[%s7098_s10 + $0x8] sm:$0xff] }
 0x3b9   :  { %5216 = vmatprep.mubr.msk.f32.mxu1 %vm7155_vm10, %v4734_v55  ;;  %5220 = vmatpush3.msk.msra.mxu0 %vm2374_vm4, %v2373_v57  ;;  %v1821_v55 = vld [vmem:[%s7098_s10] sm:$0xff] }
 0x3ba   :  { %5217 = vmatmul.mubr.msk.f32.vlgmr.msra.gmra.mxu1 %vm7156_vm13, %v4735_v58  ;;  %5221 = vmatprep.mubr.msk.f32.mxu0 %vm7157_vm5, %v4739_v59 }
 0x3bb   :  { %5225 = vmatpush3.msk.msra.mxu1 %vm1843_vm9, %v2463_v56  ;;  %v2552_v63 = vpop.permute.xlu1 %2551  ;;  %5222 = vmatmul.mubr.msk.f32.vlgmr.msra.gmra.mxu0 %vm7158_vm0, %v4740_v60 }
 0x3bc   :  { %5229 = vmatprep.subr.msk.mxu0 %vm2553_vm11, %v2552_v63  ;;  %5226 = vmatprep.mubr.msk.f32.mxu1 %vm7159_vm1, %v4744_v61 }
 0x3bd   :  { %5230 = vmatpush3.msk.msra.mxu0 %vm2553_vm11, %v2552_v63  ;;  %5231 = vmatprep.mubr.msk.f32.mxu0 %vm7160_vm3, %v4749_v62  ;;  %v2653_v62 = vld [vmem:[%s7097_s4] sm:$0xff]  ;;  %s5626_s4 = smov 4  }
 0x3be   :  { %5227 = vmatmul.mubr.msk.f32.vlgmr.msra.gmra.mxu1 %vm7161_vm8, %v4745_v7  ;;  %5234 = vmatprep.subr.mxu1 %v1836_v39 }
 0x3bf   :  { %5232 = vmatmul.mubr.msk.f32.vlgmr.msra.gmra.mxu0 %vm7162_vm15, %v4750_v8  ;;  %5235 = vmatpush3.msra.mxu1 %v1836_v39 }
 0x3c0   :  { %5236 = vmatprep.subr.mxu1 %v1835_v2 }
 0x3c1   :  { %5237 = vmatpush3.msra.mxu1 %v1835_v2 }
 0x3c2   :  { %5238 = vmatprep.subr.mxu1 %v1834_v19 }
 0x3c3   :  { %5239 = vmatpush3.msra.mxu1 %v1834_v19  ;;  %v4770_v19 = vld [vmem:[%s7099_s5 + $0x40] sm:$0xff] }
 0x3c4   :  { %5240 = vmatprep.subr.mxu1 %v1833_v41 }
 0x3c5   :  { %5241 = vmatpush3.msra.mxu1 %v1833_v41 }
 0x3c6   :  { %5242 = vmatprep.subr.mxu1 %v1832_v42 }
 0x3c7   :  { %5243 = vmatpush3.msra.mxu1 %v1832_v42 }
 0x3c8   :  { %5244 = vmatprep.subr.mxu1 %v1831_v20 }
 0x3c9   :  { %5245 = vmatpush3.msra.mxu1 %v1831_v20  ;;  %v4771_v20 = vld [vmem:[%s7099_s5 + $0x48] sm:$0xff] }
 0x3ca   :  { %5246 = vmatprep.subr.mxu1 %v1830_v43 }
 0x3cb   :  { %5247 = vmatpush3.msra.mxu1 %v1830_v43 }
 0x3cc   :  { %5248 = vmatprep.subr.mxu1 %v1829_v44 }
 0x3cd   :  { %5249 = vmatpush3.msra.mxu1 %v1829_v44 }
 0x3ce   :  { %5250 = vmatprep.subr.mxu1 %v1828_v45 }
 0x3cf   :  { %5251 = vmatpush3.msra.mxu1 %v1828_v45  ;;  %v4772_v45 = vld [vmem:[%s7099_s5 + $0x50] sm:$0xff] }
 0x3d0   :  { %5252 = vmatprep.subr.mxu1 %v1827_v46 }
 0x3d1   :  { %5253 = vmatpush3.msra.mxu1 %v1827_v46 }
 0x3d2   :  { %5254 = vmatprep.subr.mxu1 %v1826_v50 }
 0x3d3   :  { %5255 = vmatpush3.msra.mxu1 %v1826_v50  ;;  %v4773_v50 = vld [vmem:[%s7099_s5 + $0x58] sm:$0xff] }
 0x3d4   :  { %5256 = vmatprep.subr.mxu1 %v1825_v51 }
 0x3d5   :  { %5257 = vmatpush3.msra.mxu1 %v1825_v51  ;;  %v4809_v51 = vld [vmem:[%s7099_s5 + $0xc8] sm:$0xff] }
 0x3d6   :  { %5258 = vmatprep.subr.mxu1 %v1824_v52 }
 0x3d7   :  { %5259 = vmatpush3.msra.mxu1 %v1824_v52 }
 0x3d8   :  { %5260 = vmatprep.subr.mxu1 %v1823_v53 }
 0x3d9   :  { %5261 = vmatpush3.msra.mxu1 %v1823_v53  ;;  %v4780_v53 = vld [vmem:[%s7099_s5 + $0x60] sm:$0xff] }
 0x3da   :  { %5262 = vmatprep.subr.mxu1 %v1822_v54 }
 0x3db   :  { %5263 = vmatpush3.msra.mxu1 %v1822_v54  ;;  %v4810_v54 = vld [vmem:[%s7099_s5 + $0xd0] sm:$0xff] }
 0x3dc   :  { %5264 = vmatprep.subr.mxu1 %v1821_v55 }
 0x3dd   :  { %5265 = vmatpush3.msra.mxu1 %v1821_v55 }
 0x46e   :  { %v5193_v9 = vpop.f32.mrf.mxu0 }
 0x470   :  { %v1928_v10 = vpop.f32.mrf.mxu0 }
 0x472   :  { %v5198_v11 = vpop.f32.mrf.mxu1  ;;  %v5203_v12 = vpop.f32.mrf.mxu0 }
 0x473   :  { %v2015_v4 = vadd.f32 %v5198_v11, %v5193_v9  ;;  %v4754_v11 = vld [vmem:[%s7099_s5 + $0x20] sm:$0xff] }
 0x474   :  { %v2009_v1 = vpop.f32.mrf.mxu1  ;;  %v2097_v0 = vpop.f32.mrf.mxu0  ;;  %5273 = vmatprep.mubr.msk.f32.mxu0 %vm2771_vm7, %v4754_v11  ;;  %v4830_v11 = vld [vmem:[%s7099_s5 + $0x110] sm:$0xff] }
 0x475   :  { %v2010_v13 = vadd.f32 %v2009_v1, %v1928_v10  ;;  %v2107_v17 = vadd.f32 %v5203_v12, %v2015_v4 }
 0x476   :  { %v5208_v3 = vpop.f32.mrf.mxu1 }
 0x477   :  { %v2106_v49 = vadd.f32 %v2097_v0, %v2010_v13  ;;  %v2196_v15 = vadd.f32 %v5208_v3, %v2107_v17  ;;  %v5213_v48 = vpop.f32.mrf.mxu0 }
 0x478   :  { %v2186_v47 = vpop.f32.mrf.mxu1 }
 0x479   :  { %v2195_v16 = vadd.f32 %v2186_v47, %v2106_v49  ;;  %v2282_v18 = vadd.f32 %v5213_v48, %v2196_v15  ;;  %v2272_v21 = vpop.f32.mrf.mxu0  ;;  %v4790_v15 = vld [vmem:[%s7099_s5 + $0x80] sm:$0xff]  ;;  %v4791_v48 = vld [vmem:[%s7099_s5 + $0x88] sm:$0xff]  ;;  %v4792_v47 = vld [vmem:[%s7099_s5 + $0x90] sm:$0xff] }
 0x47a   :  { %v5218_v22 = vpop.f32.mrf.mxu1 }
 0x47b   :  { %v2281_v23 = vadd.f32 %v2272_v21, %v2195_v16  ;;  %v2371_v24 = vadd.f32 %v5218_v22, %v2282_v18  ;;  %v5223_v25 = vpop.f32.mrf.mxu0  ;;  %v4793_v16 = vld [vmem:[%s7099_s5 + $0x98] sm:$0xff]  ;;  %v4808_v18 = vld [vmem:[%s7099_s5 + $0xc0] sm:$0xff]  ;;  %v2743_v21 = vshra.s32 %v5760_v6, 2 }
 0x47c   :  { %v2361_v26 = vpop.f32.mrf.mxu1 }
 0x47d   :  { %v2370_v27 = vadd.f32 %v2361_v26, %v2281_v23  ;;  %v2461_v28 = vadd.f32 %v5223_v25, %v2371_v24  ;;  %v2451_v29 = vpop.f32.mrf.mxu0  ;;  %v6455_v22 = vand.u32 3, %v2743_v21  ;;  %v2742_v23 = vand.u32 3, %v5760_v6 }
 0x47e   :  { %v5228_v30 = vpop.f32.mrf.mxu1 }
 0x47f   :  { %v2460_v31 = vadd.f32 %v2451_v29, %v2370_v27  ;;  %v2550_v32 = vadd.f32 %v5228_v30, %v2461_v28  ;;  %v5233_v33 = vpop.f32.mrf.mxu0  ;;  %vm2747_vm9 = vcmp.ge.s32.totalorder %v6455_v22, 1  ;;  %vm6459_vm12 = vcmp.ge.s32.totalorder %v2742_v23, 1  ;;  %v4755_v27 = vld [vmem:[%s7099_s5 + $0x28] sm:$0xff]  ;;  %v4756_v29 = vld [vmem:[%s7099_s5 + $0x30] sm:$0xff] }
 0x480   :  { %v2540_v34 = vpop.f32.mrf.mxu1  ;;  %vm6474_vm2 = vmand %vm6459_vm12, %vm2747_vm9  ;;  %vm6483_vm4 = vcmp.le.s32.totalorder %v2742_v23, 2  ;;  %vm2748_vm14 = vcmp.le.s32.totalorder %v6455_v22, 2 }
 0x481   :  { %v2549_v35 = vadd.f32 %v2540_v34, %v2460_v31  ;;  %v2630_v36 = vpop.f32.mrf.mxu0  ;;  %v2640_v37 = vadd.f32 %v5233_v33, %v2550_v32  ;;  %v4757_v33 = vld [vmem:[%s7099_s5 + $0x38] sm:$0xff]  ;;  %vm6502_vm6 = vmand %vm6483_vm4, %vm2747_vm9 }
 0x482   :  { %vm6549_vm10 = vmand %vm6459_vm12, %vm2748_vm14 }
 0x483   :  { %v2639_v38 = vadd.f32 %v2630_v36, %v2549_v35  ;;  %v2756_v35 = vld [vmem:[%s7099_s5] sm:$0xff]  ;;  %vm6591_vm11 = vmand %vm6483_vm4, %vm2748_vm14 }
 0x485   :  { %v5599_v14 = vpack.i.bf16 %v2640_v37, %v2639_v38 }
 0x487   :  { %5600 = vrot.lane.b32.xlu0 %v5599_v14, %s5615_s28  ;;  %v2758_v14 = vld [vmem:[%s7099_s5 + $0x10] sm:$0xff] }
 0x48b   :  { %2662 = vperm.xlu0 %5598, %v2654_v40   ;;  %v2759_v40 = vld [vmem:[%s7099_s5 + $0x18] sm:$0xff] }
 0x4f9   :  { %v5601_v56 = vpop.permute.xlu0 %5600 }
 0x4fa   :  { %v5603_v57 = vunpack.i.h.bf16 %v5601_v56  ;;  %v5602_v58 = vunpack.i.l.bf16 %v5601_v56 }
 0x4fc   :  { %v2646_v59 = vmax.f32 %v2640_v37, %v5603_v57  ;;  %v2645_v60 = vmax.f32 %v2639_v38, %v5602_v58  ;;  %v2757_v38 = vld [vmem:[%s7099_s5 + $0x8] sm:$0xff] }
 0x4fd   :  { %v4781_v57 = vld [vmem:[%s7099_s5 + $0x68] sm:$0xff] }
 0x4fe   :  { %v5604_v61 = vpack.i.bf16 %v2646_v59, %v2645_v60 }
 0x500   :  { %5605 = vrot.lane.b32.xlu1 %v5604_v61, %s5623_s21  ;;  %s5627_s21 = smov 5   ;;  %v4783_v61 = vld [vmem:[%s7099_s5 + $0x78] sm:$0xff] }
 0x504   :  { %2657 = vperm.xlu1 %5609, %v2653_v62   ;;  %v4798_v62 = vld [vmem:[%s7099_s5 + $0xa0] sm:$0xff] }
 0x506   :  { %v2663_v12 = vpop.permute.xlu0 %2662 }
 0x572   :  { %v5606_v63 = vpop.permute.xlu1 %5605 }
 0x573   :  { %v5608_v7 = vunpack.i.h.bf16 %v5606_v63  ;;  %v5607_v8 = vunpack.i.l.bf16 %v5606_v63  ;;  %v4811_v63 = vld [vmem:[%s7099_s5 + $0xd8] sm:$0xff] }
 0x575   :  { %v2652_v9 = vmax.f32 %v2646_v59, %v5608_v7  ;;  %v2651_v10 = vmax.f32 %v2645_v60, %v5607_v8  ;;  %v4782_v59 = vld [vmem:[%s7099_s5 + $0x70] sm:$0xff]  ;;  %v4828_v7 = vld [vmem:[%s7099_s5 + $0x100] sm:$0xff]  ;;  %v4799_v8 = vld [vmem:[%s7099_s5 + $0xa8] sm:$0xff] }
 0x577   :  { %5266 = vmatprep.mubr.f32.mxu1 %v2651_v10  ;;  %v4829_v10 = vld [vmem:[%s7099_s5 + $0x108] sm:$0xff] }
 0x578   :  { %5267 = vmatmul.mubr.f32.vlgmr.msra.gmra.mxu1 %v2652_v9  ;;  %v4800_v9 = vld [vmem:[%s7099_s5 + $0xb0] sm:$0xff] }
 0x579   :  { %5313 = vmatprep.mubr.msk.f32.mxu1 %vm2771_vm7, %v4790_v15 }
 0x57f   :  { %v2658_v1 = vpop.permute.xlu1 %2657 }
 0x638   :  { %v5268_v4 = vpop.f32.mrf.mxu1 }
 0x639   :  { %v2737_v0 = vadd.f32 %v5268_v4, %v2663_v12  ;;  %v4801_v12 = vld [vmem:[%s7099_s5 + $0xb8] sm:$0xff]  ;;  %v4818_v4 = vld [vmem:[%s7099_s5 + $0xe0] sm:$0xff] }
 0x63a   :  { %v2731_v13 = vpop.f32.mrf.mxu1 }
 0x63b   :  { %v2741_v17 = vmax.f32 %v2737_v0, 0.0  ;;  %v2732_v3 = vadd.f32 %v2731_v13, %v2658_v1  ;;  %v4831_v1 = vld [vmem:[%s7099_s5 + $0x118] sm:$0xff]  ;;  %v4819_v0 = vld [vmem:[%s7099_s5 + $0xe8] sm:$0xff]  ;;  %v4820_v13 = vld [vmem:[%s7099_s5 + $0xf0] sm:$0xff] }
 0x63d   :  { %v2740_v49 = vmax.f32 %v2732_v3, 0.0  ;;  %2762 = vrot.lane.b32.xlu0 %v2741_v17, %s5626_s4  ;;  %5309 = vmatprep.subr.mxu1 %v2741_v17 }
 0x63e   :  { %5310 = vmatpush3.msra.mxu1 %v2741_v17 }
 0x63f   :  { %2760 = vrot.lane.b32.xlu1 %v2740_v49, %s5626_s4  ;;  %5311 = vmatprep.subr.mxu1 %v2740_v49 }
 0x640   :  { %5312 = vmatpush3.msra.mxu1 %v2740_v49 }
 0x641   :  { %2751 = vrot.lane.b32.xlu0 %v2741_v17, %s5627_s21  ;;  %5314 = vmatmul.mubr.msk.f32.vlgmr.msra.gmra.mxu1 %vm2771_vm7, %v4791_v48 }
 0x642   :  { %5316 = vmatprep.mubr.msk.f32.mxu1 %vm2771_vm7, %v4792_v47 }
 0x643   :  { %2749 = vrot.lane.b32.xlu1 %v2740_v49, %s5627_s21 }
 0x645   :  { %2968 = vrot.lane.b32.xlu0 %v2741_v17, %s5628_s9  ;;  %5317 = vmatmul.mubr.msk.f32.gmra.mxu1 %vm2771_vm7, %v4793_v16 }
 0x646   :  { %5333 = vmatprep.mubr.msk.f32.mxu1 %vm2771_vm7, %v4808_v18 }
 0x647   :  { %2966 = vrot.lane.b32.xlu1 %v2740_v49, %s5628_s9 }
 0x649   :  { %3081 = vrot.lane.b32.xlu0 %v2741_v17, %s5614_s0 }
 0x64b   :  { %3079 = vrot.lane.b32.xlu1 %v2740_v49, %s5614_s0 }
 0x64d   :  { %3299 = vrot.lane.b32.xlu0 %v2741_v17, %s5615_s28 }
 0x64f   :  { %3297 = vrot.lane.b32.xlu1 %v2740_v49, %s5615_s28 }
 0x651   :  { %3411 = vrot.lane.b32.xlu0 %v2741_v17, %s5629_s20 }
 0x653   :  { %3409 = vrot.lane.b32.xlu1 %v2740_v49, %s5629_s20 }
 0x655   :  { %3524 = vrot.lane.b32.xlu0 %v2741_v17, %s5630_s22 }
 0x657   :  { %3522 = vrot.lane.b32.xlu1 %v2740_v49, %s5630_s22 }
 0x659   :  { %3636 = vrot.lane.b32.xlu0 %v2741_v17, %s5631_s23  ;;  %v4821_v17 = vld [vmem:[%s7099_s5 + $0xf8] sm:$0xff] }
 0x65b   :  { %3634 = vrot.lane.b32.xlu1 %v2740_v49, %s5631_s23 }
 0x6af   :  { %v2763_v25 = vpop.permute.xlu0 %2762 }
 0x6b0   :  { %5269 = vmatprep.subr.msk.mxu0 %vm2747_vm9, %v2763_v25 }
 0x6b1   :  { %5270 = vmatpush3.msk.msra.mxu0 %vm2747_vm9, %v2763_v25  ;;  %v2761_v26 = vpop.permute.xlu1 %2760 }
 0x6b2   :  { %5271 = vmatprep.subr.msk.mxu0 %vm2747_vm9, %v2761_v26 }
 0x6b3   :  { %v2752_v31 = vpop.permute.xlu0 %2751  ;;  %5272 = vmatpush3.msk.msra.mxu0 %vm2747_vm9, %v2761_v26 }
 0x6b4   :  { %5274 = vmatmul.mubr.msk.f32.vlgmr.msra.gmra.mxu0 %vm2771_vm7, %v4755_v27  ;;  %5279 = vmatprep.subr.msk.mxu0 %vm6474_vm2, %v2752_v31 }
 0x6b5   :  { %5280 = vmatpush3.msk.msra.mxu0 %vm6474_vm2, %v2752_v31  ;;  %v2750_v32 = vpop.permute.xlu1 %2749  ;;  %5276 = vmatprep.mubr.msk.f32.mxu0 %vm2771_vm7, %v4756_v29 }
 0x6b6   :  { %5281 = vmatprep.subr.msk.mxu0 %vm6474_vm2, %v2750_v32 }
 0x6b7   :  { %v2969_v36 = vpop.permute.xlu0 %2968  ;;  %5282 = vmatpush3.msk.msra.mxu0 %vm6474_vm2, %v2750_v32 }
 0x6b8   :  { %5277 = vmatmul.mubr.msk.f32.gmra.mxu0 %vm2771_vm7, %v4757_v33  ;;  %5289 = vmatprep.subr.msk.mxu0 %vm6502_vm6, %v2969_v36 }
 0x6b9   :  { %v2967_v37 = vpop.permute.xlu1 %2966  ;;  %5283 = vmatprep.mubr.msk.f32.mxu0 %vm2771_vm7, %v2756_v35 }
 0x6bb   :  { %v3082_v39 = vpop.permute.xlu0 %3081 }
 0x6bc   :  { %5284 = vmatmul.mubr.msk.f32.vlgmr.msra.gmra.mxu0 %vm2771_vm7, %v2757_v38 }
 0x6bd   :  { %5290 = vmatpush3.msk.msra.mxu0 %vm6502_vm6, %v2969_v36  ;;  %v3080_v2 = vpop.permute.xlu1 %3079  ;;  %5286 = vmatprep.mubr.msk.f32.mxu0 %vm2771_vm7, %v2758_v14 }
 0x6be   :  { %5291 = vmatprep.subr.msk.mxu0 %vm6502_vm6, %v2967_v37 }
 0x6bf   :  { %5292 = vmatpush3.msk.msra.mxu0 %vm6502_vm6, %v2967_v37  ;;  %v3300_v41 = vpop.permute.xlu0 %3299 }
 0x6c0   :  { %5299 = vmatprep.subr.msk.mxu0 %vm6459_vm12, %v3082_v39  ;;  %5287 = vmatmul.mubr.msk.f32.gmra.mxu0 %vm2771_vm7, %v2759_v40 }
 0x6c1   :  { %v3298_v42 = vpop.permute.xlu1 %3297  ;;  %5293 = vmatprep.mubr.msk.f32.mxu0 %vm2771_vm7, %v4770_v19 }
 0x6c3   :  { %v3412_v44 = vpop.permute.xlu0 %3411 }
 0x6c4   :  { %5294 = vmatmul.mubr.msk.f32.vlgmr.msra.gmra.mxu0 %vm2771_vm7, %v4771_v20  ;;  %5329 = vmatprep.subr.msk.mxu1 %vm6549_vm10, %v3412_v44 }
 0x6c5   :  { %5300 = vmatpush3.msk.msra.mxu0 %vm6459_vm12, %v3082_v39  ;;  %v3410_v46 = vpop.permute.xlu1 %3409  ;;  %5330 = vmatpush3.msk.msra.mxu1 %vm6549_vm10, %v3412_v44 }
 0x6c6   :  { %5301 = vmatprep.subr.msk.mxu0 %vm6459_vm12, %v3080_v2  ;;  %5331 = vmatprep.subr.msk.mxu1 %vm6549_vm10, %v3410_v46 }
 0x6c7   :  { %5302 = vmatpush3.msk.msra.mxu0 %vm6459_vm12, %v3080_v2  ;;  %v3525_v52 = vpop.permute.xlu0 %3524  ;;  %5296 = vmatprep.mubr.msk.f32.mxu0 %vm2771_vm7, %v4772_v45 }
 0x6c8   :  { %5319 = vmatprep.subr.msk.mxu0 %vm6483_vm4, %v3300_v41  ;;  %5332 = vmatpush3.msk.msra.mxu1 %vm6549_vm10, %v3410_v46 }
 0x6c9   :  { %5297 = vmatmul.mubr.msk.f32.gmra.mxu0 %vm2771_vm7, %v4773_v50  ;;  %v3523_v55 = vpop.permute.xlu1 %3522  ;;  %5334 = vmatmul.mubr.msk.f32.vlgmr.msra.gmra.mxu1 %vm2771_vm7, %v4809_v51 }
 0x6ca   :  { %5303 = vmatprep.mubr.msk.f32.mxu0 %vm2771_vm7, %v4780_v53  ;;  %5336 = vmatprep.mubr.msk.f32.mxu1 %vm2771_vm7, %v4810_v54 }
 0x6cb   :  { %v3637_v58 = vpop.permute.xlu0 %3636 }
 0x6cc   :  { %5349 = vmatprep.subr.msk.mxu1 %vm6591_vm11, %v3637_v58 }
 0x6cd   :  { %5304 = vmatmul.mubr.msk.f32.vlgmr.msra.gmra.mxu0 %vm2771_vm7, %v4781_v57  ;;  %v3635_v60 = vpop.permute.xlu1 %3634  ;;  %5350 = vmatpush3.msk.msra.mxu1 %vm6591_vm11, %v3637_v58 }
 0x6ce   :  { %5320 = vmatpush3.msk.msra.mxu0 %vm6483_vm4, %v3300_v41  ;;  %5351 = vmatprep.subr.msk.mxu1 %vm6591_vm11, %v3635_v60 }
 0x6cf   :  { %5321 = vmatprep.subr.msk.mxu0 %vm6483_vm4, %v3298_v42  ;;  %5306 = vmatprep.mubr.msk.f32.mxu0 %vm2771_vm7, %v4782_v59 }
 0x6d0   :  { %5322 = vmatpush3.msk.msra.mxu0 %vm6483_vm4, %v3298_v42  ;;  %5352 = vmatpush3.msk.msra.mxu1 %vm6591_vm11, %v3635_v60 }
 0x6d1   :  { %5339 = vmatprep.subr.msk.mxu0 %vm2748_vm14, %v3525_v52  ;;  %5307 = vmatmul.mubr.msk.f32.gmra.mxu0 %vm2771_vm7, %v4783_v61 }
 0x6d2   :  { %5323 = vmatprep.mubr.msk.f32.mxu0 %vm2771_vm7, %v4798_v62  ;;  %5337 = vmatmul.mubr.msk.f32.gmra.mxu1 %vm2771_vm7, %v4811_v63 }
 0x6d3   :  { %5353 = vmatprep.mubr.msk.f32.mxu1 %vm2771_vm7, %v4828_v7 }
 0x6d5   :  { %5324 = vmatmul.mubr.msk.f32.vlgmr.msra.gmra.mxu0 %vm2771_vm7, %v4799_v8 }
 0x6d6   :  { %5340 = vmatpush3.msk.msra.mxu0 %vm2748_vm14, %v3525_v52  ;;  %5326 = vmatprep.mubr.msk.f32.mxu0 %vm2771_vm7, %v4800_v9 }
 0x6d7   :  { %5341 = vmatprep.subr.msk.mxu0 %vm2748_vm14, %v3523_v55  ;;  %5354 = vmatmul.mubr.msk.f32.vlgmr.msra.gmra.mxu1 %vm2771_vm7, %v4829_v10 }
 0x6d8   :  { %5342 = vmatpush3.msk.msra.mxu0 %vm2748_vm14, %v3523_v55  ;;  %5356 = vmatprep.mubr.msk.f32.mxu1 %vm2771_vm7, %v4830_v11 }
 0x6d9   :  { %5327 = vmatmul.mubr.msk.f32.gmra.mxu0 %vm2771_vm7, %v4801_v12 }
 0x6da   :  { %5343 = vmatprep.mubr.msk.f32.mxu0 %vm2771_vm7, %v4818_v4 }
 0x6db   :  { %5357 = vmatmul.mubr.msk.f32.gmra.mxu1 %vm2771_vm7, %v4831_v1 }
 0x6dd   :  { %5344 = vmatmul.mubr.msk.f32.vlgmr.msra.gmra.mxu0 %vm2771_vm7, %v4819_v0 }
 0x6de   :  { %5346 = vmatprep.mubr.msk.f32.mxu0 %vm2771_vm7, %v4820_v13 }
 0x6e1   :  { %5347 = vmatmul.mubr.msk.f32.gmra.mxu0 %vm2771_vm7, %v4821_v17 }
 0x701   :  { %v5315_v47 = vpop.f32.mrf.mxu1 }
 0x703   :  { %v3274_v21 = vpop.f32.mrf.mxu1 }
 0x705   :  { %v5318_v24 = vpop.f32.mrf.mxu1 }
 0x707   :  { %v3284_v27 = vpop.f32.mrf.mxu1 }
 0x774   :  { %v5275_v3 = vpop.f32.mrf.mxu0 }
 0x776   :  { %v2850_v49 = vpop.f32.mrf.mxu0 }
 0x778   :  { %v5278_v15 = vpop.f32.mrf.mxu0 }
 0x77a   :  { %v2860_v48 = vpop.f32.mrf.mxu0 }
 0x77c   :  { %v5285_v16 = vpop.f32.mrf.mxu0 }
 0x77d   :  { %v2953_v32 = vadd.f32 %v5285_v16, %v5275_v3 }
 0x77e   :  { %v2947_v18 = vpop.f32.mrf.mxu0 }
 0x77f   :  { %v2948_v35 = vadd.f32 %v2947_v18, %v2850_v49  ;;  %v6699_v18 = vshrl.u32 %v106_v5, 7  ;;  %v6716_v5 = vmul.u32 16, %v5760_v6  ;;  %v5632_v6 = vmov 1.0  }
 0x780   :  { %v5288_v22 = vpop.f32.mrf.mxu0 }
 0x781   :  { %v2963_v38 = vadd.f32 %v5288_v22, %v5278_v15  ;;  %v3771_v22 = vld [vmem:[%s7100_s6] sm:$0xff] }
 0x782   :  { %v2957_v23 = vpop.f32.mrf.mxu0 }
 0x783   :  { %v2958_v19 = vadd.f32 %v2957_v23, %v2860_v48  ;;  %v3774_v23 = vld [vmem:[%s7100_s6 + $0x18] sm:$0xff] }
 0x784   :  { %v5295_v25 = vpop.f32.mrf.mxu0 }
 0x785   :  { %v3076_v36 = vadd.f32 %v5295_v25, %v2953_v32  ;;  %v6719_v25 = vadd.s32 112, %v6699_v18  ;;  %v6769_v32 = vadd.s32 72, %v6699_v18 }
 0x786   :  { %v3056_v26 = vpop.f32.mrf.mxu0 }
 0x787   :  { %v3075_v14 = vadd.f32 %v3056_v26, %v2948_v35  ;;  %v6722_v26 = vadd.s32 104, %v6699_v18  ;;  %vm3835_vm5 = vcmp.eq.s32.totalorder %v6719_v25, %v6716_v5  ;;  %vm3830_vm6 = vcmp.eq.s32.totalorder %v6769_v32, %v6716_v5 }
 0x788   :  { %v6802_v35 = vadd.s32 48, %v6699_v18 }
 0x789   :  { %v5298_v28 = vpop.f32.mrf.mxu0  ;;  %v5335_v29 = vpop.f32.mrf.mxu1  ;;  %vm3834_vm3 = vcmp.eq.s32.totalorder %v6722_v26, %v6716_v5 }
 0x78a   :  { %v3078_v41 = vadd.f32 %v5298_v28, %v2963_v38  ;;  %v6730_v28 = vadd.s32 2, %v6716_v5  ;;  %v6854_v38 = vadd.s32 24, %v6699_v18 }
 0x78b   :  { %v3066_v30 = vpop.f32.mrf.mxu0  ;;  %v3499_v33 = vpop.f32.mrf.mxu1 }
 0x78c   :  { %v3077_v44 = vadd.f32 %v3066_v30, %v2958_v19  ;;  %vm3955_vm1 = vcmp.eq.s32.totalorder %v6719_v25, %v6730_v28  ;;  %v6747_v30 = vadd.s32 88, %v6699_v18  ;;  %vm3954_vm8 = vcmp.eq.s32.totalorder %v6722_v26, %v6730_v28 }
 0x78d   :  { %v5305_v31 = vpop.f32.mrf.mxu0  ;;  %vm3950_vm14 = vcmp.eq.s32.totalorder %v6769_v32, %v6730_v28 }
 0x78e   :  { %v3188_v39 = vadd.f32 %v5305_v31, %v3076_v36  ;;  %v6758_v31 = vadd.s32 80, %v6699_v18  ;;  %vm3832_vm9 = vcmp.eq.s32.totalorder %v6747_v30, %v6716_v5  ;;  %vm3952_vm12 = vcmp.eq.s32.totalorder %v6747_v30, %v6730_v28 }
 0x78f   :  { %v3168_v34 = vpop.f32.mrf.mxu0  ;;  %v6813_v36 = vadd.s32 40, %v6699_v18 }
 0x790   :  { %v3187_v42 = vadd.f32 %v3168_v34, %v3075_v14  ;;  %v3294_v45 = vadd.f32 %v5315_v47, %v3188_v39  ;;  %vm3831_vm2 = vcmp.eq.s32.totalorder %v6758_v31, %v6716_v5  ;;  %vm3951_vm4 = vcmp.eq.s32.totalorder %v6758_v31, %v6730_v28 }
 0x791   :  { %v5308_v37 = vpop.f32.mrf.mxu0  ;;  %v6791_v34 = vadd.s32 56, %v6699_v18  ;;  %v6861_v14 = vadd.s32 16, %v6699_v18  ;;  %v6872_v39 = vadd.s32 8, %v6699_v18 }
 0x792   :  { %v5338_v2 = vpop.f32.mrf.mxu1  ;;  %v3190_v46 = vadd.f32 %v5308_v37, %v3078_v41  ;;  %v3293_v51 = vadd.f32 %v3274_v21, %v3187_v42  ;;  %v3772_v21 = vld [vmem:[%s7100_s6 + $0x8] sm:$0xff]  ;;  %v6824_v37 = vadd.s32 32, %v6699_v18 }
 0x793   :  { %v3178_v40 = vpop.f32.mrf.mxu0 }
 0x794   :  { %v3509_v43 = vpop.f32.mrf.mxu1  ;;  %v3189_v52 = vadd.f32 %v3178_v40, %v3077_v44  ;;  %v3296_v56 = vadd.f32 %v5318_v24, %v3190_v46  ;;  %v6713_v24 = vadd.s32 120, %v6699_v18  ;;  %v4632_v46 = vld [vmem:[%s7101_s8] sm:$0xff] }
 0x795   :  { %v5325_v20 = vpop.f32.mrf.mxu0 }
 0x796   :  { %v3406_v53 = vadd.f32 %v5325_v20, %v3294_v45  ;;  %v3295_v59 = vadd.f32 %v3284_v27, %v3189_v52  ;;  %v3773_v27 = vld [vmem:[%s7100_s6 + $0x10] sm:$0xff]  ;;  %vm3836_vm13 = vcmp.eq.s32.totalorder %v6713_v24, %v6716_v5  ;;  %vm3956_vm0 = vcmp.eq.s32.totalorder %v6713_v24, %v6730_v28  ;;  %v4633_v45 = vld [vmem:[%s7101_s8 + $0x8] sm:$0x3] }
 0x797   :  { %v3386_v50 = vpop.f32.mrf.mxu0  ;;  %v5355_v55 = vpop.f32.mrf.mxu1  ;;  %5359 = vmatprep.subr.msk.mxu0 %vm3836_vm13, %v5632_v6  ;;  %5397 = vmatprep.subr.msk.mxu1 %vm3956_vm0, %v5632_v6 }
 0x798   :  { %v3405_v57 = vadd.f32 %v3386_v50, %v3293_v51  ;;  %v3519_v60 = vadd.f32 %v5335_v29, %v3406_v53  ;;  %v6736_v29 = vadd.s32 96, %v6699_v18  ;;  %5360 = vmatpush3.msk.msra.mxu0 %vm3836_vm13, %v5632_v6  ;;  %5398 = vmatpush3.msk.msra.mxu1 %vm3956_vm0, %v5632_v6  ;;  %vm3828_vm13 = vcmp.eq.s32.totalorder %v6791_v34, %v6716_v5 }
 0x799   :  { %v5328_v54 = vpop.f32.mrf.mxu0  ;;  %v3724_v63 = vpop.f32.mrf.mxu1  ;;  %5361 = vmatprep.subr.msk.mxu0 %vm3835_vm5, %v5632_v6  ;;  %5399 = vmatprep.subr.msk.mxu1 %vm3955_vm1, %v5632_v6  ;;  %vm3827_vm0 = vcmp.eq.s32.totalorder %v6802_v35, %v6716_v5 }
 0x79a   :  { %v3408_v61 = vadd.f32 %v5328_v54, %v3296_v56  ;;  %v3518_v7 = vadd.f32 %v3499_v33, %v3405_v57  ;;  %5362 = vmatpush3.msk.msra.mxu0 %vm3835_vm5, %v5632_v6  ;;  %vm3833_vm15 = vcmp.eq.s32.totalorder %v6736_v29, %v6716_v5  ;;  %5400 = vmatpush3.msk.msra.mxu1 %vm3955_vm1, %v5632_v6  ;;  %v6780_v33 = vadd.s32 64, %v6699_v18 }
 0x79b   :  { %v3396_v58 = vpop.f32.mrf.mxu0  ;;  %v5358_v0 = vpop.f32.mrf.mxu1  ;;  %5363 = vmatprep.subr.msk.mxu0 %vm3834_vm3, %v5632_v6  ;;  %vm3953_vm7 = vcmp.eq.s32.totalorder %v6736_v29, %v6730_v28  ;;  %5401 = vmatprep.subr.msk.mxu1 %vm3954_vm8, %v5632_v6  ;;  %vm3948_vm5 = vcmp.eq.s32.totalorder %v6791_v34, %v6730_v28  ;;  %vm3947_vm1 = vcmp.eq.s32.totalorder %v6802_v35, %v6730_v28 }
 0x79c   :  { %v3407_v8 = vadd.f32 %v3396_v58, %v3295_v59  ;;  %v3521_v11 = vadd.f32 %v5338_v2, %v3408_v61  ;;  %5364 = vmatpush3.msk.msra.mxu0 %vm3834_vm3, %v5632_v6  ;;  %5402 = vmatpush3.msk.msra.mxu1 %vm3954_vm8, %v5632_v6  ;;  %vm3829_vm10 = vcmp.eq.s32.totalorder %v6780_v33, %v6716_v5 }
 0x79d   :  { %v5345_v62 = vpop.f32.mrf.mxu0  ;;  %v3734_v47 = vpop.f32.mrf.mxu1  ;;  %5365 = vmatprep.subr.msk.mxu0 %vm3833_vm15, %v5632_v6  ;;  %5403 = vmatprep.subr.msk.mxu1 %vm3953_vm7, %v5632_v6  ;;  %vm3949_vm11 = vcmp.eq.s32.totalorder %v6780_v33, %v6730_v28  ;;  %vm3826_vm3 = vcmp.eq.s32.totalorder %v6813_v36, %v6716_v5  ;;  %vm3946_vm8 = vcmp.eq.s32.totalorder %v6813_v36, %v6730_v28 }
 0x79e   :  { %v3631_v9 = vadd.f32 %v5345_v62, %v3519_v60  ;;  %v3520_v13 = vadd.f32 %v3509_v43, %v3407_v8  ;;  %5366 = vmatpush3.msk.msra.mxu0 %vm3833_vm15, %v5632_v6  ;;  %5404 = vmatpush3.msk.msra.mxu1 %vm3953_vm7, %v5632_v6  ;;  %vm3825_vm15 = vcmp.eq.s32.totalorder %v6824_v37, %v6716_v5 }
 0x79f   :  { %v3611_v10 = vpop.f32.mrf.mxu0  ;;  %5367 = vmatprep.subr.msk.mxu0 %vm3832_vm9, %v5632_v6  ;;  %5405 = vmatprep.subr.msk.mxu1 %vm3952_vm12, %v5632_v6  ;;  %vm3945_vm7 = vcmp.eq.s32.totalorder %v6824_v37, %v6730_v28 }
 0x7a0   :  { %v3630_v12 = vadd.f32 %v3611_v10, %v3518_v7  ;;  %v6684_v4 = vadd.f32 %v5355_v55, %v3631_v9  ;;  %5368 = vmatpush3.msk.msra.mxu0 %vm3832_vm9, %v5632_v6  ;;  %5406 = vmatpush3.msk.msra.mxu1 %vm3952_vm12, %v5632_v6  ;;  %vm3824_vm9 = vcmp.eq.s32.totalorder %v6854_v38, %v6716_v5 }
 0x7a1   :  { %v5348_v1 = vpop.f32.mrf.mxu0  ;;  %5369 = vmatprep.subr.msk.mxu0 %vm3831_vm2, %v5632_v6  ;;  %5407 = vmatprep.subr.msk.mxu1 %vm3951_vm4, %v5632_v6  ;;  %vm3944_vm12 = vcmp.eq.s32.totalorder %v6854_v38, %v6730_v28 }
 0x7a2   :  { %v3633_v17 = vadd.f32 %v5348_v1, %v3521_v11  ;;  %v6686_v3 = vadd.f32 %v3724_v63, %v3630_v12  ;;  %3749 = vrot.lane.b32.xlu1 %v6684_v4, %s5615_s28  ;;  %5370 = vmatpush3.msk.msra.mxu0 %vm3831_vm2, %v5632_v6  ;;  %vm3823_vm2 = vcmp.eq.s32.totalorder %v6861_v14, %v6716_v5  ;;  %v3938_v1 = vld [vmem:[%s7102_s7] sm:$0xff] }
 0x7a3   :  { %v3621_v49 = vpop.f32.mrf.mxu0  ;;  %5408 = vmatpush3.msk.msra.mxu1 %vm3951_vm4, %v5632_v6  ;;  %5371 = vmatprep.subr.msk.mxu0 %vm3830_vm6, %v5632_v6  ;;  %vm3943_vm4 = vcmp.eq.s32.totalorder %v6861_v14, %v6730_v28 }
 0x7a4   :  { %v3632_v15 = vadd.f32 %v3621_v49, %v3520_v13  ;;  %v6690_v48 = vadd.f32 %v5358_v0, %v3633_v17  ;;  %3747 = vrot.lane.b32.xlu0 %v6686_v3, %s5615_s28  ;;  %5409 = vmatprep.subr.msk.mxu1 %vm3950_vm14, %v5632_v6 }
 0x7a5   :  { %5372 = vmatpush3.msk.msra.mxu0 %vm3830_vm6, %v5632_v6  ;;  %5410 = vmatpush3.msk.msra.mxu1 %vm3950_vm14, %v5632_v6  ;;  %vm3822_vm6 = vcmp.eq.s32.totalorder %v6872_v39, %v6716_v5  ;;  %vm3942_vm14 = vcmp.eq.s32.totalorder %v6872_v39, %v6730_v28 }
 0x7a6   :  { %v6694_v16 = vadd.f32 %v3734_v47, %v3632_v15  ;;  %3753 = vrot.lane.b32.xlu1 %v6690_v48, %s5615_s28  ;;  %5373 = vmatprep.subr.msk.mxu0 %vm3829_vm10, %v5632_v6 }
 0x7a7   :  { %5411 = vmatprep.subr.msk.mxu1 %vm3949_vm11, %v5632_v6  ;;  %5374 = vmatpush3.msk.msra.mxu0 %vm3829_vm10, %v5632_v6  ;;  %vm3821_vm10 = vcmp.eq.s32.totalorder %v6699_v18, %v6716_v5 }
 0x7a8   :  { %3751 = vrot.lane.b32.xlu0 %v6694_v16, %s5615_s28  ;;  %5412 = vmatpush3.msk.msra.mxu1 %vm3949_vm11, %v5632_v6  ;;  %vm3941_vm11 = vcmp.eq.s32.totalorder %v6699_v18, %v6730_v28 }
 0x7a9   :  { %5375 = vmatprep.subr.msk.mxu0 %vm3828_vm13, %v5632_v6  ;;  %5413 = vmatprep.subr.msk.mxu1 %vm3948_vm5, %v5632_v6 }
 0x7aa   :  { %3782 = vperm.xlu1 %5609, %v3772_v21   ;;  %5376 = vmatpush3.msk.msra.mxu0 %vm3828_vm13, %v5632_v6  ;;  %vm4061_vm13 = vcmask 261120   ;;  %v4871_v21 = vld [vmem:[%s7102_s7 + $0x18] sm:$0x3] }
 0x7ab   :  { %5414 = vmatpush3.msk.msra.mxu1 %vm3948_vm5, %v5632_v6  ;;  %5377 = vmatprep.subr.msk.mxu0 %vm3827_vm0, %v5632_v6 }
 0x7ac   :  { %3777 = vperm.xlu0 %5598, %v3771_v22   ;;  %5415 = vmatprep.subr.msk.mxu1 %vm3947_vm1, %v5632_v6  ;;  %v3939_v22 = vld [vmem:[%s7102_s7 + $0x8] sm:$0x3] }
 0x7ad   :  { %5378 = vmatpush3.msk.msra.mxu0 %vm3827_vm0, %v5632_v6  ;;  %5416 = vmatpush3.msk.msra.mxu1 %vm3947_vm1, %v5632_v6 }
 0x7ae   :  { %3792 = vperm.xlu1 %5609, %v3774_v23   ;;  %5379 = vmatprep.subr.msk.mxu0 %vm3826_vm3, %v5632_v6  ;;  %v4892_v23 = vld [vmem:[%s7102_s7 + $0x20] sm:$0xff] }
 0x7af   :  { %5417 = vmatprep.subr.msk.mxu1 %vm3946_vm8, %v5632_v6  ;;  %5380 = vmatpush3.msk.msra.mxu0 %vm3826_vm3, %v5632_v6 }
 0x7b0   :  { %3787 = vperm.xlu0 %5598, %v3773_v27   ;;  %5418 = vmatpush3.msk.msra.mxu1 %vm3946_vm8, %v5632_v6 }
 0x7b1   :  { %5381 = vmatprep.subr.msk.mxu0 %vm3825_vm15, %v5632_v6  ;;  %5419 = vmatprep.subr.msk.mxu1 %vm3945_vm7, %v5632_v6 }
 0x7b2   :  { %5382 = vmatpush3.msk.msra.mxu0 %vm3825_vm15, %v5632_v6  ;;  %5420 = vmatpush3.msk.msra.mxu1 %vm3945_vm7, %v5632_v6 }
 0x7b3   :  { %5383 = vmatprep.subr.msk.mxu0 %vm3824_vm9, %v5632_v6  ;;  %5421 = vmatprep.subr.msk.mxu1 %vm3944_vm12, %v5632_v6 }
 0x7b4   :  { %5384 = vmatpush3.msk.msra.mxu0 %vm3824_vm9, %v5632_v6  ;;  %5422 = vmatpush3.msk.msra.mxu1 %vm3944_vm12, %v5632_v6 }
 0x7b5   :  { %5385 = vmatprep.subr.msk.mxu0 %vm3823_vm2, %v5632_v6  ;;  %5423 = vmatprep.subr.msk.mxu1 %vm3943_vm4, %v5632_v6 }
 0x7b6   :  { %5386 = vmatpush3.msk.msra.mxu0 %vm3823_vm2, %v5632_v6  ;;  %5424 = vmatpush3.msk.msra.mxu1 %vm3943_vm4, %v5632_v6 }
 0x7b7   :  { %5387 = vmatprep.subr.msk.mxu0 %vm3822_vm6, %v5632_v6  ;;  %5425 = vmatprep.subr.msk.mxu1 %vm3942_vm14, %v5632_v6 }
 0x7b8   :  { %5388 = vmatpush3.msk.msra.mxu0 %vm3822_vm6, %v5632_v6  ;;  %5426 = vmatpush3.msk.msra.mxu1 %vm3942_vm14, %v5632_v6 }
 0x7b9   :  { %5389 = vmatprep.subr.msk.mxu0 %vm3821_vm10, %v5632_v6  ;;  %5427 = vmatprep.subr.msk.mxu1 %vm3941_vm11, %v5632_v6 }
 0x7ba   :  { %5390 = vmatpush3.msk.msra.mxu0 %vm3821_vm10, %v5632_v6  ;;  %5428 = vmatpush3.msk.msra.mxu1 %vm3941_vm11, %v5632_v6 }
 0x814   :  { %v3750_v2 = vpop.permute.xlu1 %3749 }
 0x815   :  { %v3756_v40 = vmax.f32 %v6684_v4, %v3750_v2  ;;  %v4870_v4 = vld [vmem:[%s7102_s7 + $0x10] sm:$0xff] }
 0x816   :  { %v3748_v19 = vpop.permute.xlu0 %3747 }
 0x817   :  { %v3755_v41 = vmax.f32 %v6686_v3, %v3748_v19  ;;  %3761 = vrot.lane.b32.xlu1 %v3756_v40, %s5630_s22 }
 0x818   :  { %v3754_v42 = vpop.permute.xlu1 %3753 }
 0x819   :  { %v3758_v20 = vmax.f32 %v6690_v48, %v3754_v42  ;;  %3759 = vrot.lane.b32.xlu0 %v3755_v41, %s5630_s22 }
 0x81a   :  { %v3752_v43 = vpop.permute.xlu0 %3751 }
 0x81b   :  { %v3757_v44 = vmax.f32 %v6694_v16, %v3752_v43  ;;  %3765 = vrot.lane.b32.xlu1 %v3758_v20, %s5630_s22  ;;  %v6933_v16 = vadd.s32 8, %v6716_v5  ;;  %v4428_v43 = vadd.s32 10, %v6716_v5 }
 0x81d   :  { %3763 = vrot.lane.b32.xlu0 %v3757_v44, %s5630_s22  ;;  %vm4240_vm5 = vcmp.eq.s32.totalorder %v6713_v24, %v6933_v16  ;;  %vm4239_vm0 = vcmp.eq.s32.totalorder %v6719_v25, %v6933_v16  ;;  %vm4238_vm1 = vcmp.eq.s32.totalorder %v6722_v26, %v6933_v16  ;;  %vm4237_vm3 = vcmp.eq.s32.totalorder %v6736_v29, %v6933_v16 }
 0x81e   :  { %vm4236_vm8 = vcmp.eq.s32.totalorder %v6747_v30, %v6933_v16  ;;  %vm4235_vm15 = vcmp.eq.s32.totalorder %v6758_v31, %v6933_v16  ;;  %vm4234_vm7 = vcmp.eq.s32.totalorder %v6769_v32, %v6933_v16  ;;  %vm4233_vm9 = vcmp.eq.s32.totalorder %v6780_v33, %v6933_v16 }
 0x81f   :  { %4641 = vperm.xlu1 %5609, %v4633_v45   ;;  %vm4232_vm12 = vcmp.eq.s32.totalorder %v6791_v34, %v6933_v16  ;;  %vm4231_vm2 = vcmp.eq.s32.totalorder %v6802_v35, %v6933_v16  ;;  %vm4230_vm4 = vcmp.eq.s32.totalorder %v6813_v36, %v6933_v16  ;;  %vm4229_vm6 = vcmp.eq.s32.totalorder %v6824_v37, %v6933_v16 }
 0x820   :  { %vm4228_vm14 = vcmp.eq.s32.totalorder %v6854_v38, %v6933_v16  ;;  %vm4227_vm10 = vcmp.eq.s32.totalorder %v6861_v14, %v6933_v16  ;;  %vm4226_vm11 = vcmp.eq.s32.totalorder %v6872_v39, %v6933_v16 }
 0x821   :  { %4636 = vperm.xlu0 %5598, %v4632_v46  }
 0x825   :  { %v3783_v50 = vpop.permute.xlu1 %3782 }
 0x827   :  { %v3778_v51 = vpop.permute.xlu0 %3777 }
 0x829   :  { %v3793_v52 = vpop.permute.xlu1 %3792 }
 0x82b   :  { %v3788_v53 = vpop.permute.xlu0 %3787 }
 0x889   :  { %v3762_v54 = vpop.permute.xlu1 %3761 }
 0x88a   :  { %v3768_v55 = vmax.f32 %v3756_v40, %v3762_v54 }
 0x88b   :  { %v3760_v56 = vpop.permute.xlu0 %3759 }
 0x88c   :  { %v3767_v57 = vmax.f32 %v3755_v41, %v3760_v56  ;;  %v3796_v58 = vadd.f32 %v3783_v50, %v3768_v55 }
 0x88d   :  { %v3766_v59 = vpop.permute.xlu1 %3765 }
 0x88e   :  { %v3795_v60 = vadd.f32 %v3778_v51, %v3767_v57  ;;  %v3770_v61 = vmax.f32 %v3758_v20, %v3766_v59  ;;  %v6910_v8 = vmax.f32 %v3796_v58, 0.0 }
 0x88f   :  { %v3764_v62 = vpop.permute.xlu0 %3763 }
 0x890   :  { %v6908_v63 = vmax.f32 %v3795_v60, 0.0  ;;  %v3769_v7 = vmax.f32 %v3757_v44, %v3764_v62  ;;  %v3798_v9 = vadd.f32 %v3793_v52, %v3770_v61  ;;  %v4893_v44 = vld [vmem:[%s7102_s7 + $0x28] sm:$0x3] }
 0x892   :  { %v3797_v10 = vadd.f32 %v3788_v53, %v3769_v7  ;;  %5391 = vmatprep.mubr.f32.mxu0 %v6908_v63  ;;  %5429 = vmatprep.mubr.f32.mxu1 %v6908_v63  ;;  %v6918_v12 = vmax.f32 %v3798_v9, 0.0 }
 0x893   :  { %5392 = vmatmul.mubr.f32.vlgmr.msra.gmra.mxu0 %v6910_v8  ;;  %5430 = vmatmul.mubr.f32.vlgmr.msra.gmra.mxu1 %v6910_v8 }
 0x894   :  { %v6916_v11 = vmax.f32 %v3797_v10, 0.0 }
 0x896   :  { %5394 = vmatprep.mubr.f32.mxu0 %v6916_v11  ;;  %5432 = vmatprep.mubr.f32.mxu1 %v6916_v11 }
 0x897   :  { %5395 = vmatmul.mubr.f32.gmra.mxu0 %v6918_v12  ;;  %5433 = vmatmul.mubr.f32.gmra.mxu1 %v6918_v12 }
 0x898   :  { %5443 = vmatprep.mubr.msk.f32.mxu0 %vm4061_vm13, %v4870_v4  ;;  %5454 = vmatprep.mubr.msk.f32.mxu1 %vm4061_vm13, %v3938_v1 }
 0x89c   :  { %v4637_v45 = vpop.permute.xlu0 %4636 }
 0x953   :  { %v5393_v0 = vpop.f32.mrf.mxu0  ;;  %v5431_v13 = vpop.f32.mrf.mxu1 }
 0x955   :  { %v3919_v17 = vpop.f32.mrf.mxu0  ;;  %v4039_v3 = vpop.f32.mrf.mxu1 }
 0x957   :  { %v5396_v49 = vpop.f32.mrf.mxu0  ;;  %v5434_v15 = vpop.f32.mrf.mxu1 }
 0x958   :  { %5435 = vmatprep.subr.mxu0 %v5434_v15  ;;  %5446 = vmatprep.subr.mxu1 %v5396_v49 }
 0x959   :  { %v3929_v48 = vpop.f32.mrf.mxu0  ;;  %v4049_v47 = vpop.f32.mrf.mxu1  ;;  %5436 = vmatpush3.msra.mxu0 %v5434_v15  ;;  %5447 = vmatpush3.msra.mxu1 %v5396_v49 }
 0x95a   :  { %5437 = vmatprep.subr.mxu0 %v4049_v47  ;;  %5448 = vmatprep.subr.mxu1 %v3929_v48 }
 0x95b   :  { %5438 = vmatpush3.msra.mxu0 %v4049_v47  ;;  %5449 = vmatpush3.msra.mxu1 %v3929_v48 }
 0x95c   :  { %5439 = vmatprep.subr.mxu0 %v5431_v13  ;;  %5450 = vmatprep.subr.mxu1 %v5393_v0 }
 0x95d   :  { %5440 = vmatpush3.msra.mxu0 %v5431_v13  ;;  %5451 = vmatpush3.msra.mxu1 %v5393_v0 }
 0x95e   :  { %5441 = vmatprep.subr.mxu0 %v4039_v3  ;;  %5452 = vmatprep.subr.mxu1 %v3919_v17 }
 0x95f   :  { %5442 = vmatpush3.msra.mxu0 %v4039_v3  ;;  %5453 = vmatpush3.msra.mxu1 %v3919_v17 }
 0x960   :  { %5444 = vmatmul.mubr.msk.f32.vlgmr.msra.gmra.mxu0 %vm4061_vm13, %v4871_v21  ;;  %5457 = vmatprep.subr.msk.mxu0 %vm4240_vm5, %v5632_v6 }
 0x961   :  { %5455 = vmatmul.mubr.msk.f32.vlgmr.msra.gmra.mxu1 %vm4061_vm13, %v3939_v22  ;;  %5458 = vmatpush3.msk.msra.mxu0 %vm4240_vm5, %v5632_v6  ;;  %vm4225_vm5 = vcmp.eq.s32.totalorder %v6699_v18, %v6933_v16 }
 0x962   :  { %5489 = vmatprep.mubr.f32.mxu0 %v6908_v63  ;;  %5459 = vmatprep.subr.msk.mxu0 %vm4239_vm0, %v5632_v6 }
 0x963   :  { %5460 = vmatpush3.msk.msra.mxu0 %vm4239_vm0, %v5632_v6  ;;  %5503 = vmatprep.mubr.msk.f32.mxu1 %vm4061_vm13, %v4892_v23  ;;  %vm4444_vm0 = vcmp.eq.s32.totalorder %v6713_v24, %v4428_v43  ;;  %v4912_v24 = vld [vmem:[%s7102_s7 + $0x30] sm:$0xff] }
 0x964   :  { %5461 = vmatprep.subr.msk.mxu0 %vm4238_vm1, %v5632_v6 }
 0x965   :  { %5462 = vmatpush3.msk.msra.mxu0 %vm4238_vm1, %v5632_v6  ;;  %vm4443_vm1 = vcmp.eq.s32.totalorder %v6719_v25, %v4428_v43 }
 0x966   :  { %5463 = vmatprep.subr.msk.mxu0 %vm4237_vm3, %v5632_v6 }
 0x967   :  { %5464 = vmatpush3.msk.msra.mxu0 %vm4237_vm3, %v5632_v6  ;;  %vm4442_vm3 = vcmp.eq.s32.totalorder %v6722_v26, %v4428_v43 }
 0x968   :  { %5465 = vmatprep.subr.msk.mxu0 %vm4236_vm8, %v5632_v6 }
 0x969   :  { %5466 = vmatpush3.msk.msra.mxu0 %vm4236_vm8, %v5632_v6  ;;  %vm4441_vm8 = vcmp.eq.s32.totalorder %v6736_v29, %v4428_v43 }
 0x96a   :  { %5467 = vmatprep.subr.msk.mxu0 %vm4235_vm15, %v5632_v6 }
 0x96b   :  { %5468 = vmatpush3.msk.msra.mxu0 %vm4235_vm15, %v5632_v6  ;;  %vm4440_vm15 = vcmp.eq.s32.totalorder %v6747_v30, %v4428_v43 }
 0x96c   :  { %5469 = vmatprep.subr.msk.mxu0 %vm4234_vm7, %v5632_v6 }
 0x96d   :  { %5470 = vmatpush3.msk.msra.mxu0 %vm4234_vm7, %v5632_v6  ;;  %vm4439_vm7 = vcmp.eq.s32.totalorder %v6758_v31, %v4428_v43 }
 0x96e   :  { %5471 = vmatprep.subr.msk.mxu0 %vm4233_vm9, %v5632_v6 }
 0x96f   :  { %5472 = vmatpush3.msk.msra.mxu0 %vm4233_vm9, %v5632_v6  ;;  %vm4438_vm9 = vcmp.eq.s32.totalorder %v6769_v32, %v4428_v43 }
 0x970   :  { %5473 = vmatprep.subr.msk.mxu0 %vm4232_vm12, %v5632_v6 }
 0x971   :  { %5474 = vmatpush3.msk.msra.mxu0 %vm4232_vm12, %v5632_v6  ;;  %vm4437_vm12 = vcmp.eq.s32.totalorder %v6780_v33, %v4428_v43 }
 0x972   :  { %5475 = vmatprep.subr.msk.mxu0 %vm4231_vm2, %v5632_v6 }
 0x973   :  { %5476 = vmatpush3.msk.msra.mxu0 %vm4231_vm2, %v5632_v6  ;;  %vm4436_vm2 = vcmp.eq.s32.totalorder %v6791_v34, %v4428_v43  ;;  %v4913_v34 = vld [vmem:[%s7102_s7 + $0x38] sm:$0x3] }
 0x974   :  { %5477 = vmatprep.subr.msk.mxu0 %vm4230_vm4, %v5632_v6 }
 0x975   :  { %5478 = vmatpush3.msk.msra.mxu0 %vm4230_vm4, %v5632_v6  ;;  %vm4435_vm4 = vcmp.eq.s32.totalorder %v6802_v35, %v4428_v43 }
 0x976   :  { %5479 = vmatprep.subr.msk.mxu0 %vm4229_vm6, %v5632_v6 }
 0x977   :  { %5480 = vmatpush3.msk.msra.mxu0 %vm4229_vm6, %v5632_v6  ;;  %vm4434_vm6 = vcmp.eq.s32.totalorder %v6813_v36, %v4428_v43 }
 0x978   :  { %5481 = vmatprep.subr.msk.mxu0 %vm4228_vm14, %v5632_v6 }
 0x979   :  { %5482 = vmatpush3.msk.msra.mxu0 %vm4228_vm14, %v5632_v6  ;;  %vm4433_vm14 = vcmp.eq.s32.totalorder %v6824_v37, %v4428_v43  ;;  %v4642_v37 = vpop.permute.xlu1 %4641 }
 0x97a   :  { %5483 = vmatprep.subr.msk.mxu0 %vm4227_vm10, %v5632_v6 }
 0x97b   :  { %5484 = vmatpush3.msk.msra.mxu0 %vm4227_vm10, %v5632_v6  ;;  %vm4432_vm10 = vcmp.eq.s32.totalorder %v6854_v38, %v4428_v43 }
 0x97c   :  { %5485 = vmatprep.subr.msk.mxu0 %vm4226_vm11, %v5632_v6 }
 0x97d   :  { %5486 = vmatpush3.msk.msra.mxu0 %vm4226_vm11, %v5632_v6  ;;  %vm4431_vm11 = vcmp.eq.s32.totalorder %v6861_v14, %v4428_v43 }
 0x97e   :  { %5487 = vmatprep.subr.msk.mxu0 %vm4225_vm5, %v5632_v6 }
 0x97f   :  { %5488 = vmatpush3.msk.msra.mxu0 %vm4225_vm5, %v5632_v6  ;;  %vm4430_vm5 = vcmp.eq.s32.totalorder %v6872_v39, %v4428_v43 }
 0x980   :  { %5490 = vmatmul.mubr.f32.vlgmr.msra.gmra.mxu0 %v6910_v8 }
 0x981   :  { %5492 = vmatprep.mubr.f32.mxu0 %v6916_v11 }
 0x984   :  { %5493 = vmatmul.mubr.f32.gmra.mxu0 %v6918_v12 }
 0x985   :  { %5552 = vmatprep.mubr.msk.f32.mxu0 %vm4061_vm13, %v4912_v24 }
 0xa20   :  { %v5445_v27 = vpop.f32.mrf.mxu0 }
 0xa21   :  { %v5456_v28 = vpop.f32.mrf.mxu1 }
 0xa22   :  { %v7015_v2 = vadd.f32 %v5456_v28, %v5445_v27  ;;  %v7017_v40 = vpop.f32.mrf.mxu0 }
 0xa40   :  { %v5491_v19 = vpop.f32.mrf.mxu0 }
 0xa42   :  { %v4323_v41 = vpop.f32.mrf.mxu0 }
 0xa44   :  { %v5494_v42 = vpop.f32.mrf.mxu0 }
 0xa45   :  { %5495 = vmatprep.subr.mxu1 %v5494_v42 }
 0xa46   :  { %v4333_v20 = vpop.f32.mrf.mxu0  ;;  %5496 = vmatpush3.msra.mxu1 %v5494_v42 }
 0xa47   :  { %5497 = vmatprep.subr.mxu1 %v4333_v20 }
 0xa48   :  { %5498 = vmatpush3.msra.mxu1 %v4333_v20 }
 0xa49   :  { %5499 = vmatprep.subr.mxu1 %v5491_v19 }
 0xa4a   :  { %5500 = vmatpush3.msra.mxu1 %v5491_v19 }
 0xa4b   :  { %5501 = vmatprep.subr.mxu1 %v4323_v41 }
 0xa4c   :  { %5502 = vmatpush3.msra.mxu1 %v4323_v41 }
 0xa4d   :  { %5504 = vmatmul.mubr.msk.f32.vlgmr.msra.gmra.mxu1 %vm4061_vm13, %v4893_v44  ;;  %5506 = vmatprep.subr.msk.mxu1 %vm4444_vm0, %v5632_v6 }
 0xa4e   :  { %5507 = vmatpush3.msk.msra.mxu1 %vm4444_vm0, %v5632_v6  ;;  %5538 = vmatprep.mubr.f32.mxu1 %v6908_v63  ;;  %vm4429_vm0 = vcmp.eq.s32.totalorder %v6699_v18, %v4428_v43  ;;  %v4215_v18 = vpop.f32.mrf.mxu1 }
 0xa4f   :  { %5508 = vmatprep.subr.msk.mxu1 %vm4443_vm1, %v5632_v6  ;;  %v4216_v25 = vadd.f32 %v4215_v18, %v7017_v40 }
 0xa50   :  { %5509 = vmatpush3.msk.msra.mxu1 %vm4443_vm1, %v5632_v6  ;;  %vm4648_vm1 = vcmask 9216  }
 0xa51   :  { %5510 = vmatprep.subr.msk.mxu1 %vm4442_vm3, %v5632_v6 }
 0xa52   :  { %5511 = vmatpush3.msk.msra.mxu1 %vm4442_vm3, %v5632_v6  ;;  %vm4646_vm3 = vcmask 15360  }
 0xa53   :  { %5512 = vmatprep.subr.msk.mxu1 %vm4441_vm8, %v5632_v6 }
 0xa54   :  { %5513 = vmatpush3.msk.msra.mxu1 %vm4441_vm8, %v5632_v6 }
 0xa55   :  { %5514 = vmatprep.subr.msk.mxu1 %vm4440_vm15, %v5632_v6 }
 0xa56   :  { %5515 = vmatpush3.msk.msra.mxu1 %vm4440_vm15, %v5632_v6 }
 0xa57   :  { %5516 = vmatprep.subr.msk.mxu1 %vm4439_vm7, %v5632_v6 }
 0xa58   :  { %5517 = vmatpush3.msk.msra.mxu1 %vm4439_vm7, %v5632_v6 }
 0xa59   :  { %5518 = vmatprep.subr.msk.mxu1 %vm4438_vm9, %v5632_v6 }
 0xa5a   :  { %5519 = vmatpush3.msk.msra.mxu1 %vm4438_vm9, %v5632_v6 }
 0xa5b   :  { %5520 = vmatprep.subr.msk.mxu1 %vm4437_vm12, %v5632_v6 }
 0xa5c   :  { %5521 = vmatpush3.msk.msra.mxu1 %vm4437_vm12, %v5632_v6 }
 0xa5d   :  { %5522 = vmatprep.subr.msk.mxu1 %vm4436_vm2, %v5632_v6 }
 0xa5e   :  { %5523 = vmatpush3.msk.msra.mxu1 %vm4436_vm2, %v5632_v6 }
 0xa5f   :  { %5524 = vmatprep.subr.msk.mxu1 %vm4435_vm4, %v5632_v6 }
 0xa60   :  { %5525 = vmatpush3.msk.msra.mxu1 %vm4435_vm4, %v5632_v6 }
 0xa61   :  { %5526 = vmatprep.subr.msk.mxu1 %vm4434_vm6, %v5632_v6 }
 0xa62   :  { %5527 = vmatpush3.msk.msra.mxu1 %vm4434_vm6, %v5632_v6 }
 0xa63   :  { %5528 = vmatprep.subr.msk.mxu1 %vm4433_vm14, %v5632_v6 }
 0xa64   :  { %5529 = vmatpush3.msk.msra.mxu1 %vm4433_vm14, %v5632_v6 }
 0xa65   :  { %5530 = vmatprep.subr.msk.mxu1 %vm4432_vm10, %v5632_v6 }
 0xa66   :  { %5531 = vmatpush3.msk.msra.mxu1 %vm4432_vm10, %v5632_v6 }
 0xa67   :  { %5532 = vmatprep.subr.msk.mxu1 %vm4431_vm11, %v5632_v6 }
 0xa68   :  { %5533 = vmatpush3.msk.msra.mxu1 %vm4431_vm11, %v5632_v6 }
 0xa69   :  { %5534 = vmatprep.subr.msk.mxu1 %vm4430_vm5, %v5632_v6 }
 0xa6a   :  { %5535 = vmatpush3.msk.msra.mxu1 %vm4430_vm5, %v5632_v6 }
 0xa6b   :  { %5536 = vmatprep.subr.msk.mxu1 %vm4429_vm0, %v5632_v6 }
 0xa6c   :  { %5537 = vmatpush3.msk.msra.mxu1 %vm4429_vm0, %v5632_v6 }
 0xa6d   :  { %5539 = vmatmul.mubr.f32.vlgmr.msra.gmra.mxu1 %v6910_v8 }
 0xa6e   :  { %5541 = vmatprep.mubr.f32.mxu1 %v6916_v11 }
 0xa71   :  { %5542 = vmatmul.mubr.f32.gmra.mxu1 %v6918_v12 }
 0xb0d   :  { %v5505_v5 = vpop.f32.mrf.mxu1 }
 0xb0e   :  { %v4427_v26 = vadd.f32 %v5505_v5, %v7015_v2 }
 0xb0f   :  { %v4417_v29 = vpop.f32.mrf.mxu1 }
 0xb10   :  { %v4426_v6 = vadd.f32 %v4417_v29, %v4216_v25 }
 0xb2d   :  { %v5540_v30 = vpop.f32.mrf.mxu1 }
 0xb2f   :  { %v4527_v31 = vpop.f32.mrf.mxu1 }
 0xb31   :  { %v5543_v32 = vpop.f32.mrf.mxu1 }
 0xb32   :  { %5544 = vmatprep.subr.mxu0 %v5543_v32 }
 0xb33   :  { %v4537_v33 = vpop.f32.mrf.mxu1  ;;  %5545 = vmatpush3.msra.mxu0 %v5543_v32 }
 0xb34   :  { %5546 = vmatprep.subr.mxu0 %v4537_v33 }
 0xb35   :  { %5547 = vmatpush3.msra.mxu0 %v4537_v33 }
 0xb36   :  { %5548 = vmatprep.subr.mxu0 %v5540_v30 }
 0xb37   :  { %5549 = vmatpush3.msra.mxu0 %v5540_v30 }
 0xb38   :  { %5550 = vmatprep.subr.mxu0 %v4527_v31 }
 0xb39   :  { %5551 = vmatpush3.msra.mxu0 %v4527_v31 }
 0xb3a   :  { %5553 = vmatmul.mubr.msk.f32.vlgmr.msra.gmra.mxu0 %vm4061_vm13, %v4913_v34 }
 0xbfa   :  { %v5554_v35 = vpop.f32.mrf.mxu0 }
 0xbfb   :  { %v4631_v36 = vadd.f32 %v5554_v35, %v4427_v26 }
 0xbfc   :  { %v4621_v38 = vpop.f32.mrf.mxu0 }
 0xbfd   :  { %v4645_v14 = vadd.f32 %v4642_v37, %v4631_v36  ;;  %v4630_v39 = vadd.f32 %v4621_v38, %v4426_v6 }
 0xbff   :  { %4649 = vst.msk [vmem:[%s7103_s11 + $0x8] sm:$0x3] %vm4648_vm1, %v4645_v14  ;;  %v4644_v46 = vadd.f32 %v4637_v45, %v4630_v39 }
 0xc01   :  { %4647 = vst.msk [vmem:[%s7103_s11] sm:$0xff] %vm4646_vm3, %v4644_v46 }

</bundles_post_ra>
